<compile_context>
chip_gen: v7x
topology: tpu7x:2x2x1
jax: 0.10.0
libtpu: 0.0.40
codegen_flags: <defaults>
</compile_context>

<pallas_src>
import functools

import jax
import jax.numpy as jnp
import numpy as np
from jax import lax
from jax.experimental import pallas as pl
from jax.experimental.pallas import tpu as pltpu


# ----------------------------------------------------------------------------
# Fused Pallas kernel: whole AMI_LISTA forward for one batch tile
# ----------------------------------------------------------------------------
def ami_lista_kernel(theta_ref,                   # SMEM (L,) scalar prefetch
                     covr_ref, covi_ref,          # (TB, M2)      VMEM
                     bigmat_ref,                  # (2*M2, N + L*2*N)
                     a2t_ref,                     # (L, N, 2*M2)
                     c_ref,                       # (L, 2*M2, 2*N)
                     xfin_ref, xlay_ref,          # (TB, N), (L, TB, N)
                     *, num_layers, num_meshes, neg_slope):
    N = num_meshes
    covr = covr_ref[...]
    covi = covi_ref[...]

    # inf-norm (= max_m |r_m|) normalization, reciprocal-multiply form
    mag = jnp.sqrt(covr * covr + covi * covi)
    inv_nrm = 1.0 / jnp.max(mag, axis=1, keepdims=True)          # (TB, 1)
    covr = covr * inv_nrm
    covi = covi * inv_nrm

    X = jnp.concatenate([covr, covi], axis=1)                    # (TB, 2*M2)

    # One lane-dense matmul yields x0 = Re(D^H r) AND all layers' gamma*We@r:
    #   E[:, :N]                      = x0
    #   E[:, N+2Nl : N+2Nl+N]         = gamma_l * Re(r^T conj(W1_l D))  (= er)
    #   E[:, N+2Nl+N : N+2N(l+1)]     = gamma_l * Im(r^T conj(W1_l D))  (= ei)
    E = jnp.dot(X, bigmat_ref[...], preferred_element_type=jnp.float32)

    x = E[:, :N]                                                 # (TB, N) f32

    for l in range(num_layers):                                  # static unroll
        th = theta_ref[l]
        base = N + 2 * N * l
        er = E[:, base:base + N]
        ei = E[:, base + N:base + 2 * N]

        # U  = [x @ a2r^T | x @ a2i^T]                          (TB, 2*M2)
        U = jnp.dot(x, a2t_ref[l], preferred_element_type=jnp.float32)
        # XG = gamma_l * [x @ Re(G) | x @ Im(G)],  G = (W2 D)^H (W2 D)
        XG = jnp.dot(U, c_ref[l], preferred_element_type=jnp.float32)

        s_r = x - XG[:, :N] + er
        s_i = XG[:, N:] + ei

        t = jnp.sqrt(s_r * s_r + s_i * s_i) - th                 # |s| - theta
        if l < num_layers - 1:
            x = jnp.where(t >= 0.0, t, neg_slope * t)            # LeakyReLU
        else:
            x = jnp.maximum(t, 0.0)                              # ReLU (last)

        # per-sample L2 normalization over the mesh dimension
        nrm = jnp.sqrt(jnp.sum(x * x, axis=1, keepdims=True))
        x = x * (1.0 / (nrm + 1e-20))

        xlay_ref[l] = x                                          # dense (TB,N) slab

    xfin_ref[...] = x


# ----------------------------------------------------------------------------
# Wrapper: batch-independent precompute (XLA) + pallas_call
# ----------------------------------------------------------------------------
def ami_lista_forward(cov, dictionary, params, *, block_b=128):
    """cov: (B, M2) complex; dictionary: (M2, N) complex.
    Returns (x_final (B, N, 1), x_layers (B, L, N, 1)) — matches PyTorch."""
    M2, N = dictionary.shape
    cov = jnp.asarray(cov).reshape(-1, M2).astype(jnp.complex64)
    B = cov.shape[0]

    gamma = params["gamma"].astype(jnp.float32)                  # (L,)
    theta = params["theta"].astype(jnp.float32)
    L = gamma.shape[0]

    D = dictionary.astype(jnp.complex64)
    dr = jnp.real(D).astype(jnp.float32)
    di = jnp.imag(D).astype(jnp.float32)

    hp = jax.lax.Precision.HIGHEST
    # Batch-independent: A1 = W1 @ D, A2 = W2 @ D   (L, M2, N) complex
    A1 = jnp.matmul(params["W1"].astype(jnp.complex64), D, precision=hp)
    A2 = jnp.matmul(params["W2"].astype(jnp.complex64), D, precision=hp)
    a1r, a1i = jnp.real(A1).astype(jnp.float32), jnp.imag(A1).astype(jnp.float32)
    a2r, a2i = jnp.real(A2).astype(jnp.float32), jnp.imag(A2).astype(jnp.float32)

    g = gamma[:, None, None]
    # B_l = gamma_l * [[a1r, -a1i], [a1i, a1r]]   (2*M2, 2*N): [cr|ci] @ B_l = [er|ei]
    b_l = g * jnp.concatenate(
        [jnp.concatenate([a1r, -a1i], axis=2),
         jnp.concatenate([a1i, a1r], axis=2)], axis=1)           # (L, 2*M2, 2N)
    b_all = jnp.transpose(b_l, (1, 0, 2)).reshape(2 * M2, L * 2 * N)
    d_stack = jnp.concatenate([dr, di], axis=0)                  # (2*M2, N)
    bigmat = jnp.concatenate([d_stack, b_all], axis=1)           # (2*M2, N+2LN)

    # A2T_l = [a2r^T | a2i^T]   (N, 2*M2)
    a2t = jnp.concatenate([jnp.transpose(a2r, (0, 2, 1)),
                           jnp.transpose(a2i, (0, 2, 1))], axis=2)   # (L, N, 2*M2)
    # C_l = gamma_l * [[a2r, a2i], [a2i, -a2r]]   (2*M2, 2*N)
    c_mat = g * jnp.concatenate(
        [jnp.concatenate([a2r, a2i], axis=2),
         jnp.concatenate([a2i, -a2r], axis=2)], axis=1)          # (L, 2*M2, 2N)

    covr = jnp.real(cov).astype(jnp.float32)
    covi = jnp.imag(cov).astype(jnp.float32)

    # --- batch tiling: multiple of 8 sublanes; keep grid >= 2 for v7x ---
    bp8 = ((max(B, 1) + 7) // 8) * 8
    tb = max(8, min(((block_b + 7) // 8) * 8, bp8))
    if tb >= bp8 and bp8 >= 16:          # split so both v7x TensorCores get work
        tb = ((bp8 // 2 + 7) // 8) * 8
    n_tiles = (bp8 + tb - 1) // tb
    bp = n_tiles * tb
    if bp != B:                          # pad (real part with 1.0: safe inf-norm)
        covr = jnp.pad(covr, ((0, bp - B), (0, 0)), constant_values=1.0)
        covi = jnp.pad(covi, ((0, bp - B), (0, 0)))

    kernel = functools.partial(ami_lista_kernel, num_layers=L,
                               num_meshes=N, neg_slope=0.01)

    grid_spec = pltpu.PrefetchScalarGridSpec(
        num_scalar_prefetch=1,                                   # theta -> SMEM
        grid=(n_tiles,),
        in_specs=[
            pl.BlockSpec((tb, M2), lambda b, *_: (b, 0)),                    # cov real
            pl.BlockSpec((tb, M2), lambda b, *_: (b, 0)),                    # cov imag
            pl.BlockSpec((2 * M2, N + L * 2 * N), lambda b, *_: (0, 0)),     # bigmat
            pl.BlockSpec((L, N, 2 * M2), lambda b, *_: (0, 0, 0)),           # A2^T pack
            pl.BlockSpec((L, 2 * M2, 2 * N), lambda b, *_: (0, 0, 0)),       # C pack
        ],
        out_specs=[
            pl.BlockSpec((tb, N), lambda b, *_: (b, 0)),                     # x_final
            pl.BlockSpec((L, tb, N), lambda b, *_: (0, b, 0)),               # x_layers
        ],
    )

    xfin, xlay = pl.pallas_call(
        kernel,
        out_shape=(jax.ShapeDtypeStruct((bp, N), jnp.float32),
                   jax.ShapeDtypeStruct((L, bp, N), jnp.float32)),
        grid_spec=grid_spec,
        compiler_params=pltpu.CompilerParams(
            dimension_semantics=("parallel",)),                  # megacore sharding
    )(theta, covr, covi, bigmat, a2t, c_mat)

    xfin = xfin[:B]
    xlay = jnp.transpose(xlay[:, :B, :], (1, 0, 2))              # (B, L, N)
    return xfin[..., None], xlay[..., None]                      # (B,N,1), (B,L,N,1)


# ----------------------------------------------------------------------------
# Problem setup (deterministic): array-manifold dictionary + params
# ----------------------------------------------------------------------------
def make_dictionary(num_sensors, num_meshes):
    angles = jnp.linspace(-60.0, 60.0, num_meshes) * (jnp.pi / 180.0)
    d = jnp.arange(num_sensors, dtype=jnp.float32)
    steer = jnp.exp(1j * jnp.pi * d[:, None] * jnp.sin(angles)[None, :])  # (S,N)
    D = (steer[:, None, :] * jnp.conj(steer)[None, :, :]).reshape(
        num_sensors * num_sensors, num_meshes)
    return D.astype(jnp.complex64)


def _rand_c(key, shape, scale):
    kr, ki = jax.random.split(key)
    return (scale * (jax.random.normal(kr, shape)
                     + 1j * jax.random.normal(ki, shape))).astype(jnp.complex64)


def init_params(key, M2, num_layers):
    # Module init is identity + 0j; add a small deterministic complex
    # perturbation so the complex/transpose math is actually exercised.
    k1, k2 = jax.random.split(key)
    eye = jnp.eye(M2, dtype=jnp.complex64)
    return {
        "W1": eye[None] + _rand_c(k1, (num_layers, M2, M2), 0.05),
        "W2": eye[None] + _rand_c(k2, (num_layers, M2, M2), 0.05),
        "gamma": 0.001 * jnp.ones((num_layers,), jnp.float32),
        "theta": 0.001 * jnp.ones((num_layers,), jnp.float32),
    }


# ----------------------------------------------------------------------------
# Pure-JAX (complex64) reference mirroring the PyTorch forward
# ----------------------------------------------------------------------------
def ami_lista_ref(cov, dictionary, params):
    M2, N = dictionary.shape
    L = params["gamma"].shape[0]
    cov = jnp.asarray(cov).reshape(-1, M2, 1).astype(jnp.complex64)
    nrm = jnp.max(jnp.abs(cov), axis=(1, 2), keepdims=True)
    cov = cov / nrm
    x = jnp.real(jnp.matmul(jnp.conj(dictionary).T, cov)).astype(jnp.float32)
    eye = jnp.eye(N, dtype=jnp.complex64)
    layers = []
    for l in range(L):
        W1D = params["W1"][l] @ dictionary
        W2D = params["W2"][l] @ dictionary
        Wt = eye - params["gamma"][l] * (jnp.conj(W2D).T @ W2D)
        We = params["gamma"][l] * jnp.conj(W1D).T
        s = jnp.matmul(Wt, x.astype(jnp.complex64)) + jnp.matmul(We, cov)
        t = jnp.abs(s) - params["theta"][l]
        if l < L - 1:
            x = jnp.where(t >= 0, t, 0.01 * t)
        else:
            x = jnp.maximum(t, 0.0)
        x = x / (jnp.sqrt(jnp.sum(x * x, axis=1, keepdims=True)) + 1e-20)
        layers.append(x)
    return x, jnp.stack(layers, axis=1)


if __name__ == "__main__":
    key = jax.random.PRNGKey(0)
    kx, kp = jax.random.split(key)

    num_sensors, num_meshes, num_layers, B = 4, 128, 10, 32
    M2 = num_sensors * num_sensors                     # 16

    D = make_dictionary(num_sensors, num_meshes)       # (16, 128) complex64
    params = init_params(kp, M2, num_layers)
    cov = _rand_c(kx, (B, M2), 1.0)                    # (32, 16) complex64

    # block_b=16 -> grid of 2 parallel batch tiles (exercises megacore path)
    x_fin, x_lay = ami_lista_forward(cov, D, params, block_b=16)
    x_fin = jax.block_until_ready(x_fin)
    x_lay = jax.block_until_ready(x_lay)
    assert x_fin.shape == (B, num_meshes, 1)
    assert x_lay.shape == (B, num_layers, num_meshes, 1)

    ref_fin, ref_lay = ami_lista_ref(cov, D, params)
    np.testing.assert_allclose(np.asarray(x_fin), np.asarray(ref_fin),
                               rtol=2e-4, atol=2e-4)
    np.testing.assert_allclose(np.asarray(x_lay), np.asarray(ref_lay),
                               rtol=2e-4, atol=2e-4)

    print("KERNEL_OK")
</pallas_src>

<mosaic_0001>
module attributes {stable_mosaic.version = 11 : i64} {
  func.func @ami_lista_kernel(%arg0: i32, %arg1: memref<10xf32, #tpu.memory_space<smem>>, %arg2: memref<16x16xf32, #tpu.memory_space<vmem>>, %arg3: memref<16x16xf32, #tpu.memory_space<vmem>>, %arg4: memref<32x2688xf32, #tpu.memory_space<vmem>>, %arg5: memref<10x128x32xf32, #tpu.memory_space<vmem>>, %arg6: memref<10x32x256xf32, #tpu.memory_space<vmem>>, %arg7: memref<16x128xf32, #tpu.memory_space<vmem>>, %arg8: memref<10x16x128xf32, #tpu.memory_space<vmem>>) attributes {dimension_semantics = [#tpu.dimension_semantics<parallel>], iteration_bounds = array<i64: 2>, scalar_prefetch = 1 : i64, scratch_operands = 0 : i64, tpu.core_type = #tpu.core_type<tc>, window_params = [{transform_indices = @transform_0, window_bounds = array<i64: 16, 16>}, {transform_indices = @transform_1, window_bounds = array<i64: 16, 16>}, {pipeline_mode = #tpu.pipeline_mode<synchronous>, transform_indices = @transform_2, window_bounds = array<i64: 32, 2688>}, {pipeline_mode = #tpu.pipeline_mode<synchronous>, transform_indices = @transform_3, window_bounds = array<i64: 10, 128, 32>}, {pipeline_mode = #tpu.pipeline_mode<synchronous>, transform_indices = @transform_4, window_bounds = array<i64: 10, 32, 256>}, {transform_indices = @transform_5, window_bounds = array<i64: 16, 128>}, {transform_indices = @transform_6, window_bounds = array<i64: 10, 16, 128>}]} {
    %c0 = arith.constant 0 : index
    %c0_0 = arith.constant 0 : index
    %0 = vector.load %arg2[%c0, %c0_0] : memref<16x16xf32, #tpu.memory_space<vmem>>, vector<16x16xf32>
    %c0_1 = arith.constant 0 : index
    %c0_2 = arith.constant 0 : index
    %1 = vector.load %arg3[%c0_1, %c0_2] : memref<16x16xf32, #tpu.memory_space<vmem>>, vector<16x16xf32>
    %2 = arith.mulf %0, %0 : vector<16x16xf32>
    %3 = arith.mulf %1, %1 : vector<16x16xf32>
    %4 = arith.addf %2, %3 : vector<16x16xf32>
    %5 = math.sqrt %4 : vector<16x16xf32>
    %cst = arith.constant dense<0xFF800000> : vector<16xf32>
    %6 = vector.multi_reduction <maximumf>, %5, %cst [1] : vector<16x16xf32> to vector<16xf32>
    %7 = vector.shape_cast %6 : vector<16xf32> to vector<16x1xf32>
    %cst_3 = arith.constant 1.000000e+00 : f32
    %8 = vector.broadcast %cst_3 : f32 to vector<16x1xf32>
    %9 = arith.divf %8, %7 : vector<16x1xf32>
    %10 = vector.broadcast %9 : vector<16x1xf32> to vector<16x16xf32>
    %11 = arith.mulf %0, %10 : vector<16x16xf32>
    %12 = vector.broadcast %9 : vector<16x1xf32> to vector<16x16xf32>
    %13 = arith.mulf %1, %12 : vector<16x16xf32>
    %14 = tpu.concatenate %11, %13 in 1 : vector<16x16xf32>, vector<16x16xf32> -> vector<16x32xf32>
    %c0_4 = arith.constant 0 : index
    %c0_5 = arith.constant 0 : index
    %15 = vector.load %arg4[%c0_4, %c0_5] : memref<32x2688xf32, #tpu.memory_space<vmem>>, vector<32x2688xf32>
    %cst_6 = arith.constant dense<0.000000e+00> : vector<16x2688xf32>
    %16 = tpu.matmul %14, %15, %cst_6 {dimension_numbers = #tpu.dot_dimension_numbers<[1], [0], [0], [1], [0, 0, 1, 1], [], []>} : vector<16x32xf32>, vector<32x2688xf32>, vector<16x2688xf32> -> vector<16x2688xf32>
    %17 = vector.extract_strided_slice %16 {offsets = [0, 0], sizes = [16, 128], strides = [1, 1]} : vector<16x2688xf32> to vector<16x128xf32>
    %c0_7 = arith.constant 0 : index
    %18 = memref.load %arg1[%c0_7] : memref<10xf32, #tpu.memory_space<smem>>
    %19 = vector.extract_strided_slice %16 {offsets = [0, 128], sizes = [16, 128], strides = [1, 1]} : vector<16x2688xf32> to vector<16x128xf32>
    %20 = vector.extract_strided_slice %16 {offsets = [0, 256], sizes = [16, 128], strides = [1, 1]} : vector<16x2688xf32> to vector<16x128xf32>
    %c0_8 = arith.constant 0 : index
    %c0_9 = arith.constant 0 : index
    %c0_10 = arith.constant 0 : index
    %21 = vector.load %arg5[%c0_8, %c0_9, %c0_10] : memref<10x128x32xf32, #tpu.memory_space<vmem>>, vector<1x128x32xf32>
    %22 = vector.shape_cast %21 : vector<1x128x32xf32> to vector<128x32xf32>
    %cst_11 = arith.constant dense<0.000000e+00> : vector<16x32xf32>
    %23 = tpu.matmul %17, %22, %cst_11 {dimension_numbers = #tpu.dot_dimension_numbers<[1], [0], [0], [1], [0, 0, 1, 1], [], []>} : vector<16x128xf32>, vector<128x32xf32>, vector<16x32xf32> -> vector<16x32xf32>
    %c0_12 = arith.constant 0 : index
    %c0_13 = arith.constant 0 : index
    %c0_14 = arith.constant 0 : index
    %24 = vector.load %arg6[%c0_12, %c0_13, %c0_14] : memref<10x32x256xf32, #tpu.memory_space<vmem>>, vector<1x32x256xf32>
    %25 = vector.shape_cast %24 : vector<1x32x256xf32> to vector<32x256xf32>
    %cst_15 = arith.constant dense<0.000000e+00> : vector<16x256xf32>
    %26 = tpu.matmul %23, %25, %cst_15 {dimension_numbers = #tpu.dot_dimension_numbers<[1], [0], [0], [1], [0, 0, 1, 1], [], []>} : vector<16x32xf32>, vector<32x256xf32>, vector<16x256xf32> -> vector<16x256xf32>
    %27 = vector.extract_strided_slice %26 {offsets = [0, 0], sizes = [16, 128], strides = [1, 1]} : vector<16x256xf32> to vector<16x128xf32>
    %28 = arith.subf %17, %27 : vector<16x128xf32>
    %29 = arith.addf %28, %19 : vector<16x128xf32>
    %30 = vector.extract_strided_slice %26 {offsets = [0, 128], sizes = [16, 128], strides = [1, 1]} : vector<16x256xf32> to vector<16x128xf32>
    %31 = arith.addf %30, %20 : vector<16x128xf32>
    %32 = arith.mulf %29, %29 : vector<16x128xf32>
    %33 = arith.mulf %31, %31 : vector<16x128xf32>
    %34 = arith.addf %32, %33 : vector<16x128xf32>
    %35 = math.sqrt %34 : vector<16x128xf32>
    %36 = vector.broadcast %18 : f32 to vector<16x128xf32>
    %37 = arith.subf %35, %36 : vector<16x128xf32>
    %cst_16 = arith.constant 0.000000e+00 : f32
    %38 = vector.broadcast %cst_16 : f32 to vector<16x128xf32>
    %39 = arith.cmpf oge, %37, %38 : vector<16x128xf32>
    %cst_17 = arith.constant 0.00999999977 : f32
    %40 = vector.broadcast %cst_17 : f32 to vector<16x128xf32>
    %41 = arith.mulf %40, %37 : vector<16x128xf32>
    %42 = arith.select %39, %37, %41 : vector<16x128xi1>, vector<16x128xf32>
    %43 = arith.mulf %42, %42 : vector<16x128xf32>
    %cst_18 = arith.constant dense<0.000000e+00> : vector<16xf32>
    %44 = vector.multi_reduction <add>, %43, %cst_18 [1] : vector<16x128xf32> to vector<16xf32>
    %45 = vector.shape_cast %44 : vector<16xf32> to vector<16x1xf32>
    %46 = math.sqrt %45 : vector<16x1xf32>
    %cst_19 = arith.constant 9.99999968E-21 : f32
    %47 = vector.broadcast %cst_19 : f32 to vector<16x1xf32>
    %48 = arith.addf %46, %47 : vector<16x1xf32>
    %cst_20 = arith.constant 1.000000e+00 : f32
    %49 = vector.broadcast %cst_20 : f32 to vector<16x1xf32>
    %50 = arith.divf %49, %48 : vector<16x1xf32>
    %51 = vector.broadcast %50 : vector<16x1xf32> to vector<16x128xf32>
    %52 = arith.mulf %42, %51 : vector<16x128xf32>
    %c0_21 = arith.constant 0 : index
    %c0_22 = arith.constant 0 : index
    %c0_23 = arith.constant 0 : index
    %53 = vector.load %arg8[%c0_21, %c0_22, %c0_23] : memref<10x16x128xf32, #tpu.memory_space<vmem>>, vector<1x16x128xf32>
    %54 = vector.shape_cast %53 : vector<1x16x128xf32> to vector<16x128xf32>
    %55 = vector.shape_cast %52 : vector<16x128xf32> to vector<1x16x128xf32>
    tpu.vector_store %arg8[%c0_21, %c0_22, %c0_23], %55 {strides = array<i32>} : memref<10x16x128xf32, #tpu.memory_space<vmem>>, vector<1x16x128xf32>,
    %c1 = arith.constant 1 : index
    %56 = memref.load %arg1[%c1] : memref<10xf32, #tpu.memory_space<smem>>
    %57 = vector.extract_strided_slice %16 {offsets = [0, 384], sizes = [16, 128], strides = [1, 1]} : vector<16x2688xf32> to vector<16x128xf32>
    %58 = vector.extract_strided_slice %16 {offsets = [0, 512], sizes = [16, 128], strides = [1, 1]} : vector<16x2688xf32> to vector<16x128xf32>
    %c1_24 = arith.constant 1 : index
    %c0_25 = arith.constant 0 : index
    %c0_26 = arith.constant 0 : index
    %59 = vector.load %arg5[%c1_24, %c0_25, %c0_26] : memref<10x128x32xf32, #tpu.memory_space<vmem>>, vector<1x128x32xf32>
    %60 = vector.shape_cast %59 : vector<1x128x32xf32> to vector<128x32xf32>
    %cst_27 = arith.constant dense<0.000000e+00> : vector<16x32xf32>
    %61 = tpu.matmul %52, %60, %cst_27 {dimension_numbers = #tpu.dot_dimension_numbers<[1], [0], [0], [1], [0, 0, 1, 1], [], []>} : vector<16x128xf32>, vector<128x32xf32>, vector<16x32xf32> -> vector<16x32xf32>
    %c1_28 = arith.constant 1 : index
    %c0_29 = arith.constant 0 : index
    %c0_30 = arith.constant 0 : index
    %62 = vector.load %arg6[%c1_28, %c0_29, %c0_30] : memref<10x32x256xf32, #tpu.memory_space<vmem>>, vector<1x32x256xf32>
    %63 = vector.shape_cast %62 : vector<1x32x256xf32> to vector<32x256xf32>
    %cst_31 = arith.constant dense<0.000000e+00> : vector<16x256xf32>
    %64 = tpu.matmul %61, %63, %cst_31 {dimension_numbers = #tpu.dot_dimension_numbers<[1], [0], [0], [1], [0, 0, 1, 1], [], []>} : vector<16x32xf32>, vector<32x256xf32>, vector<16x256xf32> -> vector<16x256xf32>
    %65 = vector.extract_strided_slice %64 {offsets = [0, 0], sizes = [16, 128], strides = [1, 1]} : vector<16x256xf32> to vector<16x128xf32>
    %66 = arith.subf %52, %65 : vector<16x128xf32>
    %67 = arith.addf %66, %57 : vector<16x128xf32>
    %68 = vector.extract_strided_slice %64 {offsets = [0, 128], sizes = [16, 128], strides = [1, 1]} : vector<16x256xf32> to vector<16x128xf32>
    %69 = arith.addf %68, %58 : vector<16x128xf32>
    %70 = arith.mulf %67, %67 : vector<16x128xf32>
    %71 = arith.mulf %69, %69 : vector<16x128xf32>
    %72 = arith.addf %70, %71 : vector<16x128xf32>
    %73 = math.sqrt %72 : vector<16x128xf32>
    %74 = vector.broadcast %56 : f32 to vector<16x128xf32>
    %75 = arith.subf %73, %74 : vector<16x128xf32>
    %cst_32 = arith.constant 0.000000e+00 : f32
    %76 = vector.broadcast %cst_32 : f32 to vector<16x128xf32>
    %77 = arith.cmpf oge, %75, %76 : vector<16x128xf32>
    %cst_33 = arith.constant 0.00999999977 : f32
    %78 = vector.broadcast %cst_33 : f32 to vector<16x128xf32>
    %79 = arith.mulf %78, %75 : vector<16x128xf32>
    %80 = arith.select %77, %75, %79 : vector<16x128xi1>, vector<16x128xf32>
    %81 = arith.mulf %80, %80 : vector<16x128xf32>
    %cst_34 = arith.constant dense<0.000000e+00> : vector<16xf32>
    %82 = vector.multi_reduction <add>, %81, %cst_34 [1] : vector<16x128xf32> to vector<16xf32>
    %83 = vector.shape_cast %82 : vector<16xf32> to vector<16x1xf32>
    %84 = math.sqrt %83 : vector<16x1xf32>
    %cst_35 = arith.constant 9.99999968E-21 : f32
    %85 = vector.broadcast %cst_35 : f32 to vector<16x1xf32>
    %86 = arith.addf %84, %85 : vector<16x1xf32>
    %cst_36 = arith.constant 1.000000e+00 : f32
    %87 = vector.broadcast %cst_36 : f32 to vector<16x1xf32>
    %88 = arith.divf %87, %86 : vector<16x1xf32>
    %89 = vector.broadcast %88 : vector<16x1xf32> to vector<16x128xf32>
    %90 = arith.mulf %80, %89 : vector<16x128xf32>
    %c1_37 = arith.constant 1 : index
    %c0_38 = arith.constant 0 : index
    %c0_39 = arith.constant 0 : index
    %91 = vector.load %arg8[%c1_37, %c0_38, %c0_39] : memref<10x16x128xf32, #tpu.memory_space<vmem>>, vector<1x16x128xf32>
    %92 = vector.shape_cast %91 : vector<1x16x128xf32> to vector<16x128xf32>
    %93 = vector.shape_cast %90 : vector<16x128xf32> to vector<1x16x128xf32>
    tpu.vector_store %arg8[%c1_37, %c0_38, %c0_39], %93 {strides = array<i32>} : memref<10x16x128xf32, #tpu.memory_space<vmem>>, vector<1x16x128xf32>,
    %c2 = arith.constant 2 : index
    %94 = memref.load %arg1[%c2] : memref<10xf32, #tpu.memory_space<smem>>
    %95 = vector.extract_strided_slice %16 {offsets = [0, 640], sizes = [16, 128], strides = [1, 1]} : vector<16x2688xf32> to vector<16x128xf32>
    %96 = vector.extract_strided_slice %16 {offsets = [0, 768], sizes = [16, 128], strides = [1, 1]} : vector<16x2688xf32> to vector<16x128xf32>
    %c2_40 = arith.constant 2 : index
    %c0_41 = arith.constant 0 : index
    %c0_42 = arith.constant 0 : index
    %97 = vector.load %arg5[%c2_40, %c0_41, %c0_42] : memref<10x128x32xf32, #tpu.memory_space<vmem>>, vector<1x128x32xf32>
    %98 = vector.shape_cast %97 : vector<1x128x32xf32> to vector<128x32xf32>
    %cst_43 = arith.constant dense<0.000000e+00> : vector<16x32xf32>
    %99 = tpu.matmul %90, %98, %cst_43 {dimension_numbers = #tpu.dot_dimension_numbers<[1], [0], [0], [1], [0, 0, 1, 1], [], []>} : vector<16x128xf32>, vector<128x32xf32>, vector<16x32xf32> -> vector<16x32xf32>
    %c2_44 = arith.constant 2 : index
    %c0_45 = arith.constant 0 : index
    %c0_46 = arith.constant 0 : index
    %100 = vector.load %arg6[%c2_44, %c0_45, %c0_46] : memref<10x32x256xf32, #tpu.memory_space<vmem>>, vector<1x32x256xf32>
    %101 = vector.shape_cast %100 : vector<1x32x256xf32> to vector<32x256xf32>
    %cst_47 = arith.constant dense<0.000000e+00> : vector<16x256xf32>
    %102 = tpu.matmul %99, %101, %cst_47 {dimension_numbers = #tpu.dot_dimension_numbers<[1], [0], [0], [1], [0, 0, 1, 1], [], []>} : vector<16x32xf32>, vector<32x256xf32>, vector<16x256xf32> -> vector<16x256xf32>
    %103 = vector.extract_strided_slice %102 {offsets = [0, 0], sizes = [16, 128], strides = [1, 1]} : vector<16x256xf32> to vector<16x128xf32>
    %104 = arith.subf %90, %103 : vector<16x128xf32>
    %105 = arith.addf %104, %95 : vector<16x128xf32>
    %106 = vector.extract_strided_slice %102 {offsets = [0, 128], sizes = [16, 128], strides = [1, 1]} : vector<16x256xf32> to vector<16x128xf32>
    %107 = arith.addf %106, %96 : vector<16x128xf32>
    %108 = arith.mulf %105, %105 : vector<16x128xf32>
    %109 = arith.mulf %107, %107 : vector<16x128xf32>
    %110 = arith.addf %108, %109 : vector<16x128xf32>
    %111 = math.sqrt %110 : vector<16x128xf32>
    %112 = vector.broadcast %94 : f32 to vector<16x128xf32>
    %113 = arith.subf %111, %112 : vector<16x128xf32>
    %cst_48 = arith.constant 0.000000e+00 : f32
    %114 = vector.broadcast %cst_48 : f32 to vector<16x128xf32>
    %115 = arith.cmpf oge, %113, %114 : vector<16x128xf32>
    %cst_49 = arith.constant 0.00999999977 : f32
    %116 = vector.broadcast %cst_49 : f32 to vector<16x128xf32>
    %117 = arith.mulf %116, %113 : vector<16x128xf32>
    %118 = arith.select %115, %113, %117 : vector<16x128xi1>, vector<16x128xf32>
    %119 = arith.mulf %118, %118 : vector<16x128xf32>
    %cst_50 = arith.constant dense<0.000000e+00> : vector<16xf32>
    %120 = vector.multi_reduction <add>, %119, %cst_50 [1] : vector<16x128xf32> to vector<16xf32>
    %121 = vector.shape_cast %120 : vector<16xf32> to vector<16x1xf32>
    %122 = math.sqrt %121 : vector<16x1xf32>
    %cst_51 = arith.constant 9.99999968E-21 : f32
    %123 = vector.broadcast %cst_51 : f32 to vector<16x1xf32>
    %124 = arith.addf %122, %123 : vector<16x1xf32>
    %cst_52 = arith.constant 1.000000e+00 : f32
    %125 = vector.broadcast %cst_52 : f32 to vector<16x1xf32>
    %126 = arith.divf %125, %124 : vector<16x1xf32>
    %127 = vector.broadcast %126 : vector<16x1xf32> to vector<16x128xf32>
    %128 = arith.mulf %118, %127 : vector<16x128xf32>
    %c2_53 = arith.constant 2 : index
    %c0_54 = arith.constant 0 : index
    %c0_55 = arith.constant 0 : index
    %129 = vector.load %arg8[%c2_53, %c0_54, %c0_55] : memref<10x16x128xf32, #tpu.memory_space<vmem>>, vector<1x16x128xf32>
    %130 = vector.shape_cast %129 : vector<1x16x128xf32> to vector<16x128xf32>
    %131 = vector.shape_cast %128 : vector<16x128xf32> to vector<1x16x128xf32>
    tpu.vector_store %arg8[%c2_53, %c0_54, %c0_55], %131 {strides = array<i32>} : memref<10x16x128xf32, #tpu.memory_space<vmem>>, vector<1x16x128xf32>,
    %c3 = arith.constant 3 : index
    %132 = memref.load %arg1[%c3] : memref<10xf32, #tpu.memory_space<smem>>
    %133 = vector.extract_strided_slice %16 {offsets = [0, 896], sizes = [16, 128], strides = [1, 1]} : vector<16x2688xf32> to vector<16x128xf32>
    %134 = vector.extract_strided_slice %16 {offsets = [0, 1024], sizes = [16, 128], strides = [1, 1]} : vector<16x2688xf32> to vector<16x128xf32>
    %c3_56 = arith.constant 3 : index
    %c0_57 = arith.constant 0 : index
    %c0_58 = arith.constant 0 : index
    %135 = vector.load %arg5[%c3_56, %c0_57, %c0_58] : memref<10x128x32xf32, #tpu.memory_space<vmem>>, vector<1x128x32xf32>
    %136 = vector.shape_cast %135 : vector<1x128x32xf32> to vector<128x32xf32>
    %cst_59 = arith.constant dense<0.000000e+00> : vector<16x32xf32>
    %137 = tpu.matmul %128, %136, %cst_59 {dimension_numbers = #tpu.dot_dimension_numbers<[1], [0], [0], [1], [0, 0, 1, 1], [], []>} : vector<16x128xf32>, vector<128x32xf32>, vector<16x32xf32> -> vector<16x32xf32>
    %c3_60 = arith.constant 3 : index
    %c0_61 = arith.constant 0 : index
    %c0_62 = arith.constant 0 : index
    %138 = vector.load %arg6[%c3_60, %c0_61, %c0_62] : memref<10x32x256xf32, #tpu.memory_space<vmem>>, vector<1x32x256xf32>
    %139 = vector.shape_cast %138 : vector<1x32x256xf32> to vector<32x256xf32>
    %cst_63 = arith.constant dense<0.000000e+00> : vector<16x256xf32>
    %140 = tpu.matmul %137, %139, %cst_63 {dimension_numbers = #tpu.dot_dimension_numbers<[1], [0], [0], [1], [0, 0, 1, 1], [], []>} : vector<16x32xf32>, vector<32x256xf32>, vector<16x256xf32> -> vector<16x256xf32>
    %141 = vector.extract_strided_slice %140 {offsets = [0, 0], sizes = [16, 128], strides = [1, 1]} : vector<16x256xf32> to vector<16x128xf32>
    %142 = arith.subf %128, %141 : vector<16x128xf32>
    %143 = arith.addf %142, %133 : vector<16x128xf32>
    %144 = vector.extract_strided_slice %140 {offsets = [0, 128], sizes = [16, 128], strides = [1, 1]} : vector<16x256xf32> to vector<16x128xf32>
    %145 = arith.addf %144, %134 : vector<16x128xf32>
    %146 = arith.mulf %143, %143 : vector<16x128xf32>
    %147 = arith.mulf %145, %145 : vector<16x128xf32>
    %148 = arith.addf %146, %147 : vector<16x128xf32>
    %149 = math.sqrt %148 : vector<16x128xf32>
    %150 = vector.broadcast %132 : f32 to vector<16x128xf32>
    %151 = arith.subf %149, %150 : vector<16x128xf32>
    %cst_64 = arith.constant 0.000000e+00 : f32
    %152 = vector.broadcast %cst_64 : f32 to vector<16x128xf32>
    %153 = arith.cmpf oge, %151, %152 : vector<16x128xf32>
    %cst_65 = arith.constant 0.00999999977 : f32
    %154 = vector.broadcast %cst_65 : f32 to vector<16x128xf32>
    %155 = arith.mulf %154, %151 : vector<16x128xf32>
    %156 = arith.select %153, %151, %155 : vector<16x128xi1>, vector<16x128xf32>
    %157 = arith.mulf %156, %156 : vector<16x128xf32>
    %cst_66 = arith.constant dense<0.000000e+00> : vector<16xf32>
    %158 = vector.multi_reduction <add>, %157, %cst_66 [1] : vector<16x128xf32> to vector<16xf32>
    %159 = vector.shape_cast %158 : vector<16xf32> to vector<16x1xf32>
    %160 = math.sqrt %159 : vector<16x1xf32>
    %cst_67 = arith.constant 9.99999968E-21 : f32
    %161 = vector.broadcast %cst_67 : f32 to vector<16x1xf32>
    %162 = arith.addf %160, %161 : vector<16x1xf32>
    %cst_68 = arith.constant 1.000000e+00 : f32
    %163 = vector.broadcast %cst_68 : f32 to vector<16x1xf32>
    %164 = arith.divf %163, %162 : vector<16x1xf32>
    %165 = vector.broadcast %164 : vector<16x1xf32> to vector<16x128xf32>
    %166 = arith.mulf %156, %165 : vector<16x128xf32>
    %c3_69 = arith.constant 3 : index
    %c0_70 = arith.constant 0 : index
    %c0_71 = arith.constant 0 : index
    %167 = vector.load %arg8[%c3_69, %c0_70, %c0_71] : memref<10x16x128xf32, #tpu.memory_space<vmem>>, vector<1x16x128xf32>
    %168 = vector.shape_cast %167 : vector<1x16x128xf32> to vector<16x128xf32>
    %169 = vector.shape_cast %166 : vector<16x128xf32> to vector<1x16x128xf32>
    tpu.vector_store %arg8[%c3_69, %c0_70, %c0_71], %169 {strides = array<i32>} : memref<10x16x128xf32, #tpu.memory_space<vmem>>, vector<1x16x128xf32>,
    %c4 = arith.constant 4 : index
    %170 = memref.load %arg1[%c4] : memref<10xf32, #tpu.memory_space<smem>>
    %171 = vector.extract_strided_slice %16 {offsets = [0, 1152], sizes = [16, 128], strides = [1, 1]} : vector<16x2688xf32> to vector<16x128xf32>
    %172 = vector.extract_strided_slice %16 {offsets = [0, 1280], sizes = [16, 128], strides = [1, 1]} : vector<16x2688xf32> to vector<16x128xf32>
    %c4_72 = arith.constant 4 : index
    %c0_73 = arith.constant 0 : index
    %c0_74 = arith.constant 0 : index
    %173 = vector.load %arg5[%c4_72, %c0_73, %c0_74] : memref<10x128x32xf32, #tpu.memory_space<vmem>>, vector<1x128x32xf32>
    %174 = vector.shape_cast %173 : vector<1x128x32xf32> to vector<128x32xf32>
    %cst_75 = arith.constant dense<0.000000e+00> : vector<16x32xf32>
    %175 = tpu.matmul %166, %174, %cst_75 {dimension_numbers = #tpu.dot_dimension_numbers<[1], [0], [0], [1], [0, 0, 1, 1], [], []>} : vector<16x128xf32>, vector<128x32xf32>, vector<16x32xf32> -> vector<16x32xf32>
    %c4_76 = arith.constant 4 : index
    %c0_77 = arith.constant 0 : index
    %c0_78 = arith.constant 0 : index
    %176 = vector.load %arg6[%c4_76, %c0_77, %c0_78] : memref<10x32x256xf32, #tpu.memory_space<vmem>>, vector<1x32x256xf32>
    %177 = vector.shape_cast %176 : vector<1x32x256xf32> to vector<32x256xf32>
    %cst_79 = arith.constant dense<0.000000e+00> : vector<16x256xf32>
    %178 = tpu.matmul %175, %177, %cst_79 {dimension_numbers = #tpu.dot_dimension_numbers<[1], [0], [0], [1], [0, 0, 1, 1], [], []>} : vector<16x32xf32>, vector<32x256xf32>, vector<16x256xf32> -> vector<16x256xf32>
    %179 = vector.extract_strided_slice %178 {offsets = [0, 0], sizes = [16, 128], strides = [1, 1]} : vector<16x256xf32> to vector<16x128xf32>
    %180 = arith.subf %166, %179 : vector<16x128xf32>
    %181 = arith.addf %180, %171 : vector<16x128xf32>
    %182 = vector.extract_strided_slice %178 {offsets = [0, 128], sizes = [16, 128], strides = [1, 1]} : vector<16x256xf32> to vector<16x128xf32>
    %183 = arith.addf %182, %172 : vector<16x128xf32>
    %184 = arith.mulf %181, %181 : vector<16x128xf32>
    %185 = arith.mulf %183, %183 : vector<16x128xf32>
    %186 = arith.addf %184, %185 : vector<16x128xf32>
    %187 = math.sqrt %186 : vector<16x128xf32>
    %188 = vector.broadcast %170 : f32 to vector<16x128xf32>
    %189 = arith.subf %187, %188 : vector<16x128xf32>
    %cst_80 = arith.constant 0.000000e+00 : f32
    %190 = vector.broadcast %cst_80 : f32 to vector<16x128xf32>
    %191 = arith.cmpf oge, %189, %190 : vector<16x128xf32>
    %cst_81 = arith.constant 0.00999999977 : f32
    %192 = vector.broadcast %cst_81 : f32 to vector<16x128xf32>
    %193 = arith.mulf %192, %189 : vector<16x128xf32>
    %194 = arith.select %191, %189, %193 : vector<16x128xi1>, vector<16x128xf32>
    %195 = arith.mulf %194, %194 : vector<16x128xf32>
    %cst_82 = arith.constant dense<0.000000e+00> : vector<16xf32>
    %196 = vector.multi_reduction <add>, %195, %cst_82 [1] : vector<16x128xf32> to vector<16xf32>
    %197 = vector.shape_cast %196 : vector<16xf32> to vector<16x1xf32>
    %198 = math.sqrt %197 : vector<16x1xf32>
    %cst_83 = arith.constant 9.99999968E-21 : f32
    %199 = vector.broadcast %cst_83 : f32 to vector<16x1xf32>
    %200 = arith.addf %198, %199 : vector<16x1xf32>
    %cst_84 = arith.constant 1.000000e+00 : f32
    %201 = vector.broadcast %cst_84 : f32 to vector<16x1xf32>
    %202 = arith.divf %201, %200 : vector<16x1xf32>
    %203 = vector.broadcast %202 : vector<16x1xf32> to vector<16x128xf32>
    %204 = arith.mulf %194, %203 : vector<16x128xf32>
    %c4_85 = arith.constant 4 : index
    %c0_86 = arith.constant 0 : index
    %c0_87 = arith.constant 0 : index
    %205 = vector.load %arg8[%c4_85, %c0_86, %c0_87] : memref<10x16x128xf32, #tpu.memory_space<vmem>>, vector<1x16x128xf32>
    %206 = vector.shape_cast %205 : vector<1x16x128xf32> to vector<16x128xf32>
    %207 = vector.shape_cast %204 : vector<16x128xf32> to vector<1x16x128xf32>
    tpu.vector_store %arg8[%c4_85, %c0_86, %c0_87], %207 {strides = array<i32>} : memref<10x16x128xf32, #tpu.memory_space<vmem>>, vector<1x16x128xf32>,
    %c5 = arith.constant 5 : index
    %208 = memref.load %arg1[%c5] : memref<10xf32, #tpu.memory_space<smem>>
    %209 = vector.extract_strided_slice %16 {offsets = [0, 1408], sizes = [16, 128], strides = [1, 1]} : vector<16x2688xf32> to vector<16x128xf32>
    %210 = vector.extract_strided_slice %16 {offsets = [0, 1536], sizes = [16, 128], strides = [1, 1]} : vector<16x2688xf32> to vector<16x128xf32>
    %c5_88 = arith.constant 5 : index
    %c0_89 = arith.constant 0 : index
    %c0_90 = arith.constant 0 : index
    %211 = vector.load %arg5[%c5_88, %c0_89, %c0_90] : memref<10x128x32xf32, #tpu.memory_space<vmem>>, vector<1x128x32xf32>
    %212 = vector.shape_cast %211 : vector<1x128x32xf32> to vector<128x32xf32>
    %cst_91 = arith.constant dense<0.000000e+00> : vector<16x32xf32>
    %213 = tpu.matmul %204, %212, %cst_91 {dimension_numbers = #tpu.dot_dimension_numbers<[1], [0], [0], [1], [0, 0, 1, 1], [], []>} : vector<16x128xf32>, vector<128x32xf32>, vector<16x32xf32> -> vector<16x32xf32>
    %c5_92 = arith.constant 5 : index
    %c0_93 = arith.constant 0 : index
    %c0_94 = arith.constant 0 : index
    %214 = vector.load %arg6[%c5_92, %c0_93, %c0_94] : memref<10x32x256xf32, #tpu.memory_space<vmem>>, vector<1x32x256xf32>
    %215 = vector.shape_cast %214 : vector<1x32x256xf32> to vector<32x256xf32>
    %cst_95 = arith.constant dense<0.000000e+00> : vector<16x256xf32>
    %216 = tpu.matmul %213, %215, %cst_95 {dimension_numbers = #tpu.dot_dimension_numbers<[1], [0], [0], [1], [0, 0, 1, 1], [], []>} : vector<16x32xf32>, vector<32x256xf32>, vector<16x256xf32> -> vector<16x256xf32>
    %217 = vector.extract_strided_slice %216 {offsets = [0, 0], sizes = [16, 128], strides = [1, 1]} : vector<16x256xf32> to vector<16x128xf32>
    %218 = arith.subf %204, %217 : vector<16x128xf32>
    %219 = arith.addf %218, %209 : vector<16x128xf32>
    %220 = vector.extract_strided_slice %216 {offsets = [0, 128], sizes = [16, 128], strides = [1, 1]} : vector<16x256xf32> to vector<16x128xf32>
    %221 = arith.addf %220, %210 : vector<16x128xf32>
    %222 = arith.mulf %219, %219 : vector<16x128xf32>
    %223 = arith.mulf %221, %221 : vector<16x128xf32>
    %224 = arith.addf %222, %223 : vector<16x128xf32>
    %225 = math.sqrt %224 : vector<16x128xf32>
    %226 = vector.broadcast %208 : f32 to vector<16x128xf32>
    %227 = arith.subf %225, %226 : vector<16x128xf32>
    %cst_96 = arith.constant 0.000000e+00 : f32
    %228 = vector.broadcast %cst_96 : f32 to vector<16x128xf32>
    %229 = arith.cmpf oge, %227, %228 : vector<16x128xf32>
    %cst_97 = arith.constant 0.00999999977 : f32
    %230 = vector.broadcast %cst_97 : f32 to vector<16x128xf32>
    %231 = arith.mulf %230, %227 : vector<16x128xf32>
    %232 = arith.select %229, %227, %231 : vector<16x128xi1>, vector<16x128xf32>
    %233 = arith.mulf %232, %232 : vector<16x128xf32>
    %cst_98 = arith.constant dense<0.000000e+00> : vector<16xf32>
    %234 = vector.multi_reduction <add>, %233, %cst_98 [1] : vector<16x128xf32> to vector<16xf32>
    %235 = vector.shape_cast %234 : vector<16xf32> to vector<16x1xf32>
    %236 = math.sqrt %235 : vector<16x1xf32>
    %cst_99 = arith.constant 9.99999968E-21 : f32
    %237 = vector.broadcast %cst_99 : f32 to vector<16x1xf32>
    %238 = arith.addf %236, %237 : vector<16x1xf32>
    %cst_100 = arith.constant 1.000000e+00 : f32
    %239 = vector.broadcast %cst_100 : f32 to vector<16x1xf32>
    %240 = arith.divf %239, %238 : vector<16x1xf32>
    %241 = vector.broadcast %240 : vector<16x1xf32> to vector<16x128xf32>
    %242 = arith.mulf %232, %241 : vector<16x128xf32>
    %c5_101 = arith.constant 5 : index
    %c0_102 = arith.constant 0 : index
    %c0_103 = arith.constant 0 : index
    %243 = vector.load %arg8[%c5_101, %c0_102, %c0_103] : memref<10x16x128xf32, #tpu.memory_space<vmem>>, vector<1x16x128xf32>
    %244 = vector.shape_cast %243 : vector<1x16x128xf32> to vector<16x128xf32>
    %245 = vector.shape_cast %242 : vector<16x128xf32> to vector<1x16x128xf32>
    tpu.vector_store %arg8[%c5_101, %c0_102, %c0_103], %245 {strides = array<i32>} : memref<10x16x128xf32, #tpu.memory_space<vmem>>, vector<1x16x128xf32>,
    %c6 = arith.constant 6 : index
    %246 = memref.load %arg1[%c6] : memref<10xf32, #tpu.memory_space<smem>>
    %247 = vector.extract_strided_slice %16 {offsets = [0, 1664], sizes = [16, 128], strides = [1, 1]} : vector<16x2688xf32> to vector<16x128xf32>
    %248 = vector.extract_strided_slice %16 {offsets = [0, 1792], sizes = [16, 128], strides = [1, 1]} : vector<16x2688xf32> to vector<16x128xf32>
    %c6_104 = arith.constant 6 : index
    %c0_105 = arith.constant 0 : index
    %c0_106 = arith.constant 0 : index
    %249 = vector.load %arg5[%c6_104, %c0_105, %c0_106] : memref<10x128x32xf32, #tpu.memory_space<vmem>>, vector<1x128x32xf32>
    %250 = vector.shape_cast %249 : vector<1x128x32xf32> to vector<128x32xf32>
    %cst_107 = arith.constant dense<0.000000e+00> : vector<16x32xf32>
    %251 = tpu.matmul %242, %250, %cst_107 {dimension_numbers = #tpu.dot_dimension_numbers<[1], [0], [0], [1], [0, 0, 1, 1], [], []>} : vector<16x128xf32>, vector<128x32xf32>, vector<16x32xf32> -> vector<16x32xf32>
    %c6_108 = arith.constant 6 : index
    %c0_109 = arith.constant 0 : index
    %c0_110 = arith.constant 0 : index
    %252 = vector.load %arg6[%c6_108, %c0_109, %c0_110] : memref<10x32x256xf32, #tpu.memory_space<vmem>>, vector<1x32x256xf32>
    %253 = vector.shape_cast %252 : vector<1x32x256xf32> to vector<32x256xf32>
    %cst_111 = arith.constant dense<0.000000e+00> : vector<16x256xf32>
    %254 = tpu.matmul %251, %253, %cst_111 {dimension_numbers = #tpu.dot_dimension_numbers<[1], [0], [0], [1], [0, 0, 1, 1], [], []>} : vector<16x32xf32>, vector<32x256xf32>, vector<16x256xf32> -> vector<16x256xf32>
    %255 = vector.extract_strided_slice %254 {offsets = [0, 0], sizes = [16, 128], strides = [1, 1]} : vector<16x256xf32> to vector<16x128xf32>
    %256 = arith.subf %242, %255 : vector<16x128xf32>
    %257 = arith.addf %256, %247 : vector<16x128xf32>
    %258 = vector.extract_strided_slice %254 {offsets = [0, 128], sizes = [16, 128], strides = [1, 1]} : vector<16x256xf32> to vector<16x128xf32>
    %259 = arith.addf %258, %248 : vector<16x128xf32>
    %260 = arith.mulf %257, %257 : vector<16x128xf32>
    %261 = arith.mulf %259, %259 : vector<16x128xf32>
    %262 = arith.addf %260, %261 : vector<16x128xf32>
    %263 = math.sqrt %262 : vector<16x128xf32>
    %264 = vector.broadcast %246 : f32 to vector<16x128xf32>
    %265 = arith.subf %263, %264 : vector<16x128xf32>
    %cst_112 = arith.constant 0.000000e+00 : f32
    %266 = vector.broadcast %cst_112 : f32 to vector<16x128xf32>
    %267 = arith.cmpf oge, %265, %266 : vector<16x128xf32>
    %cst_113 = arith.constant 0.00999999977 : f32
    %268 = vector.broadcast %cst_113 : f32 to vector<16x128xf32>
    %269 = arith.mulf %268, %265 : vector<16x128xf32>
    %270 = arith.select %267, %265, %269 : vector<16x128xi1>, vector<16x128xf32>
    %271 = arith.mulf %270, %270 : vector<16x128xf32>
    %cst_114 = arith.constant dense<0.000000e+00> : vector<16xf32>
    %272 = vector.multi_reduction <add>, %271, %cst_114 [1] : vector<16x128xf32> to vector<16xf32>
    %273 = vector.shape_cast %272 : vector<16xf32> to vector<16x1xf32>
    %274 = math.sqrt %273 : vector<16x1xf32>
    %cst_115 = arith.constant 9.99999968E-21 : f32
    %275 = vector.broadcast %cst_115 : f32 to vector<16x1xf32>
    %276 = arith.addf %274, %275 : vector<16x1xf32>
    %cst_116 = arith.constant 1.000000e+00 : f32
    %277 = vector.broadcast %cst_116 : f32 to vector<16x1xf32>
    %278 = arith.divf %277, %276 : vector<16x1xf32>
    %279 = vector.broadcast %278 : vector<16x1xf32> to vector<16x128xf32>
    %280 = arith.mulf %270, %279 : vector<16x128xf32>
    %c6_117 = arith.constant 6 : index
    %c0_118 = arith.constant 0 : index
    %c0_119 = arith.constant 0 : index
    %281 = vector.load %arg8[%c6_117, %c0_118, %c0_119] : memref<10x16x128xf32, #tpu.memory_space<vmem>>, vector<1x16x128xf32>
    %282 = vector.shape_cast %281 : vector<1x16x128xf32> to vector<16x128xf32>
    %283 = vector.shape_cast %280 : vector<16x128xf32> to vector<1x16x128xf32>
    tpu.vector_store %arg8[%c6_117, %c0_118, %c0_119], %283 {strides = array<i32>} : memref<10x16x128xf32, #tpu.memory_space<vmem>>, vector<1x16x128xf32>,
    %c7 = arith.constant 7 : index
    %284 = memref.load %arg1[%c7] : memref<10xf32, #tpu.memory_space<smem>>
    %285 = vector.extract_strided_slice %16 {offsets = [0, 1920], sizes = [16, 128], strides = [1, 1]} : vector<16x2688xf32> to vector<16x128xf32>
    %286 = vector.extract_strided_slice %16 {offsets = [0, 2048], sizes = [16, 128], strides = [1, 1]} : vector<16x2688xf32> to vector<16x128xf32>
    %c7_120 = arith.constant 7 : index
    %c0_121 = arith.constant 0 : index
    %c0_122 = arith.constant 0 : index
    %287 = vector.load %arg5[%c7_120, %c0_121, %c0_122] : memref<10x128x32xf32, #tpu.memory_space<vmem>>, vector<1x128x32xf32>
    %288 = vector.shape_cast %287 : vector<1x128x32xf32> to vector<128x32xf32>
    %cst_123 = arith.constant dense<0.000000e+00> : vector<16x32xf32>
    %289 = tpu.matmul %280, %288, %cst_123 {dimension_numbers = #tpu.dot_dimension_numbers<[1], [0], [0], [1], [0, 0, 1, 1], [], []>} : vector<16x128xf32>, vector<128x32xf32>, vector<16x32xf32> -> vector<16x32xf32>
    %c7_124 = arith.constant 7 : index
    %c0_125 = arith.constant 0 : index
    %c0_126 = arith.constant 0 : index
    %290 = vector.load %arg6[%c7_124, %c0_125, %c0_126] : memref<10x32x256xf32, #tpu.memory_space<vmem>>, vector<1x32x256xf32>
    %291 = vector.shape_cast %290 : vector<1x32x256xf32> to vector<32x256xf32>
    %cst_127 = arith.constant dense<0.000000e+00> : vector<16x256xf32>
    %292 = tpu.matmul %289, %291, %cst_127 {dimension_numbers = #tpu.dot_dimension_numbers<[1], [0], [0], [1], [0, 0, 1, 1], [], []>} : vector<16x32xf32>, vector<32x256xf32>, vector<16x256xf32> -> vector<16x256xf32>
    %293 = vector.extract_strided_slice %292 {offsets = [0, 0], sizes = [16, 128], strides = [1, 1]} : vector<16x256xf32> to vector<16x128xf32>
    %294 = arith.subf %280, %293 : vector<16x128xf32>
    %295 = arith.addf %294, %285 : vector<16x128xf32>
    %296 = vector.extract_strided_slice %292 {offsets = [0, 128], sizes = [16, 128], strides = [1, 1]} : vector<16x256xf32> to vector<16x128xf32>
    %297 = arith.addf %296, %286 : vector<16x128xf32>
    %298 = arith.mulf %295, %295 : vector<16x128xf32>
    %299 = arith.mulf %297, %297 : vector<16x128xf32>
    %300 = arith.addf %298, %299 : vector<16x128xf32>
    %301 = math.sqrt %300 : vector<16x128xf32>
    %302 = vector.broadcast %284 : f32 to vector<16x128xf32>
    %303 = arith.subf %301, %302 : vector<16x128xf32>
    %cst_128 = arith.constant 0.000000e+00 : f32
    %304 = vector.broadcast %cst_128 : f32 to vector<16x128xf32>
    %305 = arith.cmpf oge, %303, %304 : vector<16x128xf32>
    %cst_129 = arith.constant 0.00999999977 : f32
    %306 = vector.broadcast %cst_129 : f32 to vector<16x128xf32>
    %307 = arith.mulf %306, %303 : vector<16x128xf32>
    %308 = arith.select %305, %303, %307 : vector<16x128xi1>, vector<16x128xf32>
    %309 = arith.mulf %308, %308 : vector<16x128xf32>
    %cst_130 = arith.constant dense<0.000000e+00> : vector<16xf32>
    %310 = vector.multi_reduction <add>, %309, %cst_130 [1] : vector<16x128xf32> to vector<16xf32>
    %311 = vector.shape_cast %310 : vector<16xf32> to vector<16x1xf32>
    %312 = math.sqrt %311 : vector<16x1xf32>
    %cst_131 = arith.constant 9.99999968E-21 : f32
    %313 = vector.broadcast %cst_131 : f32 to vector<16x1xf32>
    %314 = arith.addf %312, %313 : vector<16x1xf32>
    %cst_132 = arith.constant 1.000000e+00 : f32
    %315 = vector.broadcast %cst_132 : f32 to vector<16x1xf32>
    %316 = arith.divf %315, %314 : vector<16x1xf32>
    %317 = vector.broadcast %316 : vector<16x1xf32> to vector<16x128xf32>
    %318 = arith.mulf %308, %317 : vector<16x128xf32>
    %c7_133 = arith.constant 7 : index
    %c0_134 = arith.constant 0 : index
    %c0_135 = arith.constant 0 : index
    %319 = vector.load %arg8[%c7_133, %c0_134, %c0_135] : memref<10x16x128xf32, #tpu.memory_space<vmem>>, vector<1x16x128xf32>
    %320 = vector.shape_cast %319 : vector<1x16x128xf32> to vector<16x128xf32>
    %321 = vector.shape_cast %318 : vector<16x128xf32> to vector<1x16x128xf32>
    tpu.vector_store %arg8[%c7_133, %c0_134, %c0_135], %321 {strides = array<i32>} : memref<10x16x128xf32, #tpu.memory_space<vmem>>, vector<1x16x128xf32>,
    %c8 = arith.constant 8 : index
    %322 = memref.load %arg1[%c8] : memref<10xf32, #tpu.memory_space<smem>>
    %323 = vector.extract_strided_slice %16 {offsets = [0, 2176], sizes = [16, 128], strides = [1, 1]} : vector<16x2688xf32> to vector<16x128xf32>
    %324 = vector.extract_strided_slice %16 {offsets = [0, 2304], sizes = [16, 128], strides = [1, 1]} : vector<16x2688xf32> to vector<16x128xf32>
    %c8_136 = arith.constant 8 : index
    %c0_137 = arith.constant 0 : index
    %c0_138 = arith.constant 0 : index
    %325 = vector.load %arg5[%c8_136, %c0_137, %c0_138] : memref<10x128x32xf32, #tpu.memory_space<vmem>>, vector<1x128x32xf32>
    %326 = vector.shape_cast %325 : vector<1x128x32xf32> to vector<128x32xf32>
    %cst_139 = arith.constant dense<0.000000e+00> : vector<16x32xf32>
    %327 = tpu.matmul %318, %326, %cst_139 {dimension_numbers = #tpu.dot_dimension_numbers<[1], [0], [0], [1], [0, 0, 1, 1], [], []>} : vector<16x128xf32>, vector<128x32xf32>, vector<16x32xf32> -> vector<16x32xf32>
    %c8_140 = arith.constant 8 : index
    %c0_141 = arith.constant 0 : index
    %c0_142 = arith.constant 0 : index
    %328 = vector.load %arg6[%c8_140, %c0_141, %c0_142] : memref<10x32x256xf32, #tpu.memory_space<vmem>>, vector<1x32x256xf32>
    %329 = vector.shape_cast %328 : vector<1x32x256xf32> to vector<32x256xf32>
    %cst_143 = arith.constant dense<0.000000e+00> : vector<16x256xf32>
    %330 = tpu.matmul %327, %329, %cst_143 {dimension_numbers = #tpu.dot_dimension_numbers<[1], [0], [0], [1], [0, 0, 1, 1], [], []>} : vector<16x32xf32>, vector<32x256xf32>, vector<16x256xf32> -> vector<16x256xf32>
    %331 = vector.extract_strided_slice %330 {offsets = [0, 0], sizes = [16, 128], strides = [1, 1]} : vector<16x256xf32> to vector<16x128xf32>
    %332 = arith.subf %318, %331 : vector<16x128xf32>
    %333 = arith.addf %332, %323 : vector<16x128xf32>
    %334 = vector.extract_strided_slice %330 {offsets = [0, 128], sizes = [16, 128], strides = [1, 1]} : vector<16x256xf32> to vector<16x128xf32>
    %335 = arith.addf %334, %324 : vector<16x128xf32>
    %336 = arith.mulf %333, %333 : vector<16x128xf32>
    %337 = arith.mulf %335, %335 : vector<16x128xf32>
    %338 = arith.addf %336, %337 : vector<16x128xf32>
    %339 = math.sqrt %338 : vector<16x128xf32>
    %340 = vector.broadcast %322 : f32 to vector<16x128xf32>
    %341 = arith.subf %339, %340 : vector<16x128xf32>
    %cst_144 = arith.constant 0.000000e+00 : f32
    %342 = vector.broadcast %cst_144 : f32 to vector<16x128xf32>
    %343 = arith.cmpf oge, %341, %342 : vector<16x128xf32>
    %cst_145 = arith.constant 0.00999999977 : f32
    %344 = vector.broadcast %cst_145 : f32 to vector<16x128xf32>
    %345 = arith.mulf %344, %341 : vector<16x128xf32>
    %346 = arith.select %343, %341, %345 : vector<16x128xi1>, vector<16x128xf32>
    %347 = arith.mulf %346, %346 : vector<16x128xf32>
    %cst_146 = arith.constant dense<0.000000e+00> : vector<16xf32>
    %348 = vector.multi_reduction <add>, %347, %cst_146 [1] : vector<16x128xf32> to vector<16xf32>
    %349 = vector.shape_cast %348 : vector<16xf32> to vector<16x1xf32>
    %350 = math.sqrt %349 : vector<16x1xf32>
    %cst_147 = arith.constant 9.99999968E-21 : f32
    %351 = vector.broadcast %cst_147 : f32 to vector<16x1xf32>
    %352 = arith.addf %350, %351 : vector<16x1xf32>
    %cst_148 = arith.constant 1.000000e+00 : f32
    %353 = vector.broadcast %cst_148 : f32 to vector<16x1xf32>
    %354 = arith.divf %353, %352 : vector<16x1xf32>
    %355 = vector.broadcast %354 : vector<16x1xf32> to vector<16x128xf32>
    %356 = arith.mulf %346, %355 : vector<16x128xf32>
    %c8_149 = arith.constant 8 : index
    %c0_150 = arith.constant 0 : index
    %c0_151 = arith.constant 0 : index
    %357 = vector.load %arg8[%c8_149, %c0_150, %c0_151] : memref<10x16x128xf32, #tpu.memory_space<vmem>>, vector<1x16x128xf32>
    %358 = vector.shape_cast %357 : vector<1x16x128xf32> to vector<16x128xf32>
    %359 = vector.shape_cast %356 : vector<16x128xf32> to vector<1x16x128xf32>
    tpu.vector_store %arg8[%c8_149, %c0_150, %c0_151], %359 {strides = array<i32>} : memref<10x16x128xf32, #tpu.memory_space<vmem>>, vector<1x16x128xf32>,
    %c9 = arith.constant 9 : index
    %360 = memref.load %arg1[%c9] : memref<10xf32, #tpu.memory_space<smem>>
    %361 = vector.extract_strided_slice %16 {offsets = [0, 2432], sizes = [16, 128], strides = [1, 1]} : vector<16x2688xf32> to vector<16x128xf32>
    %362 = vector.extract_strided_slice %16 {offsets = [0, 2560], sizes = [16, 128], strides = [1, 1]} : vector<16x2688xf32> to vector<16x128xf32>
    %c9_152 = arith.constant 9 : index
    %c0_153 = arith.constant 0 : index
    %c0_154 = arith.constant 0 : index
    %363 = vector.load %arg5[%c9_152, %c0_153, %c0_154] : memref<10x128x32xf32, #tpu.memory_space<vmem>>, vector<1x128x32xf32>
    %364 = vector.shape_cast %363 : vector<1x128x32xf32> to vector<128x32xf32>
    %cst_155 = arith.constant dense<0.000000e+00> : vector<16x32xf32>
    %365 = tpu.matmul %356, %364, %cst_155 {dimension_numbers = #tpu.dot_dimension_numbers<[1], [0], [0], [1], [0, 0, 1, 1], [], []>} : vector<16x128xf32>, vector<128x32xf32>, vector<16x32xf32> -> vector<16x32xf32>
    %c9_156 = arith.constant 9 : index
    %c0_157 = arith.constant 0 : index
    %c0_158 = arith.constant 0 : index
    %366 = vector.load %arg6[%c9_156, %c0_157, %c0_158] : memref<10x32x256xf32, #tpu.memory_space<vmem>>, vector<1x32x256xf32>
    %367 = vector.shape_cast %366 : vector<1x32x256xf32> to vector<32x256xf32>
    %cst_159 = arith.constant dense<0.000000e+00> : vector<16x256xf32>
    %368 = tpu.matmul %365, %367, %cst_159 {dimension_numbers = #tpu.dot_dimension_numbers<[1], [0], [0], [1], [0, 0, 1, 1], [], []>} : vector<16x32xf32>, vector<32x256xf32>, vector<16x256xf32> -> vector<16x256xf32>
    %369 = vector.extract_strided_slice %368 {offsets = [0, 0], sizes = [16, 128], strides = [1, 1]} : vector<16x256xf32> to vector<16x128xf32>
    %370 = arith.subf %356, %369 : vector<16x128xf32>
    %371 = arith.addf %370, %361 : vector<16x128xf32>
    %372 = vector.extract_strided_slice %368 {offsets = [0, 128], sizes = [16, 128], strides = [1, 1]} : vector<16x256xf32> to vector<16x128xf32>
    %373 = arith.addf %372, %362 : vector<16x128xf32>
    %374 = arith.mulf %371, %371 : vector<16x128xf32>
    %375 = arith.mulf %373, %373 : vector<16x128xf32>
    %376 = arith.addf %374, %375 : vector<16x128xf32>
    %377 = math.sqrt %376 : vector<16x128xf32>
    %378 = vector.broadcast %360 : f32 to vector<16x128xf32>
    %379 = arith.subf %377, %378 : vector<16x128xf32>
    %cst_160 = arith.constant 0.000000e+00 : f32
    %380 = vector.broadcast %cst_160 : f32 to vector<16x128xf32>
    %381 = arith.maximumf %379, %380 : vector<16x128xf32>
    %382 = arith.mulf %381, %381 : vector<16x128xf32>
    %cst_161 = arith.constant dense<0.000000e+00> : vector<16xf32>
    %383 = vector.multi_reduction <add>, %382, %cst_161 [1] : vector<16x128xf32> to vector<16xf32>
    %384 = vector.shape_cast %383 : vector<16xf32> to vector<16x1xf32>
    %385 = math.sqrt %384 : vector<16x1xf32>
    %cst_162 = arith.constant 9.99999968E-21 : f32
    %386 = vector.broadcast %cst_162 : f32 to vector<16x1xf32>
    %387 = arith.addf %385, %386 : vector<16x1xf32>
    %cst_163 = arith.constant 1.000000e+00 : f32
    %388 = vector.broadcast %cst_163 : f32 to vector<16x1xf32>
    %389 = arith.divf %388, %387 : vector<16x1xf32>
    %390 = vector.broadcast %389 : vector<16x1xf32> to vector<16x128xf32>
    %391 = arith.mulf %381, %390 : vector<16x128xf32>
    %c9_164 = arith.constant 9 : index
    %c0_165 = arith.constant 0 : index
    %c0_166 = arith.constant 0 : index
    %392 = vector.load %arg8[%c9_164, %c0_165, %c0_166] : memref<10x16x128xf32, #tpu.memory_space<vmem>>, vector<1x16x128xf32>
    %393 = vector.shape_cast %392 : vector<1x16x128xf32> to vector<16x128xf32>
    %394 = vector.shape_cast %391 : vector<16x128xf32> to vector<1x16x128xf32>
    tpu.vector_store %arg8[%c9_164, %c0_165, %c0_166], %394 {strides = array<i32>} : memref<10x16x128xf32, #tpu.memory_space<vmem>>, vector<1x16x128xf32>,
    %c0_167 = arith.constant 0 : index
    %c0_168 = arith.constant 0 : index
    %395 = vector.load %arg7[%c0_167, %c0_168] : memref<16x128xf32, #tpu.memory_space<vmem>>, vector<16x128xf32>
    tpu.vector_store %arg7[%c0_167, %c0_168], %391 {strides = array<i32>} : memref<16x128xf32, #tpu.memory_space<vmem>>, vector<16x128xf32>,
    return
  }
  func.func @transform_0(%arg0: i32, %arg1: memref<10xf32, #tpu.memory_space<smem>>) -> (i32, i32) {
    %c0_i32 = arith.constant 0 : i32
    %c0_i32_0 = arith.constant 0 : i32
    return %arg0, %c0_i32 : i32, i32
  }
  func.func @transform_1(%arg0: i32, %arg1: memref<10xf32, #tpu.memory_space<smem>>) -> (i32, i32) {
    %c0_i32 = arith.constant 0 : i32
    %c0_i32_0 = arith.constant 0 : i32
    return %arg0, %c0_i32 : i32, i32
  }
  func.func @transform_2(%arg0: i32, %arg1: memref<10xf32, #tpu.memory_space<smem>>) -> (i32, i32) {
    %c0_i32 = arith.constant 0 : i32
    %c0_i32_0 = arith.constant 0 : i32
    %c0_i32_1 = arith.constant 0 : i32
    return %c0_i32, %c0_i32_0 : i32, i32
  }
  func.func @transform_3(%arg0: i32, %arg1: memref<10xf32, #tpu.memory_space<smem>>) -> (i32, i32, i32) {
    %c0_i32 = arith.constant 0 : i32
    %c0_i32_0 = arith.constant 0 : i32
    %c0_i32_1 = arith.constant 0 : i32
    %c0_i32_2 = arith.constant 0 : i32
    return %c0_i32, %c0_i32_0, %c0_i32_1 : i32, i32, i32
  }
  func.func @transform_4(%arg0: i32, %arg1: memref<10xf32, #tpu.memory_space<smem>>) -> (i32, i32, i32) {
    %c0_i32 = arith.constant 0 : i32
    %c0_i32_0 = arith.constant 0 : i32
    %c0_i32_1 = arith.constant 0 : i32
    %c0_i32_2 = arith.constant 0 : i32
    return %c0_i32, %c0_i32_0, %c0_i32_1 : i32, i32, i32
  }
  func.func @transform_5(%arg0: i32, %arg1: memref<10xf32, #tpu.memory_space<smem>>) -> (i32, i32) {
    %c0_i32 = arith.constant 0 : i32
    %c0_i32_0 = arith.constant 0 : i32
    return %arg0, %c0_i32 : i32, i32
  }
  func.func @transform_6(%arg0: i32, %arg1: memref<10xf32, #tpu.memory_space<smem>>) -> (i32, i32, i32) {
    %c0_i32 = arith.constant 0 : i32
    %c0_i32_0 = arith.constant 0 : i32
    %c0_i32_1 = arith.constant 0 : i32
    return %c0_i32, %arg0, %c0_i32_0 : i32, i32, i32
  }
}

</mosaic_0001>

<bundles_post_ra>
// kernel: tpu_custom_call.1
= control target key start
LH: loop header
LB: loop body
LE: loop exit
PB: predicated region body
PF: predicated region fallthrough
CT: control target
= control target key end

     0   :  { %s7077_s0 = inlined_call_operand.vmem [shape: f32[10], index: 0, kind: input, shape index: {}]   ;;  %s7078_s1 = inlined_call_operand.vmem [shape: f32[32,16], index: 1, kind: input, shape index: {}]   ;;  %s7079_s2 = inlined_call_operand.vmem [shape: f32[32,16], index: 2, kind: input, shape index: {}]   ;;  %s7080_s3 = inlined_call_operand.vmem [shape: f32[32,2688], index: 3, kind: input, shape index: {}]   ;;  %s7081_s4 = inlined_call_operand.vmem [shape: f32[10,128,32], index: 4, kind: input, shape index: {}]   ;;  %s7082_s5 = inlined_call_operand.vmem [shape: f32[10,32,256], index: 5, kind: input, shape index: {}]   ;;  %s7083_s6 = inlined_call_operand.hbm [shape: f32[32,128], index: 6, kind: output, shape index: {0}]   ;;  %s7084_s7 = inlined_call_operand.hbm [shape: f32[10,32,128], index: 7, kind: output, shape index: {1}]  }
   0x1   :  { %s13_s26 = sshll.u32 %s7077_s0, 4  ;;  %s14_s26 = int_to_ptr.vmem [resolvable:$true] %s13_s26 }
   0x2   :  { %s5483_s27 = scalar_lea.vmem %s14_s26, 16  ;;  %p5488_p1 = scmp.lt.s32.totalorder %s14_s26, %s14_s26 }
   0x3   :  { %p5484_p0 = scmp.ne.s32.totalorder %s14_s26, %s5483_s27  ;;  %p5489_p2 = scmp.lt.s32.totalorder %s5483_s27, %s5483_s27 }
   0x5   :  { %p5490_p3 = por %p5489_p2, %p5488_p1 }
   0x7   :  { %p5491_p4 = pnand %p5490_p3, %p5484_p0 }
   0x9   :  { %5494 = shalt.err (!%p5491_p4)  }
   0xa   :  { %s5565_s28 = smov [#allocation3]  }
   0xb   :  { %16 = dma.vmem_to_smem %s14_s26, 16, %s5565_s28, [#allocation2] }
   0xc   :  { %5539 = dma.done.wait [#allocation2], 16 }
   0xd   :  { %5540 = vsyncadd [#allocation2], 4294967280 }
   0xe   :  { %18 = sfence }
   0xf   :  { %19 = vsyncpa [#allocation5], 0 }
  0x10   :  { %21 = vsyncpa [#allocation5 + $0x1], 0 }
  0x11   :  { %22 = vsyncpa [#allocation7], 0 }
  0x12   :  { %24 = vsyncpa [#allocation7 + $0x1], 0  ;;  %s5621_s29 = smov 0   ;;  %s5623_s0 = smov 0  }
  0x13   :  { %s5625_s30 = smov 0   ;;  %s5627_s8 = smov 0  }
  0x14 LB: > { %s5642_s9 = sadd.s32 4294967295, %s5563_s8   ;;  %s3954_s10 = sadd.s32 4294967294, %s5563_s8   ;;  %s5563_s8 = sphi %s5627_s8, %s7090_s8   ;;  %s5559_s30 = sphi %s5625_s30, %s7089_s30   ;;  %s5555_s0 = sphi %s5623_s0, %s7088_s0   ;;  %s5551_s29 = sphi %s5621_s29, %s7087_s29  }
  0x15   : > { %s5646_s11 = sadd.s32 1, %s5563_s8   ;;  %s152_s12 = sadd.s32 1, %s5559_s30 }
  0x16   : > { %s149_s13 = ssub.s32 %s5563_s8, %s5646_s11  ;;  %p162_p5 = scmp.ne.s32.totalorder %s5559_s30, %s5555_s0 }
  0x17   : > { %p150_p6 = scmp.eq.s32.totalorder %s149_s13, 0  ;;  %p163_p7 = scmp.eq.s32.totalorder %s5642_s9, 1 }
  0x18   : > { %p168_p8 = scmp.ne.s32.totalorder %s5555_s0, %s5551_s29  ;;  %p169_p9 = scmp.eq.s32.totalorder %s3954_s10, 1 }
  0x19   : > { %s5657_s14 = scalar_select %p150_p6, %s5559_s30, %s152_s12  }
  0x1a   : > { %p5659_p10 = por %p163_p7, %p162_p5  ;;  %p5663_p11 = por %p169_p9, %p168_p8 }
  0x1b   : > { %p3957_p12 = scmp.ge.s32.totalorder %s5563_s8, 1  ;;  %p240_p13 = scmp.lt.s32.totalorder %s5563_s8, 3 }
  0x1d   : > { %p241_p0 = pnand %p3957_p12, %p240_p13 }
  0x1e   : > { %s3959_s17 = sshll.u32 (!%p241_p0), %s5642_s9, 1  ;;  %vm318_vm3 = vcmask (!%p241_p0), 130048   ;;  %v344_v22 = vld [vmem:[%s7080_s3 + $0x8] sm:$0xff] (!%p241_p0)  ;;  %v365_v23 = vld [vmem:[%s7080_s3 + $0xb0] sm:$0xff] (!%p241_p0)  ;;  %v346_v24 = vld [vmem:[%s7080_s3 + $0x18] sm:$0xff] (!%p241_p0)  ;;  %v5566_v52 = vmov (!%p241_p0), 0.0  }
  0x1f   : > { %244 = sbr.rel (%p241_p0) target bundleno = 6884 (0x1ae4), region = 40  ;;  %p281_p1 = scmp.lt.s32.totalorder (!%p241_p0), %s3959_s17, 3  ;;  %v4804_v25 = vpack.c.bf16 (!%p241_p0), %v365_v23, %v344_v22  ;;  %v367_v26 = vld [vmem:[%s7080_s3 + $0xc0] sm:$0xff] (!%p241_p0)  ;;  %v364_v28 = vld [vmem:[%s7080_s3 + $0xa8] sm:$0xff] (!%p241_p0)  ;;  %v345_v31 = vld [vmem:[%s7080_s3 + $0x10] sm:$0xff] (!%p241_p0)  ;;  %498 = vmatprep.mubr.f32.mxu0 (!%p241_p0), %v5566_v52  ;;  %575 = vmatprep.mubr.f32.mxu1 (!%p241_p0), %v5566_v52  ;;  %vm427_vm5 = vcmask (!%p241_p0), 261120  }
  0x20   : > { %v343_v27 = vld [vmem:[%s7080_s3] sm:$0xff] (!%p241_p0)  ;;  %v4812_v29 = vpack.c.bf16 (!%p241_p0), %v367_v26, %v346_v24  ;;  %v366_v32 = vld [vmem:[%s7080_s3 + $0xb8] sm:$0xff] (!%p241_p0)  ;;  %v388_v36 = vld [vmem:[%s7080_s3 + $0x168] sm:$0xff] (!%p241_p0)  ;;  %s5567_s20 = smov (!%p241_p0), 16   ;;  %s3987_s25 = sld [smem:[#allocation3 + $0x1]] (!%p241_p0) }
  0x21   : > { %v4806_v30 = vpack.c.bf16 (!%p241_p0), %v364_v28, %v343_v27  ;;  %v386_v33 = vld [vmem:[%s7080_s3 + $0x158] sm:$0xff] (!%p241_p0)  ;;  %4805 = vmatprep.subr.bf16.mxu0 (!%p241_p0), %v4804_v25  ;;  %v4814_v34 = vpack.c.bf16 (!%p241_p0), %v366_v32, %v345_v31  ;;  %v407_v35 = vld [vmem:[%s7080_s3 + $0x200] sm:$0xff] (!%p241_p0)  ;;  %v409_v37 = vld [vmem:[%s7080_s3 + $0x210] sm:$0xff] (!%p241_p0)  ;;  %s4074_s10 = sld [smem:[#allocation3 + $0x4]] (!%p241_p0)  ;;  %s4103_s26 = sld [smem:[#allocation3 + $0x5]] (!%p241_p0) }
  0x22   : > { %4813 = vmatprep.subr.bf16.mxu1 (!%p241_p0), %v4812_v29  ;;  %v4808_v38 = vpack.c.bf16 (!%p241_p0), %v407_v35, %v386_v33  ;;  %v4816_v39 = vpack.c.bf16 (!%p241_p0), %v409_v37, %v388_v36  ;;  %v385_v40 = vld [vmem:[%s7080_s3 + $0x150] sm:$0xff] (!%p241_p0)  ;;  %v406_v41 = vld [vmem:[%s7080_s3 + $0x1f8] sm:$0xff] (!%p241_p0)  ;;  %v387_v42 = vld [vmem:[%s7080_s3 + $0x160] sm:$0xff] (!%p241_p0)  ;;  %s4132_s22 = sld [smem:[#allocation3 + $0x6]] (!%p241_p0)  ;;  %s4190_s12 = sld [smem:[#allocation3 + $0x8]] (!%p241_p0) }
  0x23   : > { %4807 = vmatpush1.bf16.msra.mxu0 (!%p241_p0), %v4806_v30  ;;  %4815 = vmatpush1.bf16.msra.mxu1 (!%p241_p0), %v4814_v34  ;;  %v4810_v43 = vpack.c.bf16 (!%p241_p0), %v406_v41, %v385_v40  ;;  %v408_v44 = vld [vmem:[%s7080_s3 + $0x208] sm:$0xff] (!%p241_p0)  ;;  %v369_v47 = vld [vmem:[%s7080_s3 + $0xd0] sm:$0xff] (!%p241_p0)  ;;  %v350_v48 = vld [vmem:[%s7080_s3 + $0x38] sm:$0xff] (!%p241_p0)  ;;  %s4219_s27 = sld [smem:[#allocation3 + $0x9]] (!%p241_p0) }
  0x24   : > { %4809 = vmatprep.subr.bf16.mxu0 (!%p241_p0), %v4808_v38  ;;  %4817 = vmatprep.subr.bf16.mxu1 (!%p241_p0), %v4816_v39  ;;  %v4818_v45 = vpack.c.bf16 (!%p241_p0), %v408_v44, %v387_v42  ;;  %v348_v46 = vld [vmem:[%s7080_s3 + $0x28] sm:$0xff] (!%p241_p0)  ;;  %v371_v51 = vld [vmem:[%s7080_s3 + $0xe0] sm:$0xff] (!%p241_p0)  ;;  %v349_v61 = vld [vmem:[%s7080_s3 + $0x30] sm:$0xff] (!%p241_p0) }
  0x25   : > { %v4820_v50 = vpack.c.bf16 (!%p241_p0), %v369_v47, %v348_v46  ;;  %v4828_v53 = vpack.c.bf16 (!%p241_p0), %v371_v51, %v350_v48  ;;  %v347_v59 = vld [vmem:[%s7080_s3 + $0x20] sm:$0xff] (!%p241_p0)  ;;  %v368_v60 = vld [vmem:[%s7080_s3 + $0xc8] sm:$0xff] (!%p241_p0)  ;;  %v370_v62 = vld [vmem:[%s7080_s3 + $0xd8] sm:$0xff] (!%p241_p0) }
  0x26   : > { %s7092_s17 = smov (!%p281_p1, %s3959_s17), 3  ;;  %v390_v63 = vld [vmem:[%s7080_s3 + $0x178] sm:$0xff]  ;;  %v351_v22 = vld [vmem:[%s7080_s3 + $0x40] sm:$0xff]  ;;  %v372_v24 = vld [vmem:[%s7080_s3 + $0xe8] sm:$0xff] }
  0x27   : > { %s3960_s18 = sshll.u32 %s7092_s17, 3  ;;  %4811 = vmatpush1.bf16.msra.mxu0 %v4810_v43  ;;  %4819 = vmatpush1.bf16.msra.mxu1 %v4818_v45  ;;  %v353_v25 = vld [vmem:[%s7080_s3 + $0x50] sm:$0xff]  ;;  %v394_v29 = vld [vmem:[%s7080_s3 + $0x198] sm:$0xff]  ;;  %v415_v30 = vld [vmem:[%s7080_s3 + $0x240] sm:$0xff]  ;;  %v4838_v33 = vpack.c.bf16 %v372_v24, %v351_v22  ;;  %s1279_s17 = sld [smem:[#allocation3]] }
  0x28   : > { %s284_s21 = scalar_lea.vmem %s7078_s1, %s3960_s18  ;;  %s290_s24 = scalar_lea.vmem %s7079_s2, %s3960_s18  ;;  %4821 = vmatprep.subr.bf16.mxu0 %v4820_v50  ;;  %4829 = vmatprep.subr.bf16.mxu1 %v4828_v53  ;;  %v396_v31 = vld [vmem:[%s7080_s3 + $0x1a8] sm:$0xff]  ;;  %v417_v32 = vld [vmem:[%s7080_s3 + $0x250] sm:$0xff]  ;;  %v414_v36 = vld [vmem:[%s7080_s3 + $0x238] sm:$0xff]  ;;  %v4840_v39 = vpack.c.bf16 %v415_v30, %v394_v29 }
  0x29   : > { %v5676_v0 = vld [vmem:[%s284_s21] sm:$0xff]  ;;  %v5680_v2 = vld [vmem:[%s284_s21 + $0x8] sm:$0xff]  ;;  %v393_v35 = vld [vmem:[%s7080_s3 + $0x190] sm:$0xff]  ;;  %v4848_v40 = vpack.c.bf16 %v417_v32, %v396_v31  ;;  %s4016_s21 = sld [smem:[#allocation3 + $0x2]]  ;;  %s4161_s18 = sld [smem:[#allocation3 + $0x7]] }
  0x2a   : > { %v5678_v1 = vld [vmem:[%s290_s24] sm:$0xff]  ;;  %v298_v3 = vmul.f32 %v5676_v0, %v5676_v0  ;;  %v5686_v5 = vld [vmem:[%s290_s24 + $0x8] sm:$0xff]  ;;  %v299_v6 = vmul.f32 %v5680_v2, %v5680_v2  ;;  %v377_v42 = vld [vmem:[%s7080_s3 + $0x110] sm:$0xff]  ;;  %v4842_v45 = vpack.c.bf16 %v414_v36, %v393_v35 }
  0x2b   : > { %v300_v4 = vmul.f32 %v5678_v1, %v5678_v1  ;;  %v301_v7 = vmul.f32 %v5686_v5, %v5686_v5  ;;  %v395_v37 = vld [vmem:[%s7080_s3 + $0x1a0] sm:$0xff]  ;;  %v416_v38 = vld [vmem:[%s7080_s3 + $0x248] sm:$0xff]  ;;  %v358_v43 = vld [vmem:[%s7080_s3 + $0x78] sm:$0xff] }
  0x2c   : > { %v356_v41 = vld [vmem:[%s7080_s3 + $0x68] sm:$0xff]  ;;  %v379_v44 = vld [vmem:[%s7080_s3 + $0x120] sm:$0xff]  ;;  %v4850_v46 = vpack.c.bf16 %v416_v38, %v395_v37  ;;  %v378_v50 = vld [vmem:[%s7080_s3 + $0x118] sm:$0xff] }
  0x2d   : > { %v302_v8 = vadd.f32 %v300_v4, %v298_v3  ;;  %v303_v9 = vadd.f32 %v301_v7, %v299_v6  ;;  %v392_v3 = vld [vmem:[%s7080_s3 + $0x188] sm:$0xff]  ;;  %v413_v4 = vld [vmem:[%s7080_s3 + $0x230] sm:$0xff]  ;;  %v4822_v6 = vpack.c.bf16 %v368_v60, %v347_v59  ;;  %v4830_v7 = vpack.c.bf16 %v370_v62, %v349_v61  ;;  %v355_v47 = vld [vmem:[%s7080_s3 + $0x60] sm:$0xff] }
  0x2e   : > { %v376_v48 = vld [vmem:[%s7080_s3 + $0x108] sm:$0xff]  ;;  %v4852_v51 = vpack.c.bf16 %v377_v42, %v356_v41  ;;  %v4860_v53 = vpack.c.bf16 %v379_v44, %v358_v43  ;;  %v397_v60 = vld [vmem:[%s7080_s3 + $0x1b0] sm:$0xff]  ;;  %v418_v61 = vld [vmem:[%s7080_s3 + $0x258] sm:$0xff] }
  0x2f   : > { %5355 = vrsqrt.f32 %v302_v8  ;;  %vm306_vm0 = vcmp.eq.f32.partialorder %v302_v8, inf  ;;  %v309_v11 = vand.u32 2147483648, %v302_v8  ;;  %vm308_vm1 = vcmp.eq.f32.partialorder %v302_v8, 0.0  ;;  %v399_v62 = vld [vmem:[%s7080_s3 + $0x1c0] sm:$0xff]  ;;  %v401_v22 = vld [vmem:[%s7080_s3 + $0x1d0] sm:$0xff]  ;;  %v384_v29 = vld [vmem:[%s7080_s3 + $0x148] sm:$0xff] }
  0x30   : > { %5357 = vrsqrt.f32 %v303_v9  ;;  %vm313_vm2 = vcmp.eq.f32.partialorder %v303_v9, inf  ;;  %v316_v14 = vand.u32 2147483648, %v303_v9  ;;  %vm315_vm4 = vcmp.eq.f32.partialorder %v303_v9, 0.0  ;;  %v403_v24 = vld [vmem:[%s7080_s3 + $0x1e0] sm:$0xff]  ;;  %v1281_v31 = vld [vmem:[%s7081_s4 + $0x8] sm:$0xff]  ;;  %v405_v35 = vld [vmem:[%s7080_s3 + $0x1f0] sm:$0xff] }
  0x31   : > { %v1280_v30 = vld [vmem:[%s7081_s4] sm:$0xff]  ;;  %v426_v36 = vld [vmem:[%s7080_s3 + $0x298] sm:$0xff]  ;;  %v1285_v42 = vld [vmem:[%s7081_s4 + $0x28] sm:$0xff] }
  0x32   : > { %v4892_v37 = vpack.c.bf16 %v1281_v31, %v1280_v30  ;;  %v4888_v38 = vpack.c.bf16 %v426_v36, %v405_v35  ;;  %v1284_v41 = vld [vmem:[%s7081_s4 + $0x20] sm:$0xff] }
  0x33   : > { %v4900_v44 = vpack.c.bf16 %v1285_v42, %v1284_v41 }
  0x39   : > { %v5356_v10 = vpop.eup %5355 }
  0x3a   : > { %v5358_v12 = vpop.eup %5357  ;;  %v305_v13 = vmul.f32 %v5356_v10, %v302_v8  ;;  %v410_v10 = vld [vmem:[%s7080_s3 + $0x218] sm:$0xff] }
  0x3b   : > { %v312_v15 = vmul.f32 %v5358_v12, %v303_v9 }
  0x3c   : > { %v307_v16 = vsel %vm306_vm0, %v302_v8, %v305_v13  ;;  %v389_v8 = vld [vmem:[%s7080_s3 + $0x170] sm:$0xff] }
  0x3d   : > { %v310_v17 = vsel %vm308_vm1, %v309_v11, %v307_v16  ;;  %v314_v18 = vsel %vm313_vm2, %v303_v9, %v312_v15  ;;  %v391_v11 = vld [vmem:[%s7080_s3 + $0x180] sm:$0xff]  ;;  %v352_v15 = vld [vmem:[%s7080_s3 + $0x48] sm:$0xff]  ;;  %v373_v16 = vld [vmem:[%s7080_s3 + $0xf0] sm:$0xff] }
  0x3e   : > { %v319_v19 = vsel %vm318_vm3, %v310_v17, -inf  ;;  %v317_v20 = vsel %vm315_vm4, %v316_v14, %v314_v18  ;;  %v4832_v14 = vpack.c.bf16 %v413_v4, %v392_v3  ;;  %v354_v17 = vld [vmem:[%s7080_s3 + $0x58] sm:$0xff]  ;;  %v375_v18 = vld [vmem:[%s7080_s3 + $0x100] sm:$0xff]  ;;  %v4836_v27 = vpack.c.bf16 %v373_v16, %v352_v15  ;;  %v360_v4 = vld [vmem:[%s7080_s3 + $0x88] sm:$0xff] }
  0x3f   : > { %320 = vmax.xlane.f32.xlu0 %v319_v19  ;;  %v322_v21 = vsel %vm318_vm3, %v317_v20, -inf  ;;  %v4826_v20 = vpack.c.bf16 %v410_v10, %v389_v8  ;;  %v4844_v28 = vpack.c.bf16 %v375_v18, %v354_v17  ;;  %v4858_v8 = vpack.c.bf16 %v418_v61, %v397_v60  ;;  %v359_v10 = vld [vmem:[%s7080_s3 + $0x80] sm:$0xff]  ;;  %v402_v16 = vld [vmem:[%s7080_s3 + $0x1d8] sm:$0xff]  ;;  %v404_v18 = vld [vmem:[%s7080_s3 + $0x1e8] sm:$0xff] }
  0x40   : > { %v423_v17 = vld [vmem:[%s7080_s3 + $0x280] sm:$0xff]  ;;  %v1374_v60 = vld [vmem:[%s7082_s5 + $0x18] sm:$0xff] }
  0x41   : > { %v1371_v61 = vld [vmem:[%s7082_s5] sm:$0xff] }
  0x43   : > { %323 = vmax.xlane.f32.xlu0 %v322_v21 }
  0xcc   : > { %v321_v49 = vpop.xlane.xlu0 %320 }
  0xcd   : > { %5359 = vrcp.f32 %v321_v49  ;;  %v357_v49 = vld [vmem:[%s7080_s3 + $0x70] sm:$0xff] }
  0xce   : > { %v4862_v59 = vpack.c.bf16 %v378_v50, %v357_v49  ;;  %v1290_v50 = vld [vmem:[%s7081_s4 + $0x50] sm:$0xff] }
  0xd0   : > { %v324_v54 = vpop.xlane.xlu0 %323 }
  0xd1   : > { %5361 = vrcp.f32 %v324_v54  ;;  %v398_v54 = vld [vmem:[%s7080_s3 + $0x1b8] sm:$0xff] }
  0xd7   : > { %v5360_v55 = vpop.eup %5359 }
  0xd8   : > { %v331_v56 = vmul.f32 %v5360_v55, %v5678_v1  ;;  %v411_v1 = vld [vmem:[%s7080_s3 + $0x220] sm:$0xff] }
  0xd9   : > { %v4824_v13 = vpack.c.bf16 %v411_v1, %v390_v63  ;;  %v420_v63 = vld [vmem:[%s7080_s3 + $0x268] sm:$0xff] }
  0xda   : > { %335 = vrot.lane.b32.xlu1 %v331_v56, %s5567_s20  ;;  %v400_v56 = vld [vmem:[%s7080_s3 + $0x1c8] sm:$0xff] }
  0xdb   : > { %v5362_v57 = vpop.eup %5361 }
  0xdc   : > { %v332_v58 = vmul.f32 %v5362_v57, %v5686_v5  ;;  %v329_v5 = vmul.f32 %v5360_v55, %v5676_v0  ;;  %v412_v0 = vld [vmem:[%s7080_s3 + $0x228] sm:$0xff]  ;;  %v330_v19 = vmul.f32 %v5362_v57, %v5680_v2  ;;  %v374_v2 = vld [vmem:[%s7080_s3 + $0xf8] sm:$0xff]  ;;  %v419_v55 = vld [vmem:[%s7080_s3 + $0x260] sm:$0xff] }
  0xdd   : > { %v4834_v21 = vpack.c.bf16 %v412_v0, %v391_v11  ;;  %v4846_v34 = vpack.c.bf16 %v374_v2, %v353_v25  ;;  %v421_v57 = vld [vmem:[%s7080_s3 + $0x270] sm:$0xff]  ;;  %v4856_v1 = vpack.c.bf16 %v419_v55, %v398_v54  ;;  %v380_v11 = vld [vmem:[%s7080_s3 + $0x128] sm:$0xff]  ;;  %v4872_v2 = vpack.c.bf16 %v423_v17, %v402_v16 }
  0xde   : > { %337 = vrot.lane.b32.xlu1 %v332_v58, %s5567_s20  ;;  %v4854_v58 = vpack.c.bf16 %v376_v48, %v355_v47  ;;  %v4864_v3 = vpack.c.bf16 %v421_v57, %v400_v56  ;;  %v361_v0 = vld [vmem:[%s7080_s3 + $0x90] sm:$0xff]  ;;  %v424_v25 = vld [vmem:[%s7080_s3 + $0x288] sm:$0xff]  ;;  %v1288_v48 = vld [vmem:[%s7081_s4 + $0x40] sm:$0xff]  ;;  %s6226_s20 = sand.u32 1, %s5555_s0  }
  0xdf   : > { %v1293_v54 = vld [vmem:[%s7081_s4 + $0x68] sm:$0xff]  ;;  %v1294_v56 = vld [vmem:[%s7081_s4 + $0x70] sm:$0xff]  ;;  %v1295_v57 = vld [vmem:[%s7081_s4 + $0x78] sm:$0xff]  ;;  %s5292_s23 = smul.u32 160, %s6226_s20  ;;  %s3958_s28 = sshll.u32 %s6226_s20, 4 }
  0xe1   : > { %s6254_s24 = scalar_lea.vmem [#allocation6], %s5292_s23  ;;  %s5568_s23 = smov [#allocation4]  }
 0x14c   : > { %v336_v9 = vpop.permute.xlu1 %335 }
 0x14d   : > { %v5796_v12 = vsel %vm318_vm3, %v329_v5, %v336_v9  ;;  %v381_v5 = vld [vmem:[%s7080_s3 + $0x130] sm:$0xff]  ;;  %v4866_v9 = vpack.c.bf16 %v420_v63, %v399_v62 }
 0x14e   : > { %3963 = vmatmul.mubr.msk.f32.vlgmr.msra.gmra.mrb[0].mxu0 %vm427_vm5, %v5796_v12  ;;  %3965 = vmatmul.mubr.msk.f32.vlgmr.msra.gmra.mrb[0].mxu1 %vm427_vm5, %v5796_v12  ;;  %v1373_v63 = vld [vmem:[%s7082_s5 + $0x10] sm:$0xff] }
 0x14f   : > { %4823 = vmatpush1.bf16.msra.mxu0 %v4822_v6  ;;  %4831 = vmatpush1.bf16.msra.mxu1 %v4830_v7  ;;  %v362_v6 = vld [vmem:[%s7080_s3 + $0x98] sm:$0xff]  ;;  %v383_v7 = vld [vmem:[%s7080_s3 + $0x140] sm:$0xff] }
 0x150   : > { %v338_v23 = vpop.permute.xlu1 %337  ;;  %504 = vmatprep.mubr.f32.mxu0 %v5566_v52  ;;  %581 = vmatprep.mubr.f32.mxu1 %v5566_v52  ;;  %v4876_v15 = vpack.c.bf16 %v383_v7, %v362_v6  ;;  %v1375_v6 = vld [vmem:[%s7082_s5 + $0x20] sm:$0xff]  ;;  %v1377_v7 = vld [vmem:[%s7082_s5 + $0x30] sm:$0xff] }
 0x151   : > { %v5830_v26 = vsel %vm318_vm3, %v330_v19, %v338_v23  ;;  %4825 = vmatprep.subr.bf16.mxu0 %v4824_v13  ;;  %4833 = vmatprep.subr.bf16.mxu1 %v4832_v14  ;;  %v382_v13 = vld [vmem:[%s7080_s3 + $0x138] sm:$0xff]  ;;  %v4868_v14 = vpack.c.bf16 %v381_v5, %v360_v4  ;;  %v425_v19 = vld [vmem:[%s7080_s3 + $0x290] sm:$0xff]  ;;  %v4926_v4 = vpack.c.bf16 %v1373_v63, %v1371_v61 }
 0x152   : > { %3964 = vmatmul.mubr.msk.f32.gmra.mrb[2].mxu0 %vm427_vm5, %v5830_v26  ;;  %3966 = vmatmul.mubr.msk.f32.gmra.mrb[2].mxu1 %vm427_vm5, %v5830_v26  ;;  %v422_v23 = vld [vmem:[%s7080_s3 + $0x278] sm:$0xff] }
 0x153   : > { %4827 = vmatpush1.bf16.msra.mxu0 %v4826_v20  ;;  %4835 = vmatpush1.bf16.msra.mxu1 %v4834_v21  ;;  %v4870_v20 = vpack.c.bf16 %v380_v11, %v359_v10  ;;  %v4878_v21 = vpack.c.bf16 %v382_v13, %v361_v0  ;;  %v4874_v32 = vpack.c.bf16 %v422_v23, %v401_v22 }
 0x154   : > { %652 = vmatprep.mubr.f32.mxu0 %v5566_v52  ;;  %729 = vmatprep.mubr.f32.mxu1 %v5566_v52 }
 0x155   : > { %4837 = vmatprep.subr.bf16.mxu0 %v4836_v27  ;;  %4845 = vmatprep.subr.bf16.mxu1 %v4844_v28  ;;  %v4880_v27 = vpack.c.bf16 %v425_v19, %v404_v18  ;;  %v363_v28 = vld [vmem:[%s7080_s3 + $0xa0] sm:$0xff] }
 0x156   : > { %3967 = vmatmul.mubr.msk.f32.vlgmr.msra.gmra.mrb[4].mxu0 %vm427_vm5, %v5796_v12  ;;  %3969 = vmatmul.mubr.msk.f32.vlgmr.msra.gmra.mrb[4].mxu1 %vm427_vm5, %v5796_v12 }
 0x157   : > { %4839 = vmatpush1.bf16.msra.mxu0 %v4838_v33  ;;  %4847 = vmatpush1.bf16.msra.mxu1 %v4846_v34  ;;  %v4882_v33 = vpack.c.bf16 %v424_v25, %v403_v24  ;;  %v4884_v34 = vpack.c.bf16 %v384_v29, %v363_v28 }
 0x158   : > { %658 = vmatprep.mubr.f32.mxu0 %v5566_v52  ;;  %735 = vmatprep.mubr.f32.mxu1 %v5566_v52 }
 0x159   : > { %4841 = vmatprep.subr.bf16.mxu0 %v4840_v39  ;;  %4849 = vmatprep.subr.bf16.mxu1 %v4848_v40  ;;  %v1282_v39 = vld [vmem:[%s7081_s4 + $0x10] sm:$0xff]  ;;  %v1283_v40 = vld [vmem:[%s7081_s4 + $0x18] sm:$0xff] }
 0x15a   : > { %3968 = vmatmul.mubr.msk.f32.gmra.mrb[6].mxu0 %vm427_vm5, %v5830_v26  ;;  %3970 = vmatmul.mubr.msk.f32.gmra.mrb[6].mxu1 %vm427_vm5, %v5830_v26  ;;  %v4896_v43 = vpack.c.bf16 %v1283_v40, %v1282_v39 }
 0x15b   : > { %4843 = vmatpush1.bf16.msra.mxu0 %v4842_v45  ;;  %4851 = vmatpush1.bf16.msra.mxu1 %v4850_v46  ;;  %v1286_v45 = vld [vmem:[%s7081_s4 + $0x30] sm:$0xff]  ;;  %v1287_v46 = vld [vmem:[%s7081_s4 + $0x38] sm:$0xff] }
 0x15c   : > { %806 = vmatprep.mubr.f32.mxu0 %v5566_v52  ;;  %883 = vmatprep.mubr.f32.mxu1 %v5566_v52  ;;  %v4904_v47 = vpack.c.bf16 %v1287_v46, %v1286_v45 }
 0x15d   : > { %4853 = vmatprep.subr.bf16.mxu0 %v4852_v51  ;;  %4861 = vmatprep.subr.bf16.mxu1 %v4860_v53  ;;  %v1292_v53 = vld [vmem:[%s7081_s4 + $0x60] sm:$0xff] }
 0x15e   : > { %3971 = vmatmul.mubr.msk.f32.vlgmr.msra.gmra.mrb[8].mxu0 %vm427_vm5, %v5796_v12  ;;  %3973 = vmatmul.mubr.msk.f32.vlgmr.msra.gmra.mrb[8].mxu1 %vm427_vm5, %v5796_v12  ;;  %v4916_v55 = vpack.c.bf16 %v1293_v54, %v1292_v53 }
 0x15f   : > { %4855 = vmatpush1.bf16.msra.mxu0 %v4854_v58  ;;  %4863 = vmatpush1.bf16.msra.mxu1 %v4862_v59  ;;  %v4920_v58 = vpack.c.bf16 %v1295_v57, %v1294_v56  ;;  %v1372_v59 = vld [vmem:[%s7082_s5 + $0x8] sm:$0xff] }
 0x160   : > { %812 = vmatprep.mubr.f32.mxu0 %v5566_v52  ;;  %889 = vmatprep.mubr.f32.mxu1 %v5566_v52  ;;  %v4924_v62 = vpack.c.bf16 %v1374_v60, %v1372_v59 }
 0x161   : > { %4857 = vmatprep.subr.bf16.mxu0 %v4856_v1  ;;  %4865 = vmatprep.subr.bf16.mxu1 %v4864_v3  ;;  %v1376_v1 = vld [vmem:[%s7082_s5 + $0x28] sm:$0xff]  ;;  %v1378_v3 = vld [vmem:[%s7082_s5 + $0x38] sm:$0xff] }
 0x162   : > { %3972 = vmatmul.mubr.msk.f32.gmra.mrb[10].mxu0 %vm427_vm5, %v5830_v26  ;;  %3974 = vmatmul.mubr.msk.f32.gmra.mrb[10].mxu1 %vm427_vm5, %v5830_v26  ;;  %v4928_v5 = vpack.c.bf16 %v1378_v3, %v1376_v1 }
 0x163   : > { %4859 = vmatpush1.bf16.msra.mxu0 %v4858_v8  ;;  %4867 = vmatpush1.bf16.msra.mxu1 %v4866_v9  ;;  %v4930_v8 = vpack.c.bf16 %v1377_v7, %v1375_v6 }
 0x164   : > { %960 = vmatprep.mubr.f32.mxu0 %v5566_v52  ;;  %1037 = vmatprep.mubr.f32.mxu1 %v5566_v52 }
 0x165   : > { %4869 = vmatprep.subr.bf16.mxu0 %v4868_v14  ;;  %4877 = vmatprep.subr.bf16.mxu1 %v4876_v15 }
 0x166   : > { %3975 = vmatmul.mubr.msk.f32.vlgmr.msra.gmra.mrb[12].mxu0 %vm427_vm5, %v5796_v12  ;;  %3977 = vmatmul.mubr.msk.f32.vlgmr.msra.gmra.mrb[12].mxu1 %vm427_vm5, %v5796_v12 }
 0x167   : > { %4871 = vmatpush1.bf16.msra.mxu0 %v4870_v20  ;;  %4879 = vmatpush1.bf16.msra.mxu1 %v4878_v21 }
 0x168   : > { %966 = vmatprep.mubr.f32.mxu0 %v5566_v52  ;;  %1043 = vmatprep.mubr.f32.mxu1 %v5566_v52 }
 0x169   : > { %4873 = vmatprep.subr.bf16.mxu0 %v4872_v2  ;;  %4881 = vmatprep.subr.bf16.mxu1 %v4880_v27 }
 0x16a   : > { %3976 = vmatmul.mubr.msk.f32.gmra.mrb[14].mxu0 %vm427_vm5, %v5830_v26  ;;  %3978 = vmatmul.mubr.msk.f32.gmra.mrb[14].mxu1 %vm427_vm5, %v5830_v26 }
 0x16b   : > { %4875 = vmatpush1.bf16.msra.mxu0 %v4874_v32  ;;  %4883 = vmatpush1.bf16.msra.mxu1 %v4882_v33 }
 0x16c   : > { %1114 = vmatprep.mubr.f32.mxu0 %v5566_v52  ;;  %1191 = vmatprep.mubr.f32.mxu1 %v5566_v52 }
 0x16d   : > { %4885 = vmatprep.subr.bf16.mxu0 %v4884_v34  ;;  %4893 = vmatprep.subr.bf16.mxu1 %v4892_v37 }
 0x16e   : > { %3979 = vmatmul.mubr.msk.f32.vlgmr.msra.gmra.mrb[16].mxu0 %vm427_vm5, %v5796_v12  ;;  %3981 = vmatmul.mubr.msk.f32.vlgmr.msra.gmra.mrb[16].mxu1 %vm427_vm5, %v5796_v12 }
 0x16f   : > { %4887 = vmatpush3.bf16.msra.mxu0 %v4884_v34  ;;  %1120 = vmatprep.mubr.f32.mxu0 %v5566_v52 }
 0x170   : > { %1197 = vmatprep.mubr.f32.mxu1 %v5566_v52  ;;  %4889 = vmatprep.subr.bf16.mxu0 %v4888_v38 }
 0x171   : > { %4895 = vmatpush3.bf16.msra.mxu1 %v4892_v37 }
 0x172   : > { %3980 = vmatmul.mubr.msk.f32.gmra.mrb[18].mxu0 %vm427_vm5, %v5830_v26  ;;  %3982 = vmatmul.mubr.msk.f32.gmra.mrb[18].mxu1 %vm427_vm5, %v5830_v26 }
 0x173   : > { %4891 = vmatpush3.bf16.msra.mxu0 %v4888_v38  ;;  %4451 = vmatprep.mubr.msk.f32.mxu0 %vm427_vm5, %v5796_v12  ;;  %v1289_v12 = vld [vmem:[%s7081_s4 + $0x48] sm:$0xff] }
 0x174   : > { %4897 = vmatprep.subr.bf16.mxu1 %v4896_v43  ;;  %v4908_v49 = vpack.c.bf16 %v1289_v12, %v1288_v48  ;;  %4925 = vmatprep.subr.bf16.mxu0 %v4924_v62 }
 0x175   : > { %4899 = vmatpush3.bf16.msra.mxu1 %v4896_v43 }
 0x176   : > { %4452 = vmatmul.mubr.msk.f32.vlgmr.msra.gmra.mrb[20].mxu0 %vm427_vm5, %v5830_v26  ;;  %4901 = vmatprep.subr.bf16.mxu1 %v4900_v44  ;;  %v1291_v26 = vld [vmem:[%s7081_s4 + $0x58] sm:$0xff] }
 0x177   : > { %1449 = vmatprep.mubr.f32.mxu0 %v5566_v52  ;;  %v4912_v51 = vpack.c.bf16 %v1291_v26, %v1290_v50  ;;  %4927 = vmatpush1.bf16.msra.mxu0 %v4926_v4 }
 0x178   : > { %4929 = vmatprep.subr.bf16.mxu0 %v4928_v5 }
 0x179   : > { %4903 = vmatpush3.bf16.msra.mxu1 %v4900_v44 }
 0x17a   : > { %4905 = vmatprep.subr.bf16.mxu1 %v4904_v47 }
 0x17b   : > { %4931 = vmatpush1.bf16.msra.mxu0 %v4930_v8 }
 0x17d   : > { %4907 = vmatpush3.bf16.msra.mxu1 %v4904_v47 }
 0x17e   : > { %4909 = vmatprep.subr.bf16.mxu1 %v4908_v49 }
 0x181   : > { %4911 = vmatpush3.bf16.msra.mxu1 %v4908_v49 }
 0x182   : > { %4913 = vmatprep.subr.bf16.mxu1 %v4912_v51 }
 0x185   : > { %4915 = vmatpush3.bf16.msra.mxu1 %v4912_v51 }
 0x186   : > { %4917 = vmatprep.subr.bf16.mxu1 %v4916_v55 }
 0x189   : > { %4919 = vmatpush3.bf16.msra.mxu1 %v4916_v55 }
 0x18a   : > { %4921 = vmatprep.subr.bf16.mxu1 %v4920_v58 }
 0x18d   : > { %4923 = vmatpush3.bf16.msra.mxu1 %v4920_v58 }
 0x221   : > { %v500_v9 = vpop.f32.mrb[0].mxu0  ;;  %v577_v10 = vpop.f32.mrb[0].mxu1 }
 0x222   : > { %v502_v11 = vpop.f32.mrb[1].mxu0  ;;  %v6093_v0 = vpop.f32.mrb[1].mxu1  ;;  %4486 = vmatprep.mubr.f32.mxu1 %v500_v9 }
 0x225   : > { %v506_v13 = vpop.f32.mrb[2].mxu0  ;;  %v583_v14 = vpop.f32.mrb[2].mxu1 }
 0x226   : > { %v508_v15 = vpop.f32.mrb[3].mxu0  ;;  %v6095_v16 = vpop.f32.mrb[3].mxu1  ;;  %4487 = vmatmul.mubr.f32.vlgmr.msra.gmra.mrb[20].mxu1 %v506_v13 }
 0x227   : > { %1699 = vmatprep.mubr.f32.mxu1 %v5566_v52 }
 0x229   : > { %v6098_v17 = vpop.f32.mrb[4].mxu0  ;;  %v6100_v18 = vpop.f32.mrb[4].mxu1 }
 0x22a   : > { %v6102_v19 = vpop.f32.mrb[5].mxu0  ;;  %v6104_v20 = vpop.f32.mrb[5].mxu1 }
 0x22d   : > { %v6106_v21 = vpop.f32.mrb[6].mxu0  ;;  %v6108_v22 = vpop.f32.mrb[6].mxu1 }
 0x22e   : > { %v6110_v23 = vpop.f32.mrb[7].mxu0  ;;  %v6112_v24 = vpop.f32.mrb[7].mxu1 }
 0x231   : > { %v6114_v25 = vpop.f32.mrb[8].mxu0  ;;  %v6116_v2 = vpop.f32.mrb[8].mxu1 }
 0x232   : > { %v6118_v27 = vpop.f32.mrb[9].mxu0  ;;  %v6120_v28 = vpop.f32.mrb[9].mxu1 }
 0x235   : > { %v6122_v29 = vpop.f32.mrb[10].mxu0  ;;  %v6124_v30 = vpop.f32.mrb[10].mxu1 }
 0x236   : > { %v6126_v31 = vpop.f32.mrb[11].mxu0  ;;  %v6128_v32 = vpop.f32.mrb[11].mxu1 }
 0x239   : > { %v6130_v33 = vpop.f32.mrb[12].mxu0  ;;  %v6132_v34 = vpop.f32.mrb[12].mxu1 }
 0x23a   : > { %v6134_v35 = vpop.f32.mrb[13].mxu0  ;;  %v6136_v36 = vpop.f32.mrb[13].mxu1 }
 0x23d   : > { %v6138_v37 = vpop.f32.mrb[14].mxu0  ;;  %v6140_v38 = vpop.f32.mrb[14].mxu1 }
 0x23e   : > { %v6142_v39 = vpop.f32.mrb[15].mxu0  ;;  %v6144_v40 = vpop.f32.mrb[15].mxu1 }
 0x241   : > { %v6146_v41 = vpop.f32.mrb[16].mxu0  ;;  %v6148_v42 = vpop.f32.mrb[16].mxu1 }
 0x242   : > { %v6150_v43 = vpop.f32.mrb[17].mxu0  ;;  %v6152_v44 = vpop.f32.mrb[17].mxu1 }
 0x245   : > { %v6154_v45 = vpop.f32.mrb[18].mxu0  ;;  %v6156_v46 = vpop.f32.mrb[18].mxu1 }
 0x246   : > { %v6158_v47 = vpop.f32.mrb[19].mxu0  ;;  %v6160_v48 = vpop.f32.mrb[19].mxu1 }
 0x249   : > { %v6162_v12 = vpop.f32.mrb[20].mxu0 }
 0x24a   : > { %v6164_v49 = vpop.f32.mrb[21].mxu0 }
 0x2f9   : > { %v4488_v50 = vpop.f32.mrb[20].mxu1 }
 0x2fa   : > { %v1362_v26 = vpop.f32.mrb[21].mxu1 }
 0x2fb   : > { %3985 = vmatmul.mubr.msk.f32.vlgmr.msra.gmra.mrb[22].mxu0 %vm427_vm5, %v1362_v26 }
 0x2fc   : > { %1455 = vmatprep.mubr.f32.mxu0 %v5566_v52 }
 0x2ff   : > { %3986 = vmatmul.mubr.msk.f32.gmra.mrb[24].mxu0 %vm427_vm5, %v4488_v50 }
 0x3ce   : > { %v1451_v51 = vpop.f32.mrb[22].mxu0 }
 0x3cf   : > { %v1462_v53 = vsub.f32 %v500_v9, %v1451_v51  ;;  %v1453_v54 = vpop.f32.mrb[23].mxu0  ;;  %v1488_v9 = vstv %s1279_s17  ;;  %s4045_s17 = sld [smem:[#allocation3 + $0x3]] }
 0x3d0   : > { %v1466_v55 = vadd.f32 %v1453_v54, %v577_v10 }
 0x3d1   : > { %v1464_v56 = vadd.f32 %v1462_v53, %v502_v11 }
 0x3d2   : > { %v1470_v57 = vmul.f32 %v1466_v55, %v1466_v55  ;;  %v1457_v58 = vpop.f32.mrb[24].mxu0 }
 0x3d3   : > { %v1468_v59 = vmul.f32 %v1464_v56, %v1464_v56  ;;  %v1463_v60 = vsub.f32 %v506_v13, %v1457_v58  ;;  %v1459_v61 = vpop.f32.mrb[25].mxu0 }
 0x3d4   : > { %v1467_v62 = vadd.f32 %v1459_v61, %v583_v14  ;;  %v3989_v61 = vld [vmem:[%s7081_s4 + $0x88] sm:$0xff] }
 0x3d5   : > { %v1472_v63 = vadd.f32 %v1470_v57, %v1468_v59  ;;  %v1465_v1 = vadd.f32 %v1463_v60, %v508_v15  ;;  %v3988_v60 = vld [vmem:[%s7081_s4 + $0x80] sm:$0xff] }
 0x3d6   : > { %v1471_v3 = vmul.f32 %v1467_v62, %v1467_v62  ;;  %v4932_v62 = vpack.c.bf16 %v3989_v61, %v3988_v60  ;;  %v4007_v60 = vld [vmem:[%s7082_s5 + $0x58] sm:$0xff]  ;;  %v4004_v61 = vld [vmem:[%s7082_s5 + $0x40] sm:$0xff] }
 0x3d7   : > { %5363 = vrsqrt.f32 %v1472_v63  ;;  %v1469_v4 = vmul.f32 %v1465_v1, %v1465_v1  ;;  %vm1476_vm6 = vcmp.eq.f32.partialorder %v1472_v63, inf  ;;  %v1479_v8 = vand.u32 2147483648, %v1472_v63  ;;  %v3991_v1 = vld [vmem:[%s7081_s4 + $0x98] sm:$0xff] }
 0x3d8   : > { %vm1478_vm7 = vcmp.eq.f32.partialorder %v1472_v63, 0.0  ;;  %4933 = vmatprep.subr.bf16.mxu0 %v4932_v62 }
 0x3d9   : > { %v1473_v5 = vadd.f32 %v1471_v3, %v1469_v4  ;;  %4935 = vmatpush3.bf16.msra.mxu0 %v4932_v62  ;;  %v3992_v4 = vld [vmem:[%s7081_s4 + $0xa0] sm:$0xff] }
 0x3db   : > { %5365 = vrsqrt.f32 %v1473_v5  ;;  %vm1483_vm8 = vcmp.eq.f32.partialorder %v1473_v5, inf  ;;  %v1486_v14 = vand.u32 2147483648, %v1473_v5  ;;  %vm1485_vm10 = vcmp.eq.f32.partialorder %v1473_v5, 0.0 }
 0x3e1   : > { %v5364_v6 = vpop.eup %5363 }
 0x3e2   : > { %v1475_v7 = vmul.f32 %v5364_v6, %v1472_v63 }
 0x3e4   : > { %v1477_v10 = vsel %vm1476_vm6, %v1472_v63, %v1475_v7  ;;  %v3990_v63 = vld [vmem:[%s7081_s4 + $0x90] sm:$0xff] }
 0x3e5   : > { %v5366_v11 = vpop.eup %5365  ;;  %v1480_v50 = vsel %vm1478_vm7, %v1479_v8, %v1477_v10  ;;  %v4936_v3 = vpack.c.bf16 %v3991_v1, %v3990_v63  ;;  %v3994_v7 = vld [vmem:[%s7081_s4 + $0xb0] sm:$0xff]  ;;  %v3995_v8 = vld [vmem:[%s7081_s4 + $0xb8] sm:$0xff]  ;;  %v3996_v10 = vld [vmem:[%s7081_s4 + $0xc0] sm:$0xff] }
 0x3e6   : > { %v1489_v13 = vsub.f32 %v1480_v50, %v1488_v9  ;;  %v1482_v26 = vmul.f32 %v5366_v11, %v1473_v5  ;;  %v3997_v11 = vld [vmem:[%s7081_s4 + $0xc8] sm:$0xff]  ;;  %v4006_v63 = vld [vmem:[%s7082_s5 + $0x50] sm:$0xff] }
 0x3e7   : > { %4937 = vmatprep.subr.bf16.mxu0 %v4936_v3  ;;  %v4948_v50 = vpack.c.bf16 %v3997_v11, %v3996_v10  ;;  %v4009_v1 = vld [vmem:[%s7082_s5 + $0x68] sm:$0xff] }
 0x3e8   : > { %vm1491_vm9 = vcmp.ge.f32.partialorder %v1489_v13, 0.0  ;;  %v1493_v15 = vmul.f32 0.01, %v1489_v13  ;;  %v1484_v51 = vsel %vm1483_vm8, %v1473_v5, %v1482_v26  ;;  %4939 = vmatpush3.bf16.msra.mxu0 %v4936_v3  ;;  %v3993_v5 = vld [vmem:[%s7081_s4 + $0xa8] sm:$0xff]  ;;  %v3999_v26 = vld [vmem:[%s7081_s4 + $0xd8] sm:$0xff] }
 0x3e9   : > { %v1487_v53 = vsel %vm1485_vm10, %v1486_v14, %v1484_v51  ;;  %v4940_v6 = vpack.c.bf16 %v3993_v5, %v3992_v4  ;;  %v4001_v51 = vld [vmem:[%s7081_s4 + $0xe8] sm:$0xff]  ;;  %v4011_v3 = vld [vmem:[%s7082_s5 + $0x78] sm:$0xff]  ;;  %v4966_v4 = vpack.c.bf16 %v4006_v63, %v4004_v61 }
 0x3ea   : > { %v6169_v54 = vsel %vm1491_vm9, %v1489_v13, %v1493_v15  ;;  %v1490_v55 = vsub.f32 %v1487_v53, %v1488_v9  ;;  %v4944_v9 = vpack.c.bf16 %v3995_v8, %v3994_v7  ;;  %v3998_v13 = vld [vmem:[%s7081_s4 + $0xd0] sm:$0xff]  ;;  %v4000_v15 = vld [vmem:[%s7081_s4 + $0xe0] sm:$0xff]  ;;  %v4968_v5 = vpack.c.bf16 %v4011_v3, %v4009_v1 }
 0x3eb   : > { %v1497_v56 = vmul.f32 %v6169_v54, %v6169_v54  ;;  %4941 = vmatprep.subr.bf16.mxu0 %v4940_v6  ;;  %v4952_v14 = vpack.c.bf16 %v3999_v26, %v3998_v13  ;;  %v4956_v53 = vpack.c.bf16 %v4001_v51, %v4000_v15  ;;  %v4010_v7 = vld [vmem:[%s7082_s5 + $0x70] sm:$0xff] }
 0x3ec   : > { %vm1492_vm11 = vcmp.ge.f32.partialorder %v1490_v55, 0.0  ;;  %v1494_v57 = vmul.f32 0.01, %v1490_v55  ;;  %4943 = vmatpush3.bf16.msra.mxu0 %v4940_v6  ;;  %v4008_v6 = vld [vmem:[%s7082_s5 + $0x60] sm:$0xff] }
 0x3ed   : > { %1499 = vadd.xlane.f32.xlu0 %v1497_v56  ;;  %4945 = vmatprep.subr.bf16.mxu0 %v4944_v9  ;;  %v4003_v56 = vld [vmem:[%s7081_s4 + $0xf8] sm:$0xff]  ;;  %v4970_v8 = vpack.c.bf16 %v4010_v7, %v4008_v6 }
 0x3ee   : > { %v6173_v58 = vsel %vm1492_vm11, %v1490_v55, %v1494_v57  ;;  %v4002_v55 = vld [vmem:[%s7081_s4 + $0xf0] sm:$0xff] }
 0x3ef   : > { %v1498_v59 = vmul.f32 %v6173_v58, %v6173_v58  ;;  %v4960_v57 = vpack.c.bf16 %v4003_v56, %v4002_v55 }
 0x3f0   : > { %4947 = vmatpush3.bf16.msra.mxu0 %v4944_v9 }
 0x3f1   : > { %1501 = vadd.xlane.f32.xlu1 %v1498_v59  ;;  %4949 = vmatprep.subr.bf16.mxu0 %v4948_v50  ;;  %v4005_v59 = vld [vmem:[%s7082_s5 + $0x48] sm:$0xff] }
 0x3f2   : > { %v4964_v62 = vpack.c.bf16 %v4007_v60, %v4005_v59 }
 0x3f4   : > { %4951 = vmatpush3.bf16.msra.mxu0 %v4948_v50  ;;  %4965 = vmatprep.subr.bf16.mxu1 %v4964_v62 }
 0x3f5   : > { %4953 = vmatprep.subr.bf16.mxu0 %v4952_v14  ;;  %4967 = vmatpush1.bf16.msra.mxu1 %v4966_v4 }
 0x3f6   : > { %4969 = vmatprep.subr.bf16.mxu1 %v4968_v5 }
 0x3f8   : > { %4955 = vmatpush3.bf16.msra.mxu0 %v4952_v14 }
 0x3f9   : > { %4957 = vmatprep.subr.bf16.mxu0 %v4956_v53  ;;  %4971 = vmatpush1.bf16.msra.mxu1 %v4970_v8 }
 0x3fc   : > { %4959 = vmatpush3.bf16.msra.mxu0 %v4956_v53 }
 0x3fd   : > { %4961 = vmatprep.subr.bf16.mxu0 %v4960_v57 }
 0x400   : > { %4963 = vmatpush3.bf16.msra.mxu0 %v4960_v57 }
 0x47a   : > { %v1500_v9 = vpop.xlane.xlu0 %1499 }
 0x47b   : > { %5367 = vrsqrt.f32 %v1500_v9  ;;  %vm1505_vm12 = vcmp.eq.f32.partialorder %v1500_v9, inf  ;;  %v1508_v13 = vand.u32 2147483648, %v1500_v9  ;;  %vm1507_vm13 = vcmp.eq.f32.partialorder %v1500_v9, 0.0 }
 0x47e   : > { %v1502_v10 = vpop.xlane.xlu1 %1501 }
 0x47f   : > { %5369 = vrsqrt.f32 %v1502_v10  ;;  %vm1512_vm14 = vcmp.eq.f32.partialorder %v1502_v10, inf  ;;  %v1515_v55 = vand.u32 2147483648, %v1502_v10  ;;  %vm1514_vm15 = vcmp.eq.f32.partialorder %v1502_v10, 0.0 }
 0x485   : > { %v5368_v11 = vpop.eup %5367 }
 0x486   : > { %v1504_v50 = vmul.f32 %v5368_v11, %v1500_v9 }
 0x488   : > { %v1506_v26 = vsel %vm1505_vm12, %v1500_v9, %v1504_v50 }
 0x489   : > { %v5370_v14 = vpop.eup %5369  ;;  %v1509_v15 = vsel %vm1507_vm13, %v1508_v13, %v1506_v26 }
 0x48a   : > { %v1517_v51 = vadd.f32 1e-20, %v1509_v15  ;;  %v1511_v53 = vmul.f32 %v5370_v14, %v1502_v10 }
 0x48c   : > { %5371 = vrcp.f32 %v1517_v51  ;;  %v1513_v56 = vsel %vm1512_vm14, %v1502_v10, %v1511_v53 }
 0x48d   : > { %v1516_v57 = vsel %vm1514_vm15, %v1515_v55, %v1513_v56  ;;  %v1738_v55 = vstv %s3987_s25  ;;  %s5499_s25 = sshll.u32 %s5568_s23, 4  ;;  %s5500_s25 = int_to_ptr.vmem [resolvable:$false] %s5499_s25 }
 0x48e   : > { %v1518_v59 = vadd.f32 1e-20, %v1516_v57 }
 0x490   : > { %5373 = vrcp.f32 %v1518_v59 }
 0x496   : > { %v5372_v60 = vpop.eup %5371 }
 0x497   : > { %v1523_v61 = vmul.f32 %v5372_v60, %v6169_v54 }
 0x499   : > { %1525 = vst [vmem:[%s6254_s24] sm:$0xff] %v1523_v61  ;;  %4521 = vmatprep.mubr.f32.mxu0 %v1523_v61 }
 0x49a   : > { %v5374_v62 = vpop.eup %5373 }
 0x49b   : > { %v1524_v63 = vmul.f32 %v5374_v62, %v6173_v58 }
 0x49d   : > { %1526 = vst [vmem:[%s6254_s24 + $0x8] sm:$0xff] %v1524_v63  ;;  %4522 = vmatmul.mubr.f32.vlgmr.msra.gmra.mrb[26].mxu0 %v1524_v63 }
 0x49e   : > { %1950 = vmatprep.mubr.f32.mxu0 %v5566_v52 }
 0x570   : > { %v4523_v1 = vpop.f32.mrb[26].mxu0 }
 0x571   : > { %v1611_v3 = vpop.f32.mrb[27].mxu0 }
 0x572   : > { %4012 = vmatmul.mubr.msk.f32.vlgmr.msra.gmra.mrb[22].mxu1 %vm427_vm5, %v1611_v3 }
 0x573   : > { %1705 = vmatprep.mubr.f32.mxu1 %v5566_v52 }
 0x576   : > { %4013 = vmatmul.mubr.msk.f32.gmra.mrb[24].mxu1 %vm427_vm5, %v4523_v1 }
 0x645   : > { %v1701_v54 = vpop.f32.mrb[22].mxu1 }
 0x646   : > { %v1712_v4 = vsub.f32 %v1523_v61, %v1701_v54  ;;  %v1703_v5 = vpop.f32.mrb[23].mxu1 }
 0x647   : > { %v1716_v6 = vadd.f32 %v1703_v5, %v6098_v17 }
 0x648   : > { %v1714_v7 = vadd.f32 %v1712_v4, %v6093_v0 }
 0x649   : > { %v1720_v58 = vmul.f32 %v1716_v6, %v1716_v6  ;;  %v1707_v8 = vpop.f32.mrb[24].mxu1 }
 0x64a   : > { %v1718_v9 = vmul.f32 %v1714_v7, %v1714_v7  ;;  %v1713_v10 = vsub.f32 %v1524_v63, %v1707_v8  ;;  %v1709_v11 = vpop.f32.mrb[25].mxu1  ;;  %v4017_v7 = vld [vmem:[%s7081_s4 + $0x100] sm:$0xff] }
 0x64b   : > { %v1717_v50 = vadd.f32 %v1709_v11, %v6106_v21 }
 0x64c   : > { %v1722_v13 = vadd.f32 %v1720_v58, %v1718_v9  ;;  %v1715_v26 = vadd.f32 %v1713_v10, %v6095_v16  ;;  %v4018_v58 = vld [vmem:[%s7081_s4 + $0x108] sm:$0xff]  ;;  %v4019_v9 = vld [vmem:[%s7081_s4 + $0x110] sm:$0xff]  ;;  %v4020_v10 = vld [vmem:[%s7081_s4 + $0x118] sm:$0xff] }
 0x64d   : > { %v1721_v14 = vmul.f32 %v1717_v50, %v1717_v50  ;;  %v4972_v8 = vpack.c.bf16 %v4018_v58, %v4017_v7  ;;  %v4976_v11 = vpack.c.bf16 %v4020_v10, %v4019_v9  ;;  %v4021_v50 = vld [vmem:[%s7081_s4 + $0x120] sm:$0xff]  ;;  %v4038_v7 = vld [vmem:[%s7082_s5 + $0xa8] sm:$0xff]  ;;  %v4040_v58 = vld [vmem:[%s7082_s5 + $0xb8] sm:$0xff] }
 0x64e   : > { %5375 = vrsqrt.f32 %v1722_v13  ;;  %v1719_v15 = vmul.f32 %v1715_v26, %v1715_v26  ;;  %vm1726_vm0 = vcmp.eq.f32.partialorder %v1722_v13, inf  ;;  %v1729_v0 = vand.u32 2147483648, %v1722_v13  ;;  %v4037_v10 = vld [vmem:[%s7082_s5 + $0xa0] sm:$0xff] }
 0x64f   : > { %vm1728_vm1 = vcmp.eq.f32.partialorder %v1722_v13, 0.0  ;;  %4973 = vmatprep.subr.bf16.mxu1 %v4972_v8  ;;  %v5008_v9 = vpack.c.bf16 %v4040_v58, %v4038_v7 }
 0x650   : > { %v1723_v51 = vadd.f32 %v1721_v14, %v1719_v15  ;;  %4975 = vmatpush3.bf16.msra.mxu1 %v4972_v8  ;;  %v4023_v14 = vld [vmem:[%s7081_s4 + $0x130] sm:$0xff]  ;;  %v4024_v15 = vld [vmem:[%s7081_s4 + $0x138] sm:$0xff] }
 0x651   : > { %4977 = vmatprep.subr.bf16.mxu1 %v4976_v11 }
 0x652   : > { %5377 = vrsqrt.f32 %v1723_v51  ;;  %vm1733_vm2 = vcmp.eq.f32.partialorder %v1723_v51, inf  ;;  %v1736_v61 = vand.u32 2147483648, %v1723_v51  ;;  %vm1735_vm4 = vcmp.eq.f32.partialorder %v1723_v51, 0.0 }
 0x654   : > { %4979 = vmatpush3.bf16.msra.mxu1 %v4976_v11  ;;  %v4039_v11 = vld [vmem:[%s7082_s5 + $0xb0] sm:$0xff] }
 0x658   : > { %v5376_v53 = vpop.eup %5375 }
 0x659   : > { %v1725_v17 = vmul.f32 %v5376_v53, %v1722_v13  ;;  %v4025_v53 = vld [vmem:[%s7081_s4 + $0x140] sm:$0xff] }
 0x65b   : > { %v1727_v56 = vsel %vm1726_vm0, %v1722_v13, %v1725_v17  ;;  %v4022_v13 = vld [vmem:[%s7081_s4 + $0x128] sm:$0xff] }
 0x65c   : > { %v5378_v57 = vpop.eup %5377  ;;  %v1730_v59 = vsel %vm1728_vm1, %v1729_v0, %v1727_v56  ;;  %v4980_v26 = vpack.c.bf16 %v4022_v13, %v4021_v50  ;;  %v4026_v17 = vld [vmem:[%s7081_s4 + $0x148] sm:$0xff]  ;;  %v4028_v56 = vld [vmem:[%s7081_s4 + $0x158] sm:$0xff]  ;;  %v5010_v50 = vpack.c.bf16 %v4039_v11, %v4037_v10 }
 0x65d   : > { %v1739_v60 = vsub.f32 %v1730_v59, %v1738_v55  ;;  %v1732_v21 = vmul.f32 %v5378_v57, %v1723_v51  ;;  %v4988_v0 = vpack.c.bf16 %v4026_v17, %v4025_v53  ;;  %v4029_v59 = vld [vmem:[%s7081_s4 + $0x160] sm:$0xff] }
 0x65e   : > { %4981 = vmatprep.subr.bf16.mxu1 %v4980_v26 }
 0x65f   : > { %vm1741_vm3 = vcmp.ge.f32.partialorder %v1739_v60, 0.0  ;;  %v1743_v16 = vmul.f32 0.01, %v1739_v60  ;;  %v1734_v62 = vsel %vm1733_vm2, %v1723_v51, %v1732_v21  ;;  %4983 = vmatpush3.bf16.msra.mxu1 %v4980_v26  ;;  %v4984_v51 = vpack.c.bf16 %v4024_v15, %v4023_v14 }
 0x660   : > { %v1737_v63 = vsel %vm1735_vm4, %v1736_v61, %v1734_v62  ;;  %v4031_v61 = vld [vmem:[%s7081_s4 + $0x170] sm:$0xff] }
 0x661   : > { %v6267_v1 = vsel %vm1741_vm3, %v1739_v60, %v1743_v16  ;;  %v1740_v3 = vsub.f32 %v1737_v63, %v1738_v55  ;;  %4985 = vmatprep.subr.bf16.mxu1 %v4984_v51  ;;  %v4027_v55 = vld [vmem:[%s7081_s4 + $0x150] sm:$0xff]  ;;  %v4030_v60 = vld [vmem:[%s7081_s4 + $0x168] sm:$0xff]  ;;  %v4032_v16 = vld [vmem:[%s7081_s4 + $0x178] sm:$0xff] }
 0x662   : > { %v1747_v54 = vmul.f32 %v6267_v1, %v6267_v1  ;;  %v4992_v57 = vpack.c.bf16 %v4028_v56, %v4027_v55  ;;  %v4996_v21 = vpack.c.bf16 %v4030_v60, %v4029_v59  ;;  %v5000_v62 = vpack.c.bf16 %v4032_v16, %v4031_v61  ;;  %v4034_v63 = vld [vmem:[%s7082_s5 + $0x88] sm:$0xff] }
 0x663   : > { %vm1742_vm6 = vcmp.ge.f32.partialorder %v1740_v3, 0.0  ;;  %v1744_v4 = vmul.f32 0.01, %v1740_v3  ;;  %4987 = vmatpush3.bf16.msra.mxu1 %v4984_v51 }
 0x664   : > { %1749 = vadd.xlane.f32.xlu0 %v1747_v54  ;;  %4989 = vmatprep.subr.bf16.mxu1 %v4988_v0  ;;  %v4033_v54 = vld [vmem:[%s7082_s5 + $0x80] sm:$0xff] }
 0x665   : > { %v6271_v5 = vsel %vm1742_vm6, %v1740_v3, %v1744_v4  ;;  %v4036_v3 = vld [vmem:[%s7082_s5 + $0x98] sm:$0xff] }
 0x666   : > { %v1748_v6 = vmul.f32 %v6271_v5, %v6271_v5  ;;  %v5004_v4 = vpack.c.bf16 %v4036_v3, %v4034_v63 }
 0x667   : > { %4991 = vmatpush3.bf16.msra.mxu1 %v4988_v0 }
 0x668   : > { %1751 = vadd.xlane.f32.xlu0 %v1748_v6  ;;  %4993 = vmatprep.subr.bf16.mxu1 %v4992_v57  ;;  %v4035_v6 = vld [vmem:[%s7082_s5 + $0x90] sm:$0xff] }
 0x669   : > { %v5006_v8 = vpack.c.bf16 %v4035_v6, %v4033_v54  ;;  %5005 = vmatprep.subr.bf16.mxu0 %v5004_v4 }
 0x66b   : > { %4995 = vmatpush3.bf16.msra.mxu1 %v4992_v57  ;;  %5007 = vmatpush1.bf16.msra.mxu0 %v5006_v8 }
 0x66c   : > { %4997 = vmatprep.subr.bf16.mxu1 %v4996_v21  ;;  %5009 = vmatprep.subr.bf16.mxu0 %v5008_v9 }
 0x66f   : > { %4999 = vmatpush3.bf16.msra.mxu1 %v4996_v21  ;;  %5011 = vmatpush1.bf16.msra.mxu0 %v5010_v50 }
 0x670   : > { %5001 = vmatprep.subr.bf16.mxu1 %v5000_v62 }
 0x673   : > { %5003 = vmatpush3.bf16.msra.mxu1 %v5000_v62 }
 0x6f1   : > { %v1750_v13 = vpop.xlane.xlu0 %1749 }
 0x6f2   : > { %5379 = vrsqrt.f32 %v1750_v13  ;;  %vm1755_vm7 = vcmp.eq.f32.partialorder %v1750_v13, inf  ;;  %v1758_v51 = vand.u32 2147483648, %v1750_v13  ;;  %vm1757_vm8 = vcmp.eq.f32.partialorder %v1750_v13, 0.0 }
 0x6f5   : > { %v1752_v26 = vpop.xlane.xlu0 %1751 }
 0x6f6   : > { %5381 = vrsqrt.f32 %v1752_v26  ;;  %vm1762_vm9 = vcmp.eq.f32.partialorder %v1752_v26, inf  ;;  %v1765_v57 = vand.u32 2147483648, %v1752_v26  ;;  %vm1764_vm10 = vcmp.eq.f32.partialorder %v1752_v26, 0.0 }
 0x6fc   : > { %v5380_v14 = vpop.eup %5379 }
 0x6fd   : > { %v1754_v15 = vmul.f32 %v5380_v14, %v1750_v13 }
 0x6ff   : > { %v1756_v53 = vsel %vm1755_vm7, %v1750_v13, %v1754_v15 }
 0x700   : > { %v5382_v17 = vpop.eup %5381  ;;  %v1759_v0 = vsel %vm1757_vm8, %v1758_v51, %v1756_v53 }
 0x701   : > { %v1767_v55 = vadd.f32 1e-20, %v1759_v0  ;;  %v1761_v56 = vmul.f32 %v5382_v17, %v1752_v26  ;;  %v1989_v17 = vstv %s4016_s21  ;;  %s3785_s21 = scalar_lea.sflag [#allocation5], %s6226_s20 }
 0x703   : > { %5383 = vrcp.f32 %v1767_v55  ;;  %v1763_v59 = vsel %vm1762_vm9, %v1752_v26, %v1761_v56 }
 0x704   : > { %v1766_v60 = vsel %vm1764_vm10, %v1765_v57, %v1763_v59 }
 0x705   : > { %v1768_v21 = vadd.f32 1e-20, %v1766_v60 }
 0x707   : > { %5385 = vrcp.f32 %v1768_v21 }
 0x70d   : > { %v5384_v61 = vpop.eup %5383 }
 0x70e   : > { %v1773_v16 = vmul.f32 %v5384_v61, %v6267_v1 }
 0x710   : > { %4014 = vst [vmem:[%s6254_s24 + $0x10] sm:$0xff] %v1773_v16  ;;  %4556 = vmatprep.mubr.f32.mxu1 %v1773_v16 }
 0x711   : > { %v5386_v62 = vpop.eup %5385 }
 0x712   : > { %v1774_v63 = vmul.f32 %v5386_v62, %v6271_v5 }
 0x714   : > { %4015 = vst [vmem:[%s6254_s24 + $0x18] sm:$0xff] %v1774_v63  ;;  %4557 = vmatmul.mubr.f32.vlgmr.msra.gmra.mrb[26].mxu1 %v1774_v63 }
 0x715   : > { %2201 = vmatprep.mubr.f32.mxu1 %v5566_v52 }
 0x7e7   : > { %v4558_v3 = vpop.f32.mrb[26].mxu1 }
 0x7e8   : > { %v1862_v54 = vpop.f32.mrb[27].mxu1 }
 0x7e9   : > { %4041 = vmatmul.mubr.msk.f32.vlgmr.msra.gmra.mrb[28].mxu0 %vm427_vm5, %v1862_v54 }
 0x7ea   : > { %1956 = vmatprep.mubr.f32.mxu0 %v5566_v52 }
 0x7ed   : > { %4042 = vmatmul.mubr.msk.f32.gmra.mrb[30].mxu0 %vm427_vm5, %v4558_v3 }
 0x8bc   : > { %v1952_v4 = vpop.f32.mrb[28].mxu0 }
 0x8bd   : > { %v1963_v6 = vsub.f32 %v1773_v16, %v1952_v4  ;;  %v1954_v1 = vpop.f32.mrb[29].mxu0  ;;  %v4046_v4 = vld [vmem:[%s7081_s4 + $0x180] sm:$0xff] }
 0x8be   : > { %v1967_v7 = vadd.f32 %v1954_v1, %v6100_v18 }
 0x8bf   : > { %v1965_v58 = vadd.f32 %v1963_v6, %v6102_v19  ;;  %v4047_v6 = vld [vmem:[%s7081_s4 + $0x188] sm:$0xff] }
 0x8c0   : > { %v1971_v5 = vmul.f32 %v1967_v7, %v1967_v7  ;;  %v1958_v8 = vpop.f32.mrb[30].mxu0  ;;  %v5012_v1 = vpack.c.bf16 %v4047_v6, %v4046_v4  ;;  %v4048_v7 = vld [vmem:[%s7081_s4 + $0x190] sm:$0xff]  ;;  %v4066_v4 = vld [vmem:[%s7082_s5 + $0xe0] sm:$0xff] }
 0x8c1   : > { %v1969_v9 = vmul.f32 %v1965_v58, %v1965_v58  ;;  %v1964_v10 = vsub.f32 %v1774_v63, %v1958_v8  ;;  %v1960_v11 = vpop.f32.mrb[31].mxu0  ;;  %v4049_v58 = vld [vmem:[%s7081_s4 + $0x198] sm:$0xff]  ;;  %v4050_v8 = vld [vmem:[%s7081_s4 + $0x1a0] sm:$0xff]  ;;  %v4068_v6 = vld [vmem:[%s7082_s5 + $0xf0] sm:$0xff] }
 0x8c2   : > { %v1968_v50 = vadd.f32 %v1960_v11, %v6108_v22  ;;  %5013 = vmatprep.subr.bf16.mxu0 %v5012_v1  ;;  %v4052_v11 = vld [vmem:[%s7081_s4 + $0x1b0] sm:$0xff] }
 0x8c3   : > { %v1973_v13 = vadd.f32 %v1971_v5, %v1969_v9  ;;  %v1966_v26 = vadd.f32 %v1964_v10, %v6110_v23  ;;  %5015 = vmatpush3.bf16.msra.mxu0 %v5012_v1  ;;  %v5016_v5 = vpack.c.bf16 %v4049_v58, %v4048_v7  ;;  %v4051_v9 = vld [vmem:[%s7081_s4 + $0x1a8] sm:$0xff]  ;;  %v5050_v1 = vpack.c.bf16 %v4068_v6, %v4066_v4 }
 0x8c4   : > { %v1972_v14 = vmul.f32 %v1968_v50, %v1968_v50  ;;  %v5020_v10 = vpack.c.bf16 %v4051_v9, %v4050_v8  ;;  %v4053_v50 = vld [vmem:[%s7081_s4 + $0x1b8] sm:$0xff] }
 0x8c5   : > { %5387 = vrsqrt.f32 %v1973_v13  ;;  %v1970_v15 = vmul.f32 %v1966_v26, %v1966_v26  ;;  %vm1977_vm11 = vcmp.eq.f32.partialorder %v1973_v13, inf  ;;  %v1980_v19 = vand.u32 2147483648, %v1973_v13  ;;  %5017 = vmatprep.subr.bf16.mxu0 %v5016_v5  ;;  %v4054_v26 = vld [vmem:[%s7081_s4 + $0x1c0] sm:$0xff] }
 0x8c6   : > { %vm1979_vm12 = vcmp.eq.f32.partialorder %v1973_v13, 0.0 }
 0x8c7   : > { %v1974_v51 = vadd.f32 %v1972_v14, %v1970_v15  ;;  %5019 = vmatpush3.bf16.msra.mxu0 %v5016_v5  ;;  %v4055_v14 = vld [vmem:[%s7081_s4 + $0x1c8] sm:$0xff] }
 0x8c8   : > { %5021 = vmatprep.subr.bf16.mxu0 %v5020_v10  ;;  %v5028_v15 = vpack.c.bf16 %v4055_v14, %v4054_v26 }
 0x8c9   : > { %5389 = vrsqrt.f32 %v1974_v51  ;;  %vm1984_vm13 = vcmp.eq.f32.partialorder %v1974_v51, inf  ;;  %v1987_v59 = vand.u32 2147483648, %v1974_v51  ;;  %vm1986_vm15 = vcmp.eq.f32.partialorder %v1974_v51, 0.0 }
 0x8cb   : > { %5023 = vmatpush3.bf16.msra.mxu0 %v5020_v10 }
 0x8cf   : > { %v5388_v53 = vpop.eup %5387 }
 0x8d0   : > { %v1976_v18 = vmul.f32 %v5388_v53, %v1973_v13  ;;  %v4057_v53 = vld [vmem:[%s7081_s4 + $0x1d8] sm:$0xff] }
 0x8d2   : > { %v1978_v0 = vsel %vm1977_vm11, %v1973_v13, %v1976_v18  ;;  %v5024_v13 = vpack.c.bf16 %v4053_v50, %v4052_v11 }
 0x8d3   : > { %v5390_v55 = vpop.eup %5389  ;;  %v1981_v56 = vsel %vm1979_vm12, %v1980_v19, %v1978_v0  ;;  %v4058_v19 = vld [vmem:[%s7081_s4 + $0x1e0] sm:$0xff] }
 0x8d4   : > { %v1990_v57 = vsub.f32 %v1981_v56, %v1989_v17  ;;  %v1983_v22 = vmul.f32 %v5390_v55, %v1974_v51  ;;  %5025 = vmatprep.subr.bf16.mxu0 %v5024_v13  ;;  %v4060_v55 = vld [vmem:[%s7081_s4 + $0x1f0] sm:$0xff]  ;;  %v4061_v56 = vld [vmem:[%s7081_s4 + $0x1f8] sm:$0xff] }
 0x8d5   : > { %5027 = vmatpush3.bf16.msra.mxu0 %v5024_v13 }
 0x8d6   : > { %vm1992_vm14 = vcmp.ge.f32.partialorder %v1990_v57, 0.0  ;;  %v1994_v23 = vmul.f32 0.01, %v1990_v57  ;;  %v1985_v60 = vsel %vm1984_vm13, %v1974_v51, %v1983_v22  ;;  %5029 = vmatprep.subr.bf16.mxu0 %v5028_v15  ;;  %v4056_v51 = vld [vmem:[%s7081_s4 + $0x1d0] sm:$0xff]  ;;  %v4063_v22 = vld [vmem:[%s7082_s5 + $0xc8] sm:$0xff] }
 0x8d7   : > { %v1988_v21 = vsel %vm1986_vm15, %v1987_v59, %v1985_v60  ;;  %v5032_v18 = vpack.c.bf16 %v4057_v53, %v4056_v51  ;;  %v4065_v59 = vld [vmem:[%s7082_s5 + $0xd8] sm:$0xff] }
 0x8d8   : > { %v6359_v61 = vsel %vm1992_vm14, %v1990_v57, %v1994_v23  ;;  %v1991_v16 = vsub.f32 %v1988_v21, %v1989_v17  ;;  %v4059_v17 = vld [vmem:[%s7081_s4 + $0x1e8] sm:$0xff]  ;;  %v5040_v57 = vpack.c.bf16 %v4061_v56, %v4060_v55  ;;  %v4062_v23 = vld [vmem:[%s7082_s5 + $0xc0] sm:$0xff]  ;;  %v5044_v60 = vpack.c.bf16 %v4065_v59, %v4063_v22  ;;  %v4064_v21 = vld [vmem:[%s7082_s5 + $0xd0] sm:$0xff] }
 0x8d9   : > { %v1998_v62 = vmul.f32 %v6359_v61, %v6359_v61  ;;  %5031 = vmatpush3.bf16.msra.mxu0 %v5028_v15  ;;  %v5036_v0 = vpack.c.bf16 %v4059_v17, %v4058_v19 }
 0x8da   : > { %vm1993_vm0 = vcmp.ge.f32.partialorder %v1991_v16, 0.0  ;;  %v1995_v63 = vmul.f32 0.01, %v1991_v16  ;;  %5033 = vmatprep.subr.bf16.mxu0 %v5032_v18  ;;  %5045 = vmatprep.subr.bf16.mxu1 %v5044_v60 }
 0x8db   : > { %2000 = vadd.xlane.f32.xlu0 %v1998_v62  ;;  %v4069_v62 = vld [vmem:[%s7082_s5 + $0xf8] sm:$0xff] }
 0x8dc   : > { %v6363_v3 = vsel %vm1993_vm0, %v1991_v16, %v1995_v63  ;;  %v4067_v16 = vld [vmem:[%s7082_s5 + $0xe8] sm:$0xff]  ;;  %v5046_v63 = vpack.c.bf16 %v4064_v21, %v4062_v23 }
 0x8dd   : > { %v1999_v54 = vmul.f32 %v6363_v3, %v6363_v3  ;;  %5035 = vmatpush3.bf16.msra.mxu0 %v5032_v18 }
 0x8de   : > { %5037 = vmatprep.subr.bf16.mxu0 %v5036_v0  ;;  %5047 = vmatpush1.bf16.msra.mxu1 %v5046_v63 }
 0x8df   : > { %2002 = vadd.xlane.f32.xlu0 %v1999_v54  ;;  %v5048_v54 = vpack.c.bf16 %v4069_v62, %v4067_v16 }
 0x8e1   : > { %5039 = vmatpush3.bf16.msra.mxu0 %v5036_v0  ;;  %5049 = vmatprep.subr.bf16.mxu1 %v5048_v54 }
 0x8e2   : > { %5041 = vmatprep.subr.bf16.mxu0 %v5040_v57  ;;  %5051 = vmatpush1.bf16.msra.mxu1 %v5050_v1 }
 0x8e5   : > { %5043 = vmatpush3.bf16.msra.mxu0 %v5040_v57 }
 0x968   : > { %v2001_v7 = vpop.xlane.xlu0 %2000 }
 0x969   : > { %5391 = vrsqrt.f32 %v2001_v7  ;;  %vm2006_vm1 = vcmp.eq.f32.partialorder %v2001_v7, inf  ;;  %v2009_v9 = vand.u32 2147483648, %v2001_v7  ;;  %vm2008_vm2 = vcmp.eq.f32.partialorder %v2001_v7, 0.0 }
 0x96c   : > { %v2003_v58 = vpop.xlane.xlu0 %2002 }
 0x96d   : > { %5393 = vrsqrt.f32 %v2003_v58  ;;  %vm2013_vm3 = vcmp.eq.f32.partialorder %v2003_v58, inf  ;;  %v2016_v14 = vand.u32 2147483648, %v2003_v58  ;;  %vm2015_vm4 = vcmp.eq.f32.partialorder %v2003_v58, 0.0 }
 0x973   : > { %v5392_v5 = vpop.eup %5391 }
 0x974   : > { %v2005_v8 = vmul.f32 %v5392_v5, %v2001_v7  ;;  %v2240_v5 = vstv %s4045_s17 }
 0x976   : > { %v2007_v10 = vsel %vm2006_vm1, %v2001_v7, %v2005_v8 }
 0x977   : > { %v5394_v11 = vpop.eup %5393  ;;  %v2010_v50 = vsel %vm2008_vm2, %v2009_v9, %v2007_v10 }
 0x978   : > { %v2018_v13 = vadd.f32 1e-20, %v2010_v50  ;;  %v2012_v26 = vmul.f32 %v5394_v11, %v2003_v58 }
 0x97a   : > { %5395 = vrcp.f32 %v2018_v13  ;;  %v2014_v15 = vsel %vm2013_vm3, %v2003_v58, %v2012_v26 }
 0x97b   : > { %v2017_v51 = vsel %vm2015_vm4, %v2016_v14, %v2014_v15 }
 0x97c   : > { %v2019_v53 = vadd.f32 1e-20, %v2017_v51 }
 0x97e   : > { %5397 = vrcp.f32 %v2019_v53 }
 0x984   : > { %v5396_v18 = vpop.eup %5395 }
 0x985   : > { %v2024_v19 = vmul.f32 %v5396_v18, %v6359_v61 }
 0x987   : > { %4043 = vst [vmem:[%s6254_s24 + $0x20] sm:$0xff] %v2024_v19  ;;  %4591 = vmatprep.mubr.f32.mxu0 %v2024_v19 }
 0x988   : > { %v5398_v17 = vpop.eup %5397 }
 0x989   : > { %v2025_v0 = vmul.f32 %v5398_v17, %v6363_v3  ;;  %v4075_v17 = vld [vmem:[%s7081_s4 + $0x200] sm:$0xff] }
 0x98b   : > { %4044 = vst [vmem:[%s6254_s24 + $0x28] sm:$0xff] %v2025_v0  ;;  %4592 = vmatmul.mubr.f32.vlgmr.msra.gmra.mrb[32].mxu0 %v2025_v0 }
 0x98c   : > { %2452 = vmatprep.mubr.f32.mxu0 %v5566_v52 }
 0xa5e   : > { %v4593_v55 = vpop.f32.mrb[32].mxu0 }
 0xa5f   : > { %v2113_v56 = vpop.f32.mrb[33].mxu0 }
 0xa60   : > { %4070 = vmatmul.mubr.msk.f32.vlgmr.msra.gmra.mrb[28].mxu1 %vm427_vm5, %v2113_v56  ;;  %v4077_v56 = vld [vmem:[%s7081_s4 + $0x210] sm:$0xff] }
 0xa61   : > { %2207 = vmatprep.mubr.f32.mxu1 %v5566_v52 }
 0xa64   : > { %4071 = vmatmul.mubr.msk.f32.gmra.mrb[30].mxu1 %vm427_vm5, %v4593_v55 }
 0xb33   : > { %v2203_v57 = vpop.f32.mrb[28].mxu1 }
 0xb34   : > { %v2214_v22 = vsub.f32 %v2024_v19, %v2203_v57  ;;  %v2205_v61 = vpop.f32.mrb[29].mxu1  ;;  %v4078_v57 = vld [vmem:[%s7081_s4 + $0x218] sm:$0xff] }
 0xb35   : > { %v2218_v59 = vadd.f32 %v2205_v61, %v6114_v25  ;;  %v4079_v61 = vld [vmem:[%s7081_s4 + $0x220] sm:$0xff] }
 0xb36   : > { %v2216_v23 = vadd.f32 %v2214_v22, %v6104_v20  ;;  %v5056_v22 = vpack.c.bf16 %v4078_v57, %v4077_v56 }
 0xb37   : > { %v2222_v3 = vmul.f32 %v2218_v59, %v2218_v59  ;;  %v2209_v60 = vpop.f32.mrb[30].mxu1  ;;  %v4080_v59 = vld [vmem:[%s7081_s4 + $0x228] sm:$0xff] }
 0xb38   : > { %v2220_v21 = vmul.f32 %v2216_v23, %v2216_v23  ;;  %v2215_v16 = vsub.f32 %v2025_v0, %v2209_v60  ;;  %v2211_v62 = vpop.f32.mrb[31].mxu1  ;;  %v4076_v0 = vld [vmem:[%s7081_s4 + $0x208] sm:$0xff]  ;;  %v5060_v23 = vpack.c.bf16 %v4080_v59, %v4079_v61  ;;  %v4082_v60 = vld [vmem:[%s7081_s4 + $0x238] sm:$0xff] }
 0xb39   : > { %v2219_v63 = vadd.f32 %v2211_v62, %v6122_v29  ;;  %v5052_v55 = vpack.c.bf16 %v4076_v0, %v4075_v17  ;;  %v4084_v62 = vld [vmem:[%s7081_s4 + $0x248] sm:$0xff] }
 0xb3a   : > { %v2224_v54 = vadd.f32 %v2222_v3, %v2220_v21  ;;  %v2217_v4 = vadd.f32 %v2215_v16, %v6112_v24  ;;  %v4081_v3 = vld [vmem:[%s7081_s4 + $0x230] sm:$0xff]  ;;  %v4083_v16 = vld [vmem:[%s7081_s4 + $0x240] sm:$0xff] }
 0xb3b   : > { %v2223_v6 = vmul.f32 %v2219_v63, %v2219_v63  ;;  %5053 = vmatprep.subr.bf16.mxu1 %v5052_v55  ;;  %v5064_v21 = vpack.c.bf16 %v4082_v60, %v4081_v3  ;;  %v5068_v63 = vpack.c.bf16 %v4084_v62, %v4083_v16 }
 0xb3c   : > { %5399 = vrsqrt.f32 %v2224_v54  ;;  %v2221_v1 = vmul.f32 %v2217_v4, %v2217_v4  ;;  %vm2228_vm6 = vcmp.eq.f32.partialorder %v2224_v54, inf  ;;  %v2231_v20 = vand.u32 2147483648, %v2224_v54  ;;  %5055 = vmatpush3.bf16.msra.mxu1 %v5052_v55  ;;  %v4086_v4 = vld [vmem:[%s7081_s4 + $0x258] sm:$0xff] }
 0xb3d   : > { %vm2230_vm7 = vcmp.eq.f32.partialorder %v2224_v54, 0.0  ;;  %5057 = vmatprep.subr.bf16.mxu1 %v5056_v22 }
 0xb3e   : > { %v2225_v7 = vadd.f32 %v2223_v6, %v2221_v1  ;;  %v4087_v1 = vld [vmem:[%s7081_s4 + $0x260] sm:$0xff] }
 0xb40   : > { %5401 = vrsqrt.f32 %v2225_v7  ;;  %vm2235_vm8 = vcmp.eq.f32.partialorder %v2225_v7, inf  ;;  %v2238_v50 = vand.u32 2147483648, %v2225_v7  ;;  %vm2237_vm10 = vcmp.eq.f32.partialorder %v2225_v7, 0.0  ;;  %5059 = vmatpush3.bf16.msra.mxu1 %v5056_v22 }
 0xb41   : > { %5061 = vmatprep.subr.bf16.mxu1 %v5060_v23 }
 0xb44   : > { %5063 = vmatpush3.bf16.msra.mxu1 %v5060_v23 }
 0xb45   : > { %5065 = vmatprep.subr.bf16.mxu1 %v5064_v21 }
 0xb46   : > { %v5400_v58 = vpop.eup %5399 }
 0xb47   : > { %v2227_v25 = vmul.f32 %v5400_v58, %v2224_v54 }
 0xb48   : > { %5067 = vmatpush3.bf16.msra.mxu1 %v5064_v21 }
 0xb49   : > { %v2229_v8 = vsel %vm2228_vm6, %v2224_v54, %v2227_v25  ;;  %5069 = vmatprep.subr.bf16.mxu1 %v5068_v63  ;;  %v4085_v54 = vld [vmem:[%s7081_s4 + $0x250] sm:$0xff] }
 0xb4a   : > { %v5402_v9 = vpop.eup %5401  ;;  %v2232_v10 = vsel %vm2230_vm7, %v2231_v20, %v2229_v8  ;;  %v5072_v6 = vpack.c.bf16 %v4086_v4, %v4085_v54  ;;  %v4089_v25 = vld [vmem:[%s7081_s4 + $0x270] sm:$0xff]  ;;  %v4090_v20 = vld [vmem:[%s7081_s4 + $0x278] sm:$0xff]  ;;  %v4092_v8 = vld [vmem:[%s7082_s5 + $0x108] sm:$0xff] }
 0xb4b   : > { %v2241_v11 = vsub.f32 %v2232_v10, %v2240_v5  ;;  %v2234_v29 = vmul.f32 %v5402_v9, %v2225_v7  ;;  %v4094_v9 = vld [vmem:[%s7082_s5 + $0x118] sm:$0xff]  ;;  %v4091_v10 = vld [vmem:[%s7082_s5 + $0x100] sm:$0xff] }
 0xb4c   : > { %5071 = vmatpush3.bf16.msra.mxu1 %v5068_v63 }
 0xb4d   : > { %vm2243_vm9 = vcmp.ge.f32.partialorder %v2241_v11, 0.0  ;;  %v2245_v24 = vmul.f32 0.01, %v2241_v11  ;;  %v2236_v13 = vsel %vm2235_vm8, %v2225_v7, %v2234_v29  ;;  %v4088_v7 = vld [vmem:[%s7081_s4 + $0x268] sm:$0xff]  ;;  %5073 = vmatprep.subr.bf16.mxu1 %v5072_v6  ;;  %v4093_v29 = vld [vmem:[%s7082_s5 + $0x110] sm:$0xff] }
 0xb4e   : > { %v2239_v26 = vsel %vm2237_vm10, %v2238_v50, %v2236_v13  ;;  %v5076_v58 = vpack.c.bf16 %v4088_v7, %v4087_v1  ;;  %v4096_v50 = vld [vmem:[%s7082_s5 + $0x128] sm:$0xff]  ;;  %v5086_v13 = vpack.c.bf16 %v4093_v29, %v4091_v10 }
 0xb4f   : > { %v6451_v14 = vsel %vm2243_vm9, %v2241_v11, %v2245_v24  ;;  %v2242_v15 = vsub.f32 %v2239_v26, %v2240_v5  ;;  %v5080_v5 = vpack.c.bf16 %v4090_v20, %v4089_v25  ;;  %v5084_v11 = vpack.c.bf16 %v4094_v9, %v4092_v8  ;;  %v4098_v24 = vld [vmem:[%s7082_s5 + $0x138] sm:$0xff] }
 0xb50   : > { %v2249_v51 = vmul.f32 %v6451_v14, %v6451_v14  ;;  %5075 = vmatpush3.bf16.msra.mxu1 %v5072_v6  ;;  %v5088_v26 = vpack.c.bf16 %v4098_v24, %v4096_v50 }
 0xb51   : > { %vm2244_vm11 = vcmp.ge.f32.partialorder %v2242_v15, 0.0  ;;  %v2246_v53 = vmul.f32 0.01, %v2242_v15  ;;  %5077 = vmatprep.subr.bf16.mxu1 %v5076_v58  ;;  %5085 = vmatprep.subr.bf16.mxu0 %v5084_v11 }
 0xb52   : > { %2251 = vadd.xlane.f32.xlu0 %v2249_v51  ;;  %v4097_v51 = vld [vmem:[%s7082_s5 + $0x130] sm:$0xff]  ;;  %5087 = vmatpush1.bf16.msra.mxu0 %v5086_v13 }
 0xb53   : > { %v6455_v18 = vsel %vm2244_vm11, %v2242_v15, %v2246_v53  ;;  %v4095_v15 = vld [vmem:[%s7082_s5 + $0x120] sm:$0xff]  ;;  %5089 = vmatprep.subr.bf16.mxu0 %v5088_v26 }
 0xb54   : > { %v2250_v19 = vmul.f32 %v6455_v18, %v6455_v18  ;;  %5079 = vmatpush3.bf16.msra.mxu1 %v5076_v58  ;;  %v5090_v53 = vpack.c.bf16 %v4097_v51, %v4095_v15  ;;  %v2491_v51 = vstv %s4074_s10  ;;  %s4255_s10 = sshll.u32 %s5642_s9, 8 }
 0xb55   : > { %5081 = vmatprep.subr.bf16.mxu1 %v5080_v5  ;;  %s7010_s19 = scalar_lea.hbm %s7083_s6, %s4255_s10 }
 0xb56   : > { %2253 = vadd.xlane.f32.xlu0 %v2250_v19  ;;  %5091 = vmatpush1.bf16.msra.mxu0 %v5090_v53 }
 0xb58   : > { %5083 = vmatpush3.bf16.msra.mxu1 %v5080_v5 }
 0xbdf   : > { %v2252_v19 = vpop.xlane.xlu0 %2251 }
 0xbe0   : > { %5403 = vrsqrt.f32 %v2252_v19  ;;  %vm2257_vm12 = vcmp.eq.f32.partialorder %v2252_v19, inf  ;;  %v2260_v56 = vand.u32 2147483648, %v2252_v19  ;;  %vm2259_vm13 = vcmp.eq.f32.partialorder %v2252_v19, 0.0 }
 0xbe3   : > { %v2254_v17 = vpop.xlane.xlu0 %2253 }
 0xbe4   : > { %5405 = vrsqrt.f32 %v2254_v17  ;;  %vm2264_vm14 = vcmp.eq.f32.partialorder %v2254_v17, inf  ;;  %v2267_v3 = vand.u32 2147483648, %v2254_v17  ;;  %vm2266_vm15 = vcmp.eq.f32.partialorder %v2254_v17, 0.0 }
 0xbea   : > { %v5404_v0 = vpop.eup %5403 }
 0xbeb   : > { %v2256_v55 = vmul.f32 %v5404_v0, %v2252_v19 }
 0xbed   : > { %v2258_v57 = vsel %vm2257_vm12, %v2252_v19, %v2256_v55 }
 0xbee   : > { %v5406_v22 = vpop.eup %5405  ;;  %v2261_v61 = vsel %vm2259_vm13, %v2260_v56, %v2258_v57 }
 0xbef   : > { %v2269_v59 = vadd.f32 1e-20, %v2261_v61  ;;  %v2263_v23 = vmul.f32 %v5406_v22, %v2254_v17 }
 0xbf1   : > { %5407 = vrcp.f32 %v2269_v59  ;;  %v2265_v60 = vsel %vm2264_vm14, %v2254_v17, %v2263_v23 }
 0xbf2   : > { %v2268_v21 = vsel %vm2266_vm15, %v2267_v3, %v2265_v60 }
 0xbf3   : > { %v2270_v16 = vadd.f32 1e-20, %v2268_v21  ;;  %v4104_v21 = vld [vmem:[%s7081_s4 + $0x280] sm:$0xff] }
 0xbf5   : > { %5409 = vrcp.f32 %v2270_v16  ;;  %v4105_v16 = vld [vmem:[%s7081_s4 + $0x288] sm:$0xff] }
 0xbfb   : > { %v5408_v62 = vpop.eup %5407 }
 0xbfc   : > { %v2275_v63 = vmul.f32 %v5408_v62, %v6451_v14  ;;  %v5092_v62 = vpack.c.bf16 %v4105_v16, %v4104_v21 }
 0xbfe   : > { %4072 = vst [vmem:[%s6254_s24 + $0x30] sm:$0xff] %v2275_v63  ;;  %4626 = vmatprep.mubr.f32.mxu1 %v2275_v63  ;;  %5093 = vmatprep.subr.bf16.mxu0 %v5092_v62 }
 0xbff   : > { %v5410_v54 = vpop.eup %5409 }
 0xc00   : > { %v2276_v4 = vmul.f32 %v5410_v54, %v6455_v18  ;;  %v4107_v54 = vld [vmem:[%s7081_s4 + $0x298] sm:$0xff] }
 0xc02   : > { %4073 = vst [vmem:[%s6254_s24 + $0x38] sm:$0xff] %v2276_v4  ;;  %4627 = vmatmul.mubr.f32.vlgmr.msra.gmra.mrb[32].mxu1 %v2276_v4 }
 0xc03   : > { %2703 = vmatprep.mubr.f32.mxu1 %v5566_v52 }
 0xcd5   : > { %v4628_v6 = vpop.f32.mrb[32].mxu1 }
 0xcd6   : > { %v2364_v1 = vpop.f32.mrb[33].mxu1 }
 0xcd7   : > { %4099 = vmatmul.mubr.msk.f32.vlgmr.msra.gmra.mrb[34].mxu0 %vm427_vm5, %v2364_v1  ;;  %v4109_v1 = vld [vmem:[%s7081_s4 + $0x2a8] sm:$0xff] }
 0xcd8   : > { %2458 = vmatprep.mubr.f32.mxu0 %v5566_v52  ;;  %5095 = vmatpush3.bf16.msra.mxu0 %v5092_v62 }
 0xcdb   : > { %4100 = vmatmul.mubr.msk.f32.gmra.mrb[36].mxu0 %vm427_vm5, %v4628_v6  ;;  %v4108_v6 = vld [vmem:[%s7081_s4 + $0x2a0] sm:$0xff] }
 0xdaa   : > { %v2454_v7 = vpop.f32.mrb[34].mxu0 }
 0xdab   : > { %v2465_v58 = vsub.f32 %v2275_v63, %v2454_v7  ;;  %v2456_v14 = vpop.f32.mrb[35].mxu0  ;;  %v4106_v63 = vld [vmem:[%s7081_s4 + $0x290] sm:$0xff]  ;;  %v5100_v7 = vpack.c.bf16 %v4109_v1, %v4108_v6 }
 0xdac   : > { %v2469_v25 = vadd.f32 %v2456_v14, %v6116_v2  ;;  %v4111_v14 = vld [vmem:[%s7081_s4 + $0x2b8] sm:$0xff] }
 0xdad   : > { %v2467_v20 = vadd.f32 %v2465_v58, %v6118_v27  ;;  %v4110_v58 = vld [vmem:[%s7081_s4 + $0x2b0] sm:$0xff] }
 0xdae   : > { %v2473_v18 = vmul.f32 %v2469_v25, %v2469_v25  ;;  %v2460_v5 = vpop.f32.mrb[36].mxu0  ;;  %v5104_v25 = vpack.c.bf16 %v4111_v14, %v4110_v58 }
 0xdaf   : > { %v2471_v8 = vmul.f32 %v2467_v20, %v2467_v20  ;;  %v2466_v9 = vsub.f32 %v2276_v4, %v2460_v5  ;;  %v2462_v10 = vpop.f32.mrb[37].mxu0  ;;  %v5096_v4 = vpack.c.bf16 %v4107_v54, %v4106_v63  ;;  %v4112_v20 = vld [vmem:[%s7081_s4 + $0x2c0] sm:$0xff] }
 0xdb0   : > { %v2470_v11 = vadd.f32 %v2462_v10, %v6124_v30 }
 0xdb1   : > { %v2475_v29 = vadd.f32 %v2473_v18, %v2471_v8  ;;  %v2468_v50 = vadd.f32 %v2466_v9, %v6126_v31  ;;  %5097 = vmatprep.subr.bf16.mxu0 %v5096_v4  ;;  %v4113_v18 = vld [vmem:[%s7081_s4 + $0x2c8] sm:$0xff]  ;;  %v4114_v8 = vld [vmem:[%s7081_s4 + $0x2d0] sm:$0xff]  ;;  %v4115_v9 = vld [vmem:[%s7081_s4 + $0x2d8] sm:$0xff] }
 0xdb2   : > { %v2474_v24 = vmul.f32 %v2470_v11, %v2470_v11  ;;  %5099 = vmatpush3.bf16.msra.mxu0 %v5096_v4  ;;  %v5108_v5 = vpack.c.bf16 %v4113_v18, %v4112_v20  ;;  %v5112_v10 = vpack.c.bf16 %v4115_v9, %v4114_v8  ;;  %v4116_v11 = vld [vmem:[%s7081_s4 + $0x2e0] sm:$0xff] }
 0xdb3   : > { %5411 = vrsqrt.f32 %v2475_v29  ;;  %v2472_v13 = vmul.f32 %v2468_v50, %v2468_v50  ;;  %vm2479_vm0 = vcmp.eq.f32.partialorder %v2475_v29, inf  ;;  %v2482_v27 = vand.u32 2147483648, %v2475_v29  ;;  %5101 = vmatprep.subr.bf16.mxu0 %v5100_v7 }
 0xdb4   : > { %vm2481_vm1 = vcmp.eq.f32.partialorder %v2475_v29, 0.0 }
 0xdb5   : > { %v2476_v26 = vadd.f32 %v2474_v24, %v2472_v13  ;;  %v4118_v24 = vld [vmem:[%s7081_s4 + $0x2f0] sm:$0xff]  ;;  %v4119_v13 = vld [vmem:[%s7081_s4 + $0x2f8] sm:$0xff] }
 0xdb6   : > { %5103 = vmatpush3.bf16.msra.mxu0 %v5100_v7 }
 0xdb7   : > { %5413 = vrsqrt.f32 %v2476_v26  ;;  %vm2486_vm2 = vcmp.eq.f32.partialorder %v2476_v26, inf  ;;  %v2489_v55 = vand.u32 2147483648, %v2476_v26  ;;  %vm2488_vm4 = vcmp.eq.f32.partialorder %v2476_v26, 0.0  ;;  %5105 = vmatprep.subr.bf16.mxu0 %v5104_v25 }
 0xdba   : > { %5107 = vmatpush3.bf16.msra.mxu0 %v5104_v25 }
 0xdbb   : > { %5109 = vmatprep.subr.bf16.mxu0 %v5108_v5 }
 0xdbd   : > { %v5412_v15 = vpop.eup %5411 }
 0xdbe   : > { %v2478_v2 = vmul.f32 %v5412_v15, %v2475_v29  ;;  %5111 = vmatpush3.bf16.msra.mxu0 %v5108_v5  ;;  %v4121_v15 = vld [vmem:[%s7082_s5 + $0x148] sm:$0xff] }
 0xdbf   : > { %5113 = vmatprep.subr.bf16.mxu0 %v5112_v10 }
 0xdc0   : > { %v2480_v53 = vsel %vm2479_vm0, %v2475_v29, %v2478_v2  ;;  %v4117_v29 = vld [vmem:[%s7081_s4 + $0x2e8] sm:$0xff]  ;;  %v4123_v2 = vld [vmem:[%s7082_s5 + $0x158] sm:$0xff] }
 0xdc1   : > { %v5414_v19 = vpop.eup %5413  ;;  %v2483_v17 = vsel %vm2481_vm1, %v2482_v27, %v2480_v53  ;;  %v5116_v50 = vpack.c.bf16 %v4117_v29, %v4116_v11  ;;  %v4120_v27 = vld [vmem:[%s7082_s5 + $0x140] sm:$0xff]  ;;  %v4122_v53 = vld [vmem:[%s7082_s5 + $0x150] sm:$0xff] }
 0xdc2   : > { %v2492_v0 = vsub.f32 %v2483_v17, %v2491_v51  ;;  %v2485_v30 = vmul.f32 %v5414_v19, %v2476_v26  ;;  %5115 = vmatpush3.bf16.msra.mxu0 %v5112_v10  ;;  %v4125_v19 = vld [vmem:[%s7082_s5 + $0x168] sm:$0xff]  ;;  %v4127_v17 = vld [vmem:[%s7082_s5 + $0x178] sm:$0xff] }
 0xdc3   : > { %5117 = vmatprep.subr.bf16.mxu0 %v5116_v50 }
 0xdc4   : > { %vm2494_vm3 = vcmp.ge.f32.partialorder %v2492_v0, 0.0  ;;  %v2496_v31 = vmul.f32 0.01, %v2492_v0  ;;  %v2487_v56 = vsel %vm2486_vm2, %v2476_v26, %v2485_v30  ;;  %v5120_v26 = vpack.c.bf16 %v4119_v13, %v4118_v24 }
 0xdc5   : > { %v2490_v57 = vsel %vm2488_vm4, %v2489_v55, %v2487_v56  ;;  %v5128_v30 = vpack.c.bf16 %v4127_v17, %v4125_v19  ;;  %v4124_v55 = vld [vmem:[%s7082_s5 + $0x160] sm:$0xff]  ;;  %v2742_v17 = vstv %s4103_s26  ;;  %s5501_s26 = scalar_lea.vmem %s5500_s25, 512 }
 0xdc6   : > { %v6543_v22 = vsel %vm2494_vm3, %v2492_v0, %v2496_v31  ;;  %v2493_v61 = vsub.f32 %v2490_v57, %v2491_v51  ;;  %5119 = vmatpush3.bf16.msra.mxu0 %v5116_v50  ;;  %v5124_v51 = vpack.c.bf16 %v4123_v2, %v4121_v15  ;;  %v5126_v0 = vpack.c.bf16 %v4122_v53, %v4120_v27  ;;  %v4126_v31 = vld [vmem:[%s7082_s5 + $0x170] sm:$0xff] }
 0xdc7   : > { %v2500_v59 = vmul.f32 %v6543_v22, %v6543_v22  ;;  %5121 = vmatprep.subr.bf16.mxu0 %v5120_v26  ;;  %v5130_v56 = vpack.c.bf16 %v4126_v31, %v4124_v55 }
 0xdc8   : > { %vm2495_vm6 = vcmp.ge.f32.partialorder %v2493_v61, 0.0  ;;  %v2497_v23 = vmul.f32 0.01, %v2493_v61  ;;  %5125 = vmatprep.subr.bf16.mxu1 %v5124_v51 }
 0xdc9   : > { %2502 = vadd.xlane.f32.xlu0 %v2500_v59  ;;  %5127 = vmatpush1.bf16.msra.mxu1 %v5126_v0 }
 0xdca   : > { %v6547_v3 = vsel %vm2495_vm6, %v2493_v61, %v2497_v23  ;;  %5123 = vmatpush3.bf16.msra.mxu0 %v5120_v26  ;;  %5129 = vmatprep.subr.bf16.mxu1 %v5128_v30 }
 0xdcb   : > { %v2501_v60 = vmul.f32 %v6547_v3, %v6547_v3 }
 0xdcd   : > { %2504 = vadd.xlane.f32.xlu0 %v2501_v60  ;;  %5131 = vmatpush1.bf16.msra.mxu1 %v5130_v56 }
 0xe56   : > { %v2503_v57 = vpop.xlane.xlu0 %2502 }
 0xe57   : > { %5415 = vrsqrt.f32 %v2503_v57  ;;  %vm2508_vm7 = vcmp.eq.f32.partialorder %v2503_v57, inf  ;;  %v2511_v60 = vand.u32 2147483648, %v2503_v57  ;;  %vm2510_vm8 = vcmp.eq.f32.partialorder %v2503_v57, 0.0 }
 0xe5a   : > { %v2505_v61 = vpop.xlane.xlu0 %2504 }
 0xe5b   : > { %5417 = vrsqrt.f32 %v2505_v61  ;;  %vm2515_vm9 = vcmp.eq.f32.partialorder %v2505_v61, inf  ;;  %v2518_v4 = vand.u32 2147483648, %v2505_v61  ;;  %vm2517_vm10 = vcmp.eq.f32.partialorder %v2505_v61, 0.0 }
 0xe61   : > { %v5416_v59 = vpop.eup %5415 }
 0xe62   : > { %v2507_v23 = vmul.f32 %v5416_v59, %v2503_v57 }
 0xe64   : > { %v2509_v21 = vsel %vm2508_vm7, %v2503_v57, %v2507_v23 }
 0xe65   : > { %v5418_v16 = vpop.eup %5417  ;;  %v2512_v62 = vsel %vm2510_vm8, %v2511_v60, %v2509_v21 }
 0xe66   : > { %v2520_v63 = vadd.f32 1e-20, %v2512_v62  ;;  %v2514_v54 = vmul.f32 %v5418_v16, %v2505_v61 }
 0xe68   : > { %5419 = vrcp.f32 %v2520_v63  ;;  %v2516_v6 = vsel %vm2515_vm9, %v2505_v61, %v2514_v54  ;;  %v4133_v63 = vld [vmem:[%s7081_s4 + $0x300] sm:$0xff]  ;;  %v4134_v54 = vld [vmem:[%s7081_s4 + $0x308] sm:$0xff] }
 0xe69   : > { %v2519_v1 = vsel %vm2517_vm10, %v2518_v4, %v2516_v6  ;;  %v5132_v4 = vpack.c.bf16 %v4134_v54, %v4133_v63  ;;  %v4135_v6 = vld [vmem:[%s7081_s4 + $0x310] sm:$0xff] }
 0xe6a   : > { %v2521_v7 = vadd.f32 1e-20, %v2519_v1  ;;  %v4136_v1 = vld [vmem:[%s7081_s4 + $0x318] sm:$0xff] }
 0xe6b   : > { %5133 = vmatprep.subr.bf16.mxu1 %v5132_v4 }
 0xe6c   : > { %5421 = vrcp.f32 %v2521_v7  ;;  %v5136_v7 = vpack.c.bf16 %v4136_v1, %v4135_v6 }
 0xe72   : > { %v5420_v58 = vpop.eup %5419 }
 0xe73   : > { %v2526_v14 = vmul.f32 %v5420_v58, %v6543_v22  ;;  %v4137_v58 = vld [vmem:[%s7081_s4 + $0x320] sm:$0xff] }
 0xe75   : > { %4101 = vst [vmem:[%s6254_s24 + $0x40] sm:$0xff] %v2526_v14  ;;  %4661 = vmatprep.mubr.f32.mxu0 %v2526_v14 }
 0xe76   : > { %v5422_v25 = vpop.eup %5421 }
 0xe77   : > { %v2527_v20 = vmul.f32 %v5422_v25, %v6547_v3 }
 0xe79   : > { %4102 = vst [vmem:[%s6254_s24 + $0x48] sm:$0xff] %v2527_v20  ;;  %4662 = vmatmul.mubr.f32.vlgmr.msra.gmra.mrb[38].mxu0 %v2527_v20 }
 0xe7a   : > { %2954 = vmatprep.mubr.f32.mxu0 %v5566_v52 }
 0xf4c   : > { %v4663_v18 = vpop.f32.mrb[38].mxu0 }
 0xf4d   : > { %v2615_v5 = vpop.f32.mrb[39].mxu0 }
 0xf4e   : > { %4128 = vmatmul.mubr.msk.f32.vlgmr.msra.gmra.mrb[34].mxu1 %vm427_vm5, %v2615_v5 }
 0xf4f   : > { %2709 = vmatprep.mubr.f32.mxu1 %v5566_v52  ;;  %5135 = vmatpush3.bf16.msra.mxu1 %v5132_v4 }
 0xf50   : > { %5137 = vmatprep.subr.bf16.mxu1 %v5136_v7 }
 0xf52   : > { %4129 = vmatmul.mubr.msk.f32.gmra.mrb[36].mxu1 %vm427_vm5, %v4663_v18  ;;  %v4140_v18 = vld [vmem:[%s7081_s4 + $0x338] sm:$0xff] }
 0xf53   : > { %5139 = vmatpush3.bf16.msra.mxu1 %v5136_v7 }
0x1021   : > { %v2705_v8 = vpop.f32.mrb[34].mxu1 }
0x1022   : > { %v2716_v9 = vsub.f32 %v2526_v14, %v2705_v8  ;;  %v2707_v22 = vpop.f32.mrb[35].mxu1  ;;  %v4138_v14 = vld [vmem:[%s7081_s4 + $0x328] sm:$0xff]  ;;  %v4141_v8 = vld [vmem:[%s7081_s4 + $0x340] sm:$0xff] }
0x1023   : > { %v2720_v10 = vadd.f32 %v2707_v22, %v6130_v33  ;;  %v5140_v25 = vpack.c.bf16 %v4138_v14, %v4137_v58 }
0x1024   : > { %v2718_v11 = vadd.f32 %v2716_v9, %v6120_v28  ;;  %v4142_v9 = vld [vmem:[%s7081_s4 + $0x348] sm:$0xff] }
0x1025   : > { %v2724_v3 = vmul.f32 %v2720_v10, %v2720_v10  ;;  %v2711_v29 = vpop.f32.mrb[36].mxu1  ;;  %5141 = vmatprep.subr.bf16.mxu1 %v5140_v25  ;;  %v5148_v22 = vpack.c.bf16 %v4142_v9, %v4141_v8  ;;  %v4143_v10 = vld [vmem:[%s7081_s4 + $0x350] sm:$0xff] }
0x1026   : > { %v2722_v50 = vmul.f32 %v2718_v11, %v2718_v11  ;;  %v2717_v24 = vsub.f32 %v2527_v20, %v2711_v29  ;;  %v2713_v13 = vpop.f32.mrb[37].mxu1  ;;  %5143 = vmatpush3.bf16.msra.mxu1 %v5140_v25  ;;  %v4139_v20 = vld [vmem:[%s7081_s4 + $0x330] sm:$0xff]  ;;  %v4144_v11 = vld [vmem:[%s7081_s4 + $0x358] sm:$0xff]  ;;  %v4145_v29 = vld [vmem:[%s7081_s4 + $0x360] sm:$0xff] }
0x1027   : > { %v2721_v26 = vadd.f32 %v2713_v13, %v6138_v37  ;;  %v5144_v5 = vpack.c.bf16 %v4140_v18, %v4139_v20  ;;  %v4147_v13 = vld [vmem:[%s7081_s4 + $0x370] sm:$0xff] }
0x1028   : > { %v2726_v15 = vadd.f32 %v2724_v3, %v2722_v50  ;;  %v2719_v2 = vadd.f32 %v2717_v24, %v6128_v32  ;;  %v5152_v3 = vpack.c.bf16 %v4144_v11, %v4143_v10  ;;  %v4146_v50 = vld [vmem:[%s7081_s4 + $0x368] sm:$0xff] }
0x1029   : > { %v2725_v27 = vmul.f32 %v2721_v26, %v2721_v26  ;;  %5145 = vmatprep.subr.bf16.mxu1 %v5144_v5  ;;  %v5156_v24 = vpack.c.bf16 %v4146_v50, %v4145_v29  ;;  %v4148_v26 = vld [vmem:[%s7081_s4 + $0x378] sm:$0xff] }
0x102a   : > { %5423 = vrsqrt.f32 %v2726_v15  ;;  %v2723_v51 = vmul.f32 %v2719_v2, %v2719_v2  ;;  %vm2730_vm11 = vcmp.eq.f32.partialorder %v2726_v15, inf  ;;  %v2733_v28 = vand.u32 2147483648, %v2726_v15  ;;  %5147 = vmatpush3.bf16.msra.mxu1 %v5144_v5  ;;  %v4150_v2 = vld [vmem:[%s7082_s5 + $0x188] sm:$0xff] }
0x102b   : > { %vm2732_vm12 = vcmp.eq.f32.partialorder %v2726_v15, 0.0  ;;  %5149 = vmatprep.subr.bf16.mxu1 %v5148_v22 }
0x102c   : > { %v2727_v53 = vadd.f32 %v2725_v27, %v2723_v51  ;;  %v4152_v27 = vld [vmem:[%s7082_s5 + $0x198] sm:$0xff]  ;;  %v4149_v51 = vld [vmem:[%s7082_s5 + $0x180] sm:$0xff] }
0x102e   : > { %5425 = vrsqrt.f32 %v2727_v53  ;;  %vm2737_vm13 = vcmp.eq.f32.partialorder %v2727_v53, inf  ;;  %v2740_v56 = vand.u32 2147483648, %v2727_v53  ;;  %vm2739_vm15 = vcmp.eq.f32.partialorder %v2727_v53, 0.0  ;;  %5151 = vmatpush3.bf16.msra.mxu1 %v5148_v22 }
0x102f   : > { %5153 = vmatprep.subr.bf16.mxu1 %v5152_v3 }
0x1032   : > { %5155 = vmatpush3.bf16.msra.mxu1 %v5152_v3 }
0x1033   : > { %5157 = vmatprep.subr.bf16.mxu1 %v5156_v24 }
0x1034   : > { %v5424_v19 = vpop.eup %5423 }
0x1035   : > { %v2729_v33 = vmul.f32 %v5424_v19, %v2726_v15  ;;  %v4151_v19 = vld [vmem:[%s7082_s5 + $0x190] sm:$0xff] }
0x1036   : > { %5159 = vmatpush3.bf16.msra.mxu1 %v5156_v24 }
0x1037   : > { %v2731_v0 = vsel %vm2730_vm11, %v2726_v15, %v2729_v33  ;;  %v5160_v15 = vpack.c.bf16 %v4148_v26, %v4147_v13  ;;  %v4154_v33 = vld [vmem:[%s7082_s5 + $0x1a8] sm:$0xff] }
0x1038   : > { %v5426_v30 = vpop.eup %5425  ;;  %v2734_v55 = vsel %vm2732_vm12, %v2733_v28, %v2731_v0  ;;  %v4156_v28 = vld [vmem:[%s7082_s5 + $0x1b8] sm:$0xff] }
0x1039   : > { %v2743_v31 = vsub.f32 %v2734_v55, %v2742_v17  ;;  %v2736_v37 = vmul.f32 %v5426_v30, %v2727_v53  ;;  %5161 = vmatprep.subr.bf16.mxu1 %v5160_v15  ;;  %v5168_v0 = vpack.c.bf16 %v4156_v28, %v4154_v33  ;;  %v4153_v30 = vld [vmem:[%s7082_s5 + $0x1a0] sm:$0xff]  ;;  %v4155_v55 = vld [vmem:[%s7082_s5 + $0x1b0] sm:$0xff] }
0x103a   : > { %5163 = vmatpush3.bf16.msra.mxu1 %v5160_v15 }
0x103b   : > { %vm2745_vm14 = vcmp.ge.f32.partialorder %v2743_v31, 0.0  ;;  %v2747_v32 = vmul.f32 0.01, %v2743_v31  ;;  %v2738_v57 = vsel %vm2737_vm13, %v2727_v53, %v2736_v37  ;;  %v5164_v53 = vpack.c.bf16 %v4152_v27, %v4150_v2 }
0x103c   : > { %v2741_v61 = vsel %vm2739_vm15, %v2740_v56, %v2738_v57 }
0x103d   : > { %v6635_v59 = vsel %vm2745_vm14, %v2743_v31, %v2747_v32  ;;  %v2744_v23 = vsub.f32 %v2741_v61, %v2742_v17  ;;  %v5166_v17 = vpack.c.bf16 %v4151_v19, %v4149_v51  ;;  %5165 = vmatprep.subr.bf16.mxu0 %v5164_v53  ;;  %v5170_v31 = vpack.c.bf16 %v4155_v55, %v4153_v30 }
0x103e   : > { %v2751_v60 = vmul.f32 %v6635_v59, %v6635_v59  ;;  %v2993_v51 = vstv %s4132_s22 }
0x103f   : > { %vm2746_vm0 = vcmp.ge.f32.partialorder %v2744_v23, 0.0  ;;  %v2748_v21 = vmul.f32 0.01, %v2744_v23  ;;  %5167 = vmatpush1.bf16.msra.mxu0 %v5166_v17 }
0x1040   : > { %2753 = vadd.xlane.f32.xlu0 %v2751_v60  ;;  %5169 = vmatprep.subr.bf16.mxu0 %v5168_v0 }
0x1041   : > { %v6639_v16 = vsel %vm2746_vm0, %v2744_v23, %v2748_v21 }
0x1042   : > { %v2752_v62 = vmul.f32 %v6639_v16, %v6639_v16 }
0x1043   : > { %5171 = vmatpush1.bf16.msra.mxu0 %v5170_v31 }
0x1044   : > { %2755 = vadd.xlane.f32.xlu1 %v2752_v62 }
0x10cd   : > { %v2754_v37 = vpop.xlane.xlu0 %2753 }
0x10ce   : > { %5427 = vrsqrt.f32 %v2754_v37  ;;  %vm2759_vm1 = vcmp.eq.f32.partialorder %v2754_v37, inf  ;;  %v2762_v61 = vand.u32 2147483648, %v2754_v37  ;;  %vm2761_vm2 = vcmp.eq.f32.partialorder %v2754_v37, 0.0 }
0x10d1   : > { %v2756_v56 = vpop.xlane.xlu1 %2755 }
0x10d2   : > { %5429 = vrsqrt.f32 %v2756_v56  ;;  %vm2766_vm3 = vcmp.eq.f32.partialorder %v2756_v56, inf  ;;  %v2769_v54 = vand.u32 2147483648, %v2756_v56  ;;  %vm2768_vm4 = vcmp.eq.f32.partialorder %v2756_v56, 0.0 }
0x10d8   : > { %v5428_v32 = vpop.eup %5427 }
0x10d9   : > { %v2758_v57 = vmul.f32 %v5428_v32, %v2754_v37 }
0x10db   : > { %v2760_v23 = vsel %vm2759_vm1, %v2754_v37, %v2758_v57 }
0x10dc   : > { %v5430_v60 = vpop.eup %5429  ;;  %v2763_v21 = vsel %vm2761_vm2, %v2762_v61, %v2760_v23  ;;  %v4162_v61 = vld [vmem:[%s7081_s4 + $0x380] sm:$0xff]  ;;  %v4163_v23 = vld [vmem:[%s7081_s4 + $0x388] sm:$0xff] }
0x10dd   : > { %v2771_v62 = vadd.f32 1e-20, %v2763_v21  ;;  %v2765_v63 = vmul.f32 %v5430_v60, %v2756_v56  ;;  %v5172_v60 = vpack.c.bf16 %v4163_v23, %v4162_v61  ;;  %v4164_v21 = vld [vmem:[%s7081_s4 + $0x390] sm:$0xff] }
0x10df   : > { %5431 = vrcp.f32 %v2771_v62  ;;  %v2767_v4 = vsel %vm2766_vm3, %v2756_v56, %v2765_v63  ;;  %5173 = vmatprep.subr.bf16.mxu0 %v5172_v60  ;;  %v4165_v62 = vld [vmem:[%s7081_s4 + $0x398] sm:$0xff] }
0x10e0   : > { %v2770_v6 = vsel %vm2768_vm4, %v2769_v54, %v2767_v4  ;;  %v5176_v63 = vpack.c.bf16 %v4165_v62, %v4164_v21  ;;  %v4166_v54 = vld [vmem:[%s7081_s4 + $0x3a0] sm:$0xff]  ;;  %v4167_v4 = vld [vmem:[%s7081_s4 + $0x3a8] sm:$0xff] }
0x10e1   : > { %v2772_v1 = vadd.f32 1e-20, %v2770_v6  ;;  %v5180_v6 = vpack.c.bf16 %v4167_v4, %v4166_v54 }
0x10e3   : > { %5433 = vrcp.f32 %v2772_v1  ;;  %v4168_v1 = vld [vmem:[%s7081_s4 + $0x3b0] sm:$0xff] }
0x10e9   : > { %v5432_v7 = vpop.eup %5431 }
0x10ea   : > { %v2777_v58 = vmul.f32 %v5432_v7, %v6635_v59  ;;  %v4169_v7 = vld [vmem:[%s7081_s4 + $0x3b8] sm:$0xff] }
0x10ec   : > { %4130 = vst [vmem:[%s6254_s24 + $0x50] sm:$0xff] %v2777_v58  ;;  %4696 = vmatprep.mubr.f32.mxu1 %v2777_v58 }
0x10ed   : > { %v5434_v14 = vpop.eup %5433 }
0x10ee   : > { %v2778_v25 = vmul.f32 %v5434_v14, %v6639_v16  ;;  %v4170_v14 = vld [vmem:[%s7081_s4 + $0x3c0] sm:$0xff] }
0x10f0   : > { %4131 = vst [vmem:[%s6254_s24 + $0x58] sm:$0xff] %v2778_v25  ;;  %4697 = vmatmul.mubr.f32.vlgmr.msra.gmra.mrb[38].mxu1 %v2778_v25 }
0x10f1   : > { %3205 = vmatprep.mubr.f32.mxu1 %v5566_v52 }
0x11c3   : > { %v4698_v20 = vpop.f32.mrb[38].mxu1 }
0x11c4   : > { %v2866_v18 = vpop.f32.mrb[39].mxu1 }
0x11c5   : > { %4157 = vmatmul.mubr.msk.f32.vlgmr.msra.gmra.mrb[40].mxu0 %vm427_vm5, %v2866_v18  ;;  %v4172_v18 = vld [vmem:[%s7081_s4 + $0x3d0] sm:$0xff] }
0x11c6   : > { %2960 = vmatprep.mubr.f32.mxu0 %v5566_v52  ;;  %5175 = vmatpush3.bf16.msra.mxu0 %v5172_v60 }
0x11c7   : > { %5177 = vmatprep.subr.bf16.mxu0 %v5176_v63 }
0x11c9   : > { %4158 = vmatmul.mubr.msk.f32.gmra.mrb[42].mxu0 %vm427_vm5, %v4698_v20 }
0x11ca   : > { %5179 = vmatpush3.bf16.msra.mxu0 %v5176_v63 }
0x11cb   : > { %5181 = vmatprep.subr.bf16.mxu0 %v5180_v6 }
0x11ce   : > { %5183 = vmatpush3.bf16.msra.mxu0 %v5180_v6 }
0x1298   : > { %v2956_v5 = vpop.f32.mrb[40].mxu0 }
0x1299   : > { %v2967_v8 = vsub.f32 %v2777_v58, %v2956_v5  ;;  %v2958_v59 = vpop.f32.mrb[41].mxu0  ;;  %v5184_v58 = vpack.c.bf16 %v4169_v7, %v4168_v1  ;;  %v4173_v5 = vld [vmem:[%s7081_s4 + $0x3d8] sm:$0xff] }
0x129a   : > { %v2971_v9 = vadd.f32 %v2958_v59, %v6132_v34  ;;  %v4174_v59 = vld [vmem:[%s7081_s4 + $0x3e0] sm:$0xff] }
0x129b   : > { %v2969_v22 = vadd.f32 %v2967_v8, %v6134_v35  ;;  %5185 = vmatprep.subr.bf16.mxu0 %v5184_v58  ;;  %v5192_v8 = vpack.c.bf16 %v4173_v5, %v4172_v18 }
0x129c   : > { %v2975_v16 = vmul.f32 %v2971_v9, %v2971_v9  ;;  %v2962_v10 = vpop.f32.mrb[42].mxu0  ;;  %5187 = vmatpush3.bf16.msra.mxu0 %v5184_v58  ;;  %v4175_v9 = vld [vmem:[%s7081_s4 + $0x3e8] sm:$0xff] }
0x129d   : > { %v2973_v11 = vmul.f32 %v2969_v22, %v2969_v22  ;;  %v2968_v3 = vsub.f32 %v2778_v25, %v2962_v10  ;;  %v2964_v29 = vpop.f32.mrb[43].mxu0  ;;  %v4171_v25 = vld [vmem:[%s7081_s4 + $0x3c8] sm:$0xff]  ;;  %v5196_v22 = vpack.c.bf16 %v4175_v9, %v4174_v59  ;;  %v4177_v10 = vld [vmem:[%s7081_s4 + $0x3f8] sm:$0xff] }
0x129e   : > { %v2972_v50 = vadd.f32 %v2964_v29, %v6140_v38  ;;  %v5188_v20 = vpack.c.bf16 %v4171_v25, %v4170_v14  ;;  %v4181_v29 = vld [vmem:[%s7082_s5 + $0x1d8] sm:$0xff] }
0x129f   : > { %v2977_v24 = vadd.f32 %v2975_v16, %v2973_v11  ;;  %v2970_v13 = vadd.f32 %v2968_v3, %v6142_v39  ;;  %v4176_v16 = vld [vmem:[%s7081_s4 + $0x3f0] sm:$0xff]  ;;  %v4179_v3 = vld [vmem:[%s7082_s5 + $0x1c8] sm:$0xff] }
0x12a0   : > { %v2976_v26 = vmul.f32 %v2972_v50, %v2972_v50  ;;  %5189 = vmatprep.subr.bf16.mxu0 %v5188_v20  ;;  %v5200_v11 = vpack.c.bf16 %v4177_v10, %v4176_v16  ;;  %v4178_v50 = vld [vmem:[%s7082_s5 + $0x1c0] sm:$0xff]  ;;  %v3244_v10 = vstv %s4161_s18 }
0x12a1   : > { %5435 = vrsqrt.f32 %v2977_v24  ;;  %v2974_v15 = vmul.f32 %v2970_v13, %v2970_v13  ;;  %vm2981_vm6 = vcmp.eq.f32.partialorder %v2977_v24, inf  ;;  %v2984_v35 = vand.u32 2147483648, %v2977_v24  ;;  %5191 = vmatpush3.bf16.msra.mxu0 %v5188_v20  ;;  %v4180_v13 = vld [vmem:[%s7082_s5 + $0x1d0] sm:$0xff] }
0x12a2   : > { %vm2983_vm7 = vcmp.eq.f32.partialorder %v2977_v24, 0.0  ;;  %5193 = vmatprep.subr.bf16.mxu0 %v5192_v8 }
0x12a3   : > { %v2978_v2 = vadd.f32 %v2976_v26, %v2974_v15  ;;  %v4183_v26 = vld [vmem:[%s7082_s5 + $0x1e8] sm:$0xff]  ;;  %v4185_v15 = vld [vmem:[%s7082_s5 + $0x1f8] sm:$0xff] }
0x12a5   : > { %5437 = vrsqrt.f32 %v2978_v2  ;;  %vm2988_vm8 = vcmp.eq.f32.partialorder %v2978_v2, inf  ;;  %v2991_v17 = vand.u32 2147483648, %v2978_v2  ;;  %vm2990_vm10 = vcmp.eq.f32.partialorder %v2978_v2, 0.0  ;;  %5195 = vmatpush3.bf16.msra.mxu0 %v5192_v8 }
0x12a6   : > { %5197 = vmatprep.subr.bf16.mxu0 %v5196_v22 }
0x12a9   : > { %5199 = vmatpush3.bf16.msra.mxu0 %v5196_v22 }
0x12aa   : > { %5201 = vmatprep.subr.bf16.mxu0 %v5200_v11 }
0x12ab   : > { %v5436_v27 = vpop.eup %5435 }
0x12ac   : > { %v2980_v34 = vmul.f32 %v5436_v27, %v2977_v24  ;;  %v5208_v27 = vpack.c.bf16 %v4185_v15, %v4183_v26 }
0x12ad   : > { %5203 = vmatpush3.bf16.msra.mxu0 %v5200_v11 }
0x12ae   : > { %v2982_v53 = vsel %vm2981_vm6, %v2977_v24, %v2980_v34  ;;  %v5204_v24 = vpack.c.bf16 %v4181_v29, %v4179_v3  ;;  %v4182_v34 = vld [vmem:[%s7082_s5 + $0x1e0] sm:$0xff] }
0x12af   : > { %v5438_v19 = vpop.eup %5437  ;;  %v2985_v33 = vsel %vm2983_vm7, %v2984_v35, %v2982_v53  ;;  %v4184_v35 = vld [vmem:[%s7082_s5 + $0x1f0] sm:$0xff] }
0x12b0   : > { %v2994_v28 = vsub.f32 %v2985_v33, %v2993_v51  ;;  %v2987_v38 = vmul.f32 %v5438_v19, %v2978_v2  ;;  %5205 = vmatprep.subr.bf16.mxu1 %v5204_v24 }
0x12b2   : > { %vm2996_vm9 = vcmp.ge.f32.partialorder %v2994_v28, 0.0  ;;  %v2998_v39 = vmul.f32 0.01, %v2994_v28  ;;  %v2989_v0 = vsel %vm2988_vm8, %v2978_v2, %v2987_v38  ;;  %v5206_v2 = vpack.c.bf16 %v4180_v13, %v4178_v50 }
0x12b3   : > { %v2992_v30 = vsel %vm2990_vm10, %v2991_v17, %v2989_v0 }
0x12b4   : > { %v6727_v55 = vsel %vm2996_vm9, %v2994_v28, %v2998_v39  ;;  %v2995_v31 = vsub.f32 %v2992_v30, %v2993_v51  ;;  %5207 = vmatpush1.bf16.msra.mxu1 %v5206_v2  ;;  %v5210_v51 = vpack.c.bf16 %v4184_v35, %v4182_v34 }
0x12b5   : > { %v3002_v37 = vmul.f32 %v6727_v55, %v6727_v55  ;;  %5209 = vmatprep.subr.bf16.mxu1 %v5208_v27 }
0x12b6   : > { %vm2997_vm11 = vcmp.ge.f32.partialorder %v2995_v31, 0.0  ;;  %v2999_v56 = vmul.f32 0.01, %v2995_v31 }
0x12b7   : > { %3004 = vadd.xlane.f32.xlu0 %v3002_v37 }
0x12b8   : > { %v6731_v32 = vsel %vm2997_vm11, %v2995_v31, %v2999_v56  ;;  %5211 = vmatpush1.bf16.msra.mxu1 %v5210_v51 }
0x12b9   : > { %v3003_v57 = vmul.f32 %v6731_v32, %v6731_v32 }
0x12bb   : > { %3006 = vadd.xlane.f32.xlu1 %v3003_v57 }
0x1344   : > { %v3005_v53 = vpop.xlane.xlu0 %3004 }
0x1345   : > { %5439 = vrsqrt.f32 %v3005_v53  ;;  %vm3010_vm12 = vcmp.eq.f32.partialorder %v3005_v53, inf  ;;  %v3013_v38 = vand.u32 2147483648, %v3005_v53  ;;  %vm3012_vm13 = vcmp.eq.f32.partialorder %v3005_v53, 0.0 }
0x1348   : > { %v3007_v19 = vpop.xlane.xlu1 %3006 }
0x1349   : > { %5441 = vrsqrt.f32 %v3007_v19  ;;  %vm3017_vm14 = vcmp.eq.f32.partialorder %v3007_v19, inf  ;;  %v3020_v37 = vand.u32 2147483648, %v3007_v19  ;;  %vm3019_vm15 = vcmp.eq.f32.partialorder %v3007_v19, 0.0 }
0x134f   : > { %v5440_v33 = vpop.eup %5439 }
0x1350   : > { %v3009_v28 = vmul.f32 %v5440_v33, %v3005_v53 }
0x1352   : > { %v3011_v17 = vsel %vm3010_vm12, %v3005_v53, %v3009_v28  ;;  %v4191_v53 = vld [vmem:[%s7081_s4 + $0x400] sm:$0xff]  ;;  %v4193_v28 = vld [vmem:[%s7081_s4 + $0x410] sm:$0xff] }
0x1353   : > { %v5442_v39 = vpop.eup %5441  ;;  %v3014_v0 = vsel %vm3012_vm13, %v3013_v38, %v3011_v17  ;;  %v4194_v38 = vld [vmem:[%s7081_s4 + $0x418] sm:$0xff] }
0x1354   : > { %v3022_v30 = vadd.f32 1e-20, %v3014_v0  ;;  %v3016_v31 = vmul.f32 %v5442_v39, %v3007_v19  ;;  %v5216_v17 = vpack.c.bf16 %v4194_v38, %v4193_v28  ;;  %v4195_v39 = vld [vmem:[%s7081_s4 + $0x420] sm:$0xff]  ;;  %v4196_v0 = vld [vmem:[%s7081_s4 + $0x428] sm:$0xff] }
0x1356   : > { %5443 = vrcp.f32 %v3022_v30  ;;  %v3018_v56 = vsel %vm3017_vm14, %v3007_v19, %v3016_v31  ;;  %v4192_v19 = vld [vmem:[%s7081_s4 + $0x408] sm:$0xff]  ;;  %v5220_v30 = vpack.c.bf16 %v4196_v0, %v4195_v39  ;;  %v4197_v31 = vld [vmem:[%s7081_s4 + $0x430] sm:$0xff] }
0x1357   : > { %v3021_v57 = vsel %vm3019_vm15, %v3020_v37, %v3018_v56  ;;  %v5212_v33 = vpack.c.bf16 %v4192_v19, %v4191_v53  ;;  %v4198_v37 = vld [vmem:[%s7081_s4 + $0x438] sm:$0xff] }
0x1358   : > { %v3023_v61 = vadd.f32 1e-20, %v3021_v57  ;;  %v5224_v56 = vpack.c.bf16 %v4198_v37, %v4197_v31  ;;  %v4199_v57 = vld [vmem:[%s7081_s4 + $0x440] sm:$0xff] }
0x1359   : > { %5213 = vmatprep.subr.bf16.mxu1 %v5212_v33 }
0x135a   : > { %5445 = vrcp.f32 %v3023_v61  ;;  %v4200_v61 = vld [vmem:[%s7081_s4 + $0x448] sm:$0xff] }
0x1360   : > { %v5444_v23 = vpop.eup %5443 }
0x1361   : > { %v3028_v60 = vmul.f32 %v5444_v23, %v6727_v55  ;;  %v5228_v23 = vpack.c.bf16 %v4200_v61, %v4199_v57 }
0x1363   : > { %4159 = vst [vmem:[%s6254_s24 + $0x60] sm:$0xff] %v3028_v60  ;;  %4731 = vmatprep.mubr.f32.mxu0 %v3028_v60 }
0x1364   : > { %v5446_v21 = vpop.eup %5445 }
0x1365   : > { %v3029_v62 = vmul.f32 %v5446_v21, %v6731_v32  ;;  %v4202_v21 = vld [vmem:[%s7081_s4 + $0x458] sm:$0xff] }
0x1367   : > { %4160 = vst [vmem:[%s6254_s24 + $0x68] sm:$0xff] %v3029_v62  ;;  %4732 = vmatmul.mubr.f32.vlgmr.msra.gmra.mrb[44].mxu0 %v3029_v62 }
0x1368   : > { %3456 = vmatprep.mubr.f32.mxu0 %v5566_v52 }
0x143a   : > { %v4733_v63 = vpop.f32.mrb[44].mxu0 }
0x143b   : > { %v3117_v54 = vpop.f32.mrb[45].mxu0 }
0x143c   : > { %4186 = vmatmul.mubr.msk.f32.vlgmr.msra.gmra.mrb[40].mxu1 %vm427_vm5, %v3117_v54  ;;  %v4204_v54 = vld [vmem:[%s7081_s4 + $0x468] sm:$0xff] }
0x143d   : > { %3211 = vmatprep.mubr.f32.mxu1 %v5566_v52  ;;  %5215 = vmatpush3.bf16.msra.mxu1 %v5212_v33 }
0x143e   : > { %5217 = vmatprep.subr.bf16.mxu1 %v5216_v17 }
0x1440   : > { %4187 = vmatmul.mubr.msk.f32.gmra.mrb[42].mxu1 %vm427_vm5, %v4733_v63  ;;  %v4203_v63 = vld [vmem:[%s7081_s4 + $0x460] sm:$0xff] }
0x1441   : > { %5219 = vmatpush3.bf16.msra.mxu1 %v5216_v17 }
0x1442   : > { %5221 = vmatprep.subr.bf16.mxu1 %v5220_v30 }
0x1445   : > { %5223 = vmatpush3.bf16.msra.mxu1 %v5220_v30 }
0x1446   : > { %5225 = vmatprep.subr.bf16.mxu1 %v5224_v56 }
0x1449   : > { %5227 = vmatpush3.bf16.msra.mxu1 %v5224_v56 }
0x144a   : > { %5229 = vmatprep.subr.bf16.mxu1 %v5228_v23 }
0x144d   : > { %5231 = vmatpush3.bf16.msra.mxu1 %v5228_v23 }
0x150f   : > { %v3207_v4 = vpop.f32.mrb[40].mxu1 }
0x1510   : > { %v3218_v6 = vsub.f32 %v3028_v60, %v3207_v4  ;;  %v3209_v55 = vpop.f32.mrb[41].mxu1  ;;  %v4201_v60 = vld [vmem:[%s7081_s4 + $0x450] sm:$0xff]  ;;  %v5236_v4 = vpack.c.bf16 %v4204_v54, %v4203_v63  ;;  %v3495_v63 = vstv %s4190_s12  ;;  %s272_s12 = scalar_lea.vmem [#allocation4], %s3958_s28 }
0x1511   : > { %v3222_v1 = vadd.f32 %v3209_v55, %v6146_v41  ;;  %v4206_v55 = vld [vmem:[%s7081_s4 + $0x478] sm:$0xff]  ;;  %s3803_s13 = sshll.u32 %s272_s12, 4  ;;  %s7012_s13 = int_to_ptr.vmem [resolvable:$true] %s3803_s13 }
0x1512   : > { %v3220_v7 = vadd.f32 %v3218_v6, %v6136_v36  ;;  %v4205_v6 = vld [vmem:[%s7081_s4 + $0x470] sm:$0xff]  ;;  %s5495_s22 = scalar_lea.vmem %s7012_s13, 256  ;;  %p5502_p5 = scmp.lt.s32.totalorder %s7012_s13, %s5500_s25 }
0x1513   : > { %v3226_v32 = vmul.f32 %v3222_v1, %v3222_v1  ;;  %v3213_v58 = vpop.f32.mrb[42].mxu1  ;;  %v5240_v1 = vpack.c.bf16 %v4206_v55, %v4205_v6  ;;  %p5496_p2 = scmp.ne.s32.totalorder %s7012_s13, %s5495_s22  ;;  %p5503_p6 = scmp.lt.s32.totalorder %s5501_s26, %s5495_s22 }
0x1514   : > { %v3224_v14 = vmul.f32 %v3220_v7, %v3220_v7  ;;  %v3219_v25 = vsub.f32 %v3029_v62, %v3213_v58  ;;  %v3215_v20 = vpop.f32.mrb[43].mxu1  ;;  %v5232_v62 = vpack.c.bf16 %v4202_v21, %v4201_v60  ;;  %v4208_v7 = vld [vmem:[%s7082_s5 + $0x208] sm:$0xff]  ;;  %v4207_v58 = vld [vmem:[%s7082_s5 + $0x200] sm:$0xff] }
0x1515   : > { %v3223_v18 = vadd.f32 %v3215_v20, %v6154_v45  ;;  %v4212_v20 = vld [vmem:[%s7082_s5 + $0x228] sm:$0xff]  ;;  %p5497_p3 = pnand %p5496_p2, %p5659_p10  ;;  %p5504_p7 = por %p5503_p6, %p5502_p5 }
0x1516   : > { %v3228_v5 = vadd.f32 %v3226_v32, %v3224_v14  ;;  %v3221_v8 = vadd.f32 %v3219_v25, %v6144_v40  ;;  %5233 = vmatprep.subr.bf16.mxu1 %v5232_v62  ;;  %v4210_v32 = vld [vmem:[%s7082_s5 + $0x218] sm:$0xff]  ;;  %v4209_v25 = vld [vmem:[%s7082_s5 + $0x210] sm:$0xff] }
0x1517   : > { %v3227_v59 = vmul.f32 %v3223_v18, %v3223_v18  ;;  %5235 = vmatpush3.bf16.msra.mxu1 %v5232_v62  ;;  %v5244_v14 = vpack.c.bf16 %v4210_v32, %v4208_v7  ;;  %v4214_v18 = vld [vmem:[%s7082_s5 + $0x238] sm:$0xff]  ;;  %p5498_p4 = pneg %p5497_p3 }
0x1518   : > { %5447 = vrsqrt.f32 %v3228_v5  ;;  %v3225_v9 = vmul.f32 %v3221_v8, %v3221_v8  ;;  %vm3232_vm0 = vcmp.eq.f32.partialorder %v3228_v5, inf  ;;  %v3235_v36 = vand.u32 2147483648, %v3228_v5  ;;  %5237 = vmatprep.subr.bf16.mxu1 %v5236_v4 }
0x1519   : > { %vm3234_vm1 = vcmp.eq.f32.partialorder %v3228_v5, 0.0  ;;  %v5248_v8 = vpack.c.bf16 %v4214_v18, %v4212_v20  ;;  %5245 = vmatprep.subr.bf16.mxu0 %v5244_v14  ;;  %p5505_p8 = pnand %p5504_p7, %p5498_p4 }
0x151a   : > { %v3229_v22 = vadd.f32 %v3227_v59, %v3225_v9  ;;  %v4211_v59 = vld [vmem:[%s7082_s5 + $0x220] sm:$0xff]  ;;  %v4213_v9 = vld [vmem:[%s7082_s5 + $0x230] sm:$0xff] }
0x151b   : > { %5239 = vmatpush3.bf16.msra.mxu1 %v5236_v4 }
0x151c   : > { %5449 = vrsqrt.f32 %v3229_v22  ;;  %vm3239_vm2 = vcmp.eq.f32.partialorder %v3229_v22, inf  ;;  %v3242_v24 = vand.u32 2147483648, %v3229_v22  ;;  %vm3241_vm4 = vcmp.eq.f32.partialorder %v3229_v22, 0.0  ;;  %5241 = vmatprep.subr.bf16.mxu1 %v5240_v1 }
0x151f   : > { %5243 = vmatpush3.bf16.msra.mxu1 %v5240_v1 }
0x1522   : > { %v5448_v16 = vpop.eup %5447 }
0x1523   : > { %v3231_v41 = vmul.f32 %v5448_v16, %v3228_v5 }
0x1525   : > { %v3233_v11 = vsel %vm3232_vm0, %v3228_v5, %v3231_v41  ;;  %v5246_v5 = vpack.c.bf16 %v4209_v25, %v4207_v58 }
0x1526   : > { %v5450_v3 = vpop.eup %5449  ;;  %v3236_v29 = vsel %vm3234_vm1, %v3235_v36, %v3233_v11 }
0x1527   : > { %v3245_v50 = vsub.f32 %v3236_v29, %v3244_v10  ;;  %v3238_v45 = vmul.f32 %v5450_v3, %v3229_v22  ;;  %5247 = vmatpush1.bf16.msra.mxu0 %v5246_v5 }
0x1528   : > { %5249 = vmatprep.subr.bf16.mxu0 %v5248_v8  ;;  %v4220_v8 = vld [vmem:[%s7081_s4 + $0x480] sm:$0xff] }
0x1529   : > { %vm3247_vm3 = vcmp.ge.f32.partialorder %v3245_v50, 0.0  ;;  %v3249_v40 = vmul.f32 0.01, %v3245_v50  ;;  %v3240_v13 = vsel %vm3239_vm2, %v3229_v22, %v3238_v45  ;;  %v5250_v22 = vpack.c.bf16 %v4213_v9, %v4211_v59  ;;  %v4221_v59 = vld [vmem:[%s7081_s4 + $0x488] sm:$0xff] }
0x152a   : > { %v3243_v26 = vsel %vm3241_vm4, %v3242_v24, %v3240_v13  ;;  %v5252_v9 = vpack.c.bf16 %v4221_v59, %v4220_v8 }
0x152b   : > { %v6819_v15 = vsel %vm3247_vm3, %v3245_v50, %v3249_v40  ;;  %v3246_v2 = vsub.f32 %v3243_v26, %v3244_v10  ;;  %5251 = vmatpush1.bf16.msra.mxu0 %v5250_v22  ;;  %v4222_v22 = vld [vmem:[%s7081_s4 + $0x490] sm:$0xff] }
0x152c   : > { %v3253_v27 = vmul.f32 %v6819_v15, %v6819_v15  ;;  %5253 = vmatprep.subr.bf16.mxu0 %v5252_v9 }
0x152d   : > { %vm3248_vm6 = vcmp.ge.f32.partialorder %v3246_v2, 0.0  ;;  %v3250_v34 = vmul.f32 0.01, %v3246_v2 }
0x152e   : > { %3255 = vadd.xlane.f32.xlu0 %v3253_v27 }
0x152f   : > { %v6823_v35 = vsel %vm3248_vm6, %v3246_v2, %v3250_v34 }
0x1530   : > { %v3254_v51 = vmul.f32 %v6823_v35, %v6823_v35 }
0x1532   : > { %3257 = vadd.xlane.f32.xlu1 %v3254_v51 }
0x15bb   : > { %v3256_v16 = vpop.xlane.xlu0 %3255 }
0x15bc   : > { %5451 = vrsqrt.f32 %v3256_v16  ;;  %vm3261_vm7 = vcmp.eq.f32.partialorder %v3256_v16, inf  ;;  %v3264_v11 = vand.u32 2147483648, %v3256_v16  ;;  %vm3263_vm8 = vcmp.eq.f32.partialorder %v3256_v16, 0.0 }
0x15bf   : > { %v3258_v41 = vpop.xlane.xlu1 %3257 }
0x15c0   : > { %5453 = vrsqrt.f32 %v3258_v41  ;;  %vm3268_vm9 = vcmp.eq.f32.partialorder %v3258_v41, inf  ;;  %v3271_v40 = vand.u32 2147483648, %v3258_v41  ;;  %vm3270_vm10 = vcmp.eq.f32.partialorder %v3258_v41, 0.0 }
0x15c6   : > { %v5452_v36 = vpop.eup %5451 }
0x15c7   : > { %v3260_v10 = vmul.f32 %v5452_v36, %v3256_v16  ;;  %v4224_v36 = vld [vmem:[%s7081_s4 + $0x4a0] sm:$0xff] }
0x15c9   : > { %v3262_v3 = vsel %vm3261_vm7, %v3256_v16, %v3260_v10  ;;  %v4223_v16 = vld [vmem:[%s7081_s4 + $0x498] sm:$0xff]  ;;  %v4225_v10 = vld [vmem:[%s7081_s4 + $0x4a8] sm:$0xff] }
0x15ca   : > { %v5454_v29 = vpop.eup %5453  ;;  %v3265_v50 = vsel %vm3263_vm8, %v3264_v11, %v3262_v3  ;;  %v5260_v11 = vpack.c.bf16 %v4225_v10, %v4224_v36  ;;  %v4226_v3 = vld [vmem:[%s7081_s4 + $0x4b0] sm:$0xff] }
0x15cb   : > { %v3273_v45 = vadd.f32 1e-20, %v3265_v50  ;;  %v3267_v24 = vmul.f32 %v5454_v29, %v3258_v41  ;;  %v4227_v29 = vld [vmem:[%s7081_s4 + $0x4b8] sm:$0xff] }
0x15cc   : > { %v5264_v50 = vpack.c.bf16 %v4227_v29, %v4226_v3 }
0x15cd   : > { %5455 = vrcp.f32 %v3273_v45  ;;  %v3269_v13 = vsel %vm3268_vm9, %v3258_v41, %v3267_v24  ;;  %v5256_v41 = vpack.c.bf16 %v4223_v16, %v4222_v22  ;;  %v4228_v45 = vld [vmem:[%s7081_s4 + $0x4c0] sm:$0xff]  ;;  %v4229_v24 = vld [vmem:[%s7081_s4 + $0x4c8] sm:$0xff] }
0x15ce   : > { %v3272_v26 = vsel %vm3270_vm10, %v3271_v40, %v3269_v13  ;;  %v5268_v40 = vpack.c.bf16 %v4229_v24, %v4228_v45  ;;  %v4230_v13 = vld [vmem:[%s7081_s4 + $0x4d0] sm:$0xff]  ;;  %v3746_v24 = vstv %s4219_s27 }
0x15cf   : > { %v3274_v2 = vadd.f32 1e-20, %v3272_v26  ;;  %v4231_v26 = vld [vmem:[%s7081_s4 + $0x4d8] sm:$0xff] }
0x15d1   : > { %5457 = vrcp.f32 %v3274_v2  ;;  %v5272_v2 = vpack.c.bf16 %v4231_v26, %v4230_v13 }
0x15d7   : > { %v5456_v27 = vpop.eup %5455 }
0x15d8   : > { %v3279_v34 = vmul.f32 %v5456_v27, %v6819_v15  ;;  %v4232_v27 = vld [vmem:[%s7081_s4 + $0x4e0] sm:$0xff] }
0x15da   : > { %4188 = vst [vmem:[%s6254_s24 + $0x70] sm:$0xff] %v3279_v34  ;;  %4766 = vmatprep.mubr.f32.mxu1 %v3279_v34 }
0x15db   : > { %v5458_v51 = vpop.eup %5457 }
0x15dc   : > { %v3280_v53 = vmul.f32 %v5458_v51, %v6823_v35 }
0x15de   : > { %4189 = vst [vmem:[%s6254_s24 + $0x78] sm:$0xff] %v3280_v53  ;;  %4767 = vmatmul.mubr.f32.vlgmr.msra.gmra.mrb[44].mxu1 %v3280_v53 }
0x15df   : > { %3707 = vmatprep.mubr.f32.mxu1 %v5566_v52 }
0x16b1   : > { %v4768_v19 = vpop.f32.mrb[44].mxu1 }
0x16b2   : > { %v3368_v33 = vpop.f32.mrb[45].mxu1 }
0x16b3   : > { %4215 = vmatmul.mubr.msk.f32.vlgmr.msra.gmra.mrb[46].mxu0 %vm427_vm5, %v3368_v33 }
0x16b4   : > { %3462 = vmatprep.mubr.f32.mxu0 %v5566_v52  ;;  %5255 = vmatpush3.bf16.msra.mxu0 %v5252_v9 }
0x16b5   : > { %5257 = vmatprep.subr.bf16.mxu0 %v5256_v41 }
0x16b7   : > { %4216 = vmatmul.mubr.msk.f32.gmra.mrb[48].mxu0 %vm427_vm5, %v4768_v19  ;;  %v4235_v19 = vld [vmem:[%s7081_s4 + $0x4f8] sm:$0xff] }
0x16b8   : > { %5259 = vmatpush3.bf16.msra.mxu0 %v5256_v41 }
0x16b9   : > { %5261 = vmatprep.subr.bf16.mxu0 %v5260_v11 }
0x16bc   : > { %5263 = vmatpush3.bf16.msra.mxu0 %v5260_v11 }
0x16bd   : > { %5265 = vmatprep.subr.bf16.mxu0 %v5264_v50 }
0x16c0   : > { %5267 = vmatpush3.bf16.msra.mxu0 %v5264_v50 }
0x16c1   : > { %5269 = vmatprep.subr.bf16.mxu0 %v5268_v40 }
0x16c4   : > { %5271 = vmatpush3.bf16.msra.mxu0 %v5268_v40 }
0x16c5   : > { %5273 = vmatprep.subr.bf16.mxu0 %v5272_v2 }
0x16c8   : > { %5275 = vmatpush3.bf16.msra.mxu0 %v5272_v2 }
0x1786   : > { %v3458_v28 = vpop.f32.mrb[46].mxu0 }
0x1787   : > { %v3469_v38 = vsub.f32 %v3279_v34, %v3458_v28  ;;  %v3460_v15 = vpop.f32.mrb[47].mxu0  ;;  %v4233_v34 = vld [vmem:[%s7081_s4 + $0x4e8] sm:$0xff] }
0x1788   : > { %v3473_v17 = vadd.f32 %v3460_v15, %v6148_v42  ;;  %v5276_v51 = vpack.c.bf16 %v4233_v34, %v4232_v27  ;;  %v4237_v28 = vld [vmem:[%s7082_s5 + $0x248] sm:$0xff]  ;;  %v4236_v15 = vld [vmem:[%s7082_s5 + $0x240] sm:$0xff] }
0x1789   : > { %v3471_v39 = vadd.f32 %v3469_v38, %v6150_v43  ;;  %v4239_v38 = vld [vmem:[%s7082_s5 + $0x258] sm:$0xff] }
0x178a   : > { %v3477_v35 = vmul.f32 %v3473_v17, %v3473_v17  ;;  %v3464_v0 = vpop.f32.mrb[48].mxu0  ;;  %5277 = vmatprep.subr.bf16.mxu0 %v5276_v51  ;;  %v5284_v17 = vpack.c.bf16 %v4239_v38, %v4237_v28 }
0x178b   : > { %v3475_v30 = vmul.f32 %v3471_v39, %v3471_v39  ;;  %v3470_v31 = vsub.f32 %v3280_v53, %v3464_v0  ;;  %v3466_v37 = vpop.f32.mrb[49].mxu0  ;;  %v4234_v53 = vld [vmem:[%s7081_s4 + $0x4f0] sm:$0xff]  ;;  %5279 = vmatpush3.bf16.msra.mxu0 %v5276_v51  ;;  %v4243_v0 = vld [vmem:[%s7082_s5 + $0x278] sm:$0xff] }
0x178c   : > { %v3474_v56 = vadd.f32 %v3466_v37, %v6156_v46  ;;  %v5280_v33 = vpack.c.bf16 %v4235_v19, %v4234_v53  ;;  %v4238_v39 = vld [vmem:[%s7082_s5 + $0x250] sm:$0xff]  ;;  %v4240_v37 = vld [vmem:[%s7082_s5 + $0x260] sm:$0xff]  ;;  %5285 = vmatprep.subr.bf16.mxu1 %v5284_v17 }
0x178d   : > { %v3479_v57 = vadd.f32 %v3477_v35, %v3475_v30  ;;  %v3472_v61 = vadd.f32 %v3470_v31, %v6158_v47  ;;  %v4241_v35 = vld [vmem:[%s7082_s5 + $0x268] sm:$0xff]  ;;  %v5286_v30 = vpack.c.bf16 %v4238_v39, %v4236_v15 }
0x178e   : > { %v3478_v23 = vmul.f32 %v3474_v56, %v3474_v56  ;;  %5281 = vmatprep.subr.bf16.mxu0 %v5280_v33  ;;  %v5288_v31 = vpack.c.bf16 %v4243_v0, %v4241_v35  ;;  %v4242_v56 = vld [vmem:[%s7082_s5 + $0x270] sm:$0xff] }
0x178f   : > { %5459 = vrsqrt.f32 %v3479_v57  ;;  %v3476_v60 = vmul.f32 %v3472_v61, %v3472_v61  ;;  %vm3483_vm11 = vcmp.eq.f32.partialorder %v3479_v57, inf  ;;  %v3486_v43 = vand.u32 2147483648, %v3479_v57  ;;  %5283 = vmatpush3.bf16.msra.mxu0 %v5280_v33  ;;  %5287 = vmatpush1.bf16.msra.mxu1 %v5286_v30 }
0x1790   : > { %vm3485_vm12 = vcmp.eq.f32.partialorder %v3479_v57, 0.0  ;;  %5289 = vmatprep.subr.bf16.mxu1 %v5288_v31 }
0x1791   : > { %v3480_v21 = vadd.f32 %v3478_v23, %v3476_v60 }
0x1793   : > { %5461 = vrsqrt.f32 %v3480_v21  ;;  %vm3490_vm13 = vcmp.eq.f32.partialorder %v3480_v21, inf  ;;  %v3493_v1 = vand.u32 2147483648, %v3480_v21  ;;  %vm3492_vm15 = vcmp.eq.f32.partialorder %v3480_v21, 0.0 }
0x1799   : > { %v5460_v62 = vpop.eup %5459 }
0x179a   : > { %v3482_v42 = vmul.f32 %v5460_v62, %v3479_v57 }
0x179c   : > { %v3484_v54 = vsel %vm3483_vm11, %v3479_v57, %v3482_v42  ;;  %v5290_v57 = vpack.c.bf16 %v4242_v56, %v4240_v37 }
0x179d   : > { %v5462_v4 = vpop.eup %5461  ;;  %v3487_v6 = vsel %vm3485_vm12, %v3486_v43, %v3484_v54 }
0x179e   : > { %v3496_v55 = vsub.f32 %v3487_v6, %v3495_v63  ;;  %v3489_v46 = vmul.f32 %v5462_v4, %v3480_v21  ;;  %5291 = vmatpush1.bf16.msra.mxu1 %v5290_v57 }
0x17a0   : > { %vm3498_vm14 = vcmp.ge.f32.partialorder %v3496_v55, 0.0  ;;  %v3500_v47 = vmul.f32 0.01, %v3496_v55  ;;  %v3491_v7 = vsel %vm3490_vm13, %v3480_v21, %v3489_v46 }
0x17a1   : > { %v3494_v32 = vsel %vm3492_vm15, %v3493_v1, %v3491_v7 }
0x17a2   : > { %v6911_v58 = vsel %vm3498_vm14, %v3496_v55, %v3500_v47  ;;  %v3497_v14 = vsub.f32 %v3494_v32, %v3495_v63 }
0x17a3   : > { %v3504_v25 = vmul.f32 %v6911_v58, %v6911_v58 }
0x17a4   : > { %vm3499_vm0 = vcmp.ge.f32.partialorder %v3497_v14, 0.0  ;;  %v3501_v20 = vmul.f32 0.01, %v3497_v14 }
0x17a5   : > { %3506 = vadd.xlane.f32.xlu0 %v3504_v25 }
0x17a6   : > { %v6915_v18 = vsel %vm3499_vm0, %v3497_v14, %v3501_v20 }
0x17a7   : > { %v3505_v5 = vmul.f32 %v6915_v18, %v6915_v18 }
0x17a9   : > { %3508 = vadd.xlane.f32.xlu1 %v3505_v5 }
0x1832   : > { %v3507_v61 = vpop.xlane.xlu0 %3506 }
0x1833   : > { %5463 = vrsqrt.f32 %v3507_v61  ;;  %vm3512_vm1 = vcmp.eq.f32.partialorder %v3507_v61, inf  ;;  %v3515_v62 = vand.u32 2147483648, %v3507_v61  ;;  %vm3514_vm2 = vcmp.eq.f32.partialorder %v3507_v61, 0.0 }
0x1836   : > { %v3509_v23 = vpop.xlane.xlu1 %3508 }
0x1837   : > { %5465 = vrsqrt.f32 %v3509_v23  ;;  %vm3519_vm3 = vcmp.eq.f32.partialorder %v3509_v23, inf  ;;  %v3522_v6 = vand.u32 2147483648, %v3509_v23  ;;  %vm3521_vm4 = vcmp.eq.f32.partialorder %v3509_v23, 0.0 }
0x183d   : > { %v5464_v60 = vpop.eup %5463 }
0x183e   : > { %v3511_v21 = vmul.f32 %v5464_v60, %v3507_v61 }
0x1840   : > { %v3513_v42 = vsel %vm3512_vm1, %v3507_v61, %v3511_v21 }
0x1841   : > { %v5466_v43 = vpop.eup %5465  ;;  %v3516_v63 = vsel %vm3514_vm2, %v3515_v62, %v3513_v42 }
0x1842   : > { %v3524_v54 = vadd.f32 1e-20, %v3516_v63  ;;  %v3518_v4 = vmul.f32 %v5466_v43, %v3509_v23 }
0x1844   : > { %5467 = vrcp.f32 %v3524_v54  ;;  %v3520_v55 = vsel %vm3519_vm3, %v3509_v23, %v3518_v4 }
0x1845   : > { %v3523_v46 = vsel %vm3521_vm4, %v3522_v6, %v3520_v55 }
0x1846   : > { %v3525_v1 = vadd.f32 1e-20, %v3523_v46 }
0x1848   : > { %5469 = vrcp.f32 %v3525_v1 }
0x184e   : > { %v5468_v47 = vpop.eup %5467 }
0x184f   : > { %v3530_v7 = vmul.f32 %v5468_v47, %v6911_v58 }
0x1851   : > { %4217 = vst [vmem:[%s6254_s24 + $0x80] sm:$0xff] %v3530_v7  ;;  %4801 = vmatprep.mubr.f32.mxu0 %v3530_v7 }
0x1852   : > { %v5470_v32 = vpop.eup %5469 }
0x1853   : > { %v3531_v14 = vmul.f32 %v5470_v32, %v6915_v18 }
0x1855   : > { %4218 = vst [vmem:[%s6254_s24 + $0x88] sm:$0xff] %v3531_v14  ;;  %4802 = vmatmul.mubr.f32.vlgmr.msra.gmra.mrb[50].mxu0 %v3531_v14 }
0x1928   : > { %v4803_v25 = vpop.f32.mrb[50].mxu0 }
0x1929   : > { %v3619_v20 = vpop.f32.mrb[51].mxu0 }
0x192a   : > { %4244 = vmatmul.mubr.msk.f32.vlgmr.msra.gmra.mrb[46].mxu1 %vm427_vm5, %v3619_v20 }
0x192b   : > { %3713 = vmatprep.mubr.f32.mxu1 %v5566_v52 }
0x192e   : > { %4245 = vmatmul.mubr.msk.f32.gmra.mrb[48].mxu1 %vm427_vm5, %v4803_v25 }
0x19fd   : > { %v3709_v5 = vpop.f32.mrb[46].mxu1 }
0x19fe   : > { %v3720_v8 = vsub.f32 %v3530_v7, %v3709_v5  ;;  %v3711_v59 = vpop.f32.mrb[47].mxu1 }
0x19ff   : > { %v3724_v58 = vadd.f32 %v3711_v59, %v6164_v49 }
0x1a00   : > { %v3722_v9 = vadd.f32 %v3720_v8, %v6152_v44 }
0x1a01   : > { %v3728_v22 = vmul.f32 %v3724_v58, %v3724_v58  ;;  %v3715_v16 = vpop.f32.mrb[48].mxu1 }
0x1a02   : > { %v3726_v18 = vmul.f32 %v3722_v9, %v3722_v9  ;;  %v3721_v41 = vsub.f32 %v3531_v14, %v3715_v16  ;;  %v3717_v36 = vpop.f32.mrb[49].mxu1 }
0x1a03   : > { %v3725_v10 = vadd.f32 %v6162_v12, %v3717_v36 }
0x1a04   : > { %v3730_v11 = vadd.f32 %v3728_v22, %v3726_v18  ;;  %v3723_v3 = vadd.f32 %v3721_v41, %v6160_v48 }
0x1a05   : > { %v3729_v52 = vmul.f32 %v3725_v10, %v3725_v10 }
0x1a06   : > { %5471 = vrsqrt.f32 %v3730_v11  ;;  %v3727_v29 = vmul.f32 %v3723_v3, %v3723_v3  ;;  %vm3734_vm5 = vcmp.eq.f32.partialorder %v3730_v11, inf  ;;  %v3737_v44 = vand.u32 2147483648, %v3730_v11 }
0x1a07   : > { %vm3736_vm6 = vcmp.eq.f32.partialorder %v3730_v11, 0.0 }
0x1a08   : > { %v3731_v50 = vadd.f32 %v3729_v52, %v3727_v29 }
0x1a0a   : > { %5473 = vrsqrt.f32 %v3731_v50  ;;  %vm3741_vm7 = vcmp.eq.f32.partialorder %v3731_v50, inf  ;;  %v3744_v27 = vand.u32 2147483648, %v3731_v50  ;;  %vm3743_vm8 = vcmp.eq.f32.partialorder %v3731_v50, 0.0 }
0x1a10   : > { %v5472_v45 = vpop.eup %5471 }
0x1a11   : > { %v3733_v49 = vmul.f32 %v5472_v45, %v3730_v11 }
0x1a13   : > { %v3735_v40 = vsel %vm3734_vm5, %v3730_v11, %v3733_v49 }
0x1a14   : > { %v5474_v13 = vpop.eup %5473  ;;  %v3738_v26 = vsel %vm3736_vm6, %v3737_v44, %v3735_v40 }
0x1a15   : > { %v3747_v2 = vsub.f32 %v3738_v26, %v3746_v24  ;;  %v3740_v12 = vmul.f32 %v5474_v13, %v3731_v50 }
0x1a17   : > { %v3749_v48 = vmax.f32 %v3747_v2, 0.0  ;;  %v3742_v34 = vsel %vm3741_vm7, %v3731_v50, %v3740_v12 }
0x1a18   : > { %v3745_v51 = vsel %vm3743_vm8, %v3744_v27, %v3742_v34 }
0x1a19   : > { %v3751_v53 = vmul.f32 %v3749_v48, %v3749_v48  ;;  %v3748_v19 = vsub.f32 %v3745_v51, %v3746_v24 }
0x1a1b   : > { %3753 = vadd.xlane.f32.xlu0 %v3751_v53  ;;  %v3750_v33 = vmax.f32 %v3748_v19, 0.0 }
0x1a1d   : > { %v3752_v28 = vmul.f32 %v3750_v33, %v3750_v33 }
0x1a1f   : > { %3755 = vadd.xlane.f32.xlu1 %v3752_v28 }
0x1aa8   : > { %v3754_v38 = vpop.xlane.xlu0 %3753 }
0x1aa9   : > { %5475 = vrsqrt.f32 %v3754_v38  ;;  %vm3759_vm9 = vcmp.eq.f32.partialorder %v3754_v38, inf  ;;  %v3762_v35 = vand.u32 2147483648, %v3754_v38  ;;  %vm3761_vm10 = vcmp.eq.f32.partialorder %v3754_v38, 0.0 }
0x1aac   : > { %v3756_v15 = vpop.xlane.xlu1 %3755 }
0x1aad   : > { %5477 = vrsqrt.f32 %v3756_v15  ;;  %vm3766_vm11 = vcmp.eq.f32.partialorder %v3756_v15, inf  ;;  %v3769_v57 = vand.u32 2147483648, %v3756_v15  ;;  %vm3768_vm12 = vcmp.eq.f32.partialorder %v3756_v15, 0.0 }
0x1ab3   : > { %v5476_v17 = vpop.eup %5475 }
0x1ab4   : > { %v3758_v39 = vmul.f32 %v5476_v17, %v3754_v38 }
0x1ab6   : > { %v3760_v0 = vsel %vm3759_vm9, %v3754_v38, %v3758_v39 }
0x1ab7   : > { %v5478_v30 = vpop.eup %5477  ;;  %v3763_v31 = vsel %vm3761_vm10, %v3762_v35, %v3760_v0 }
0x1ab8   : > { %v3771_v37 = vadd.f32 1e-20, %v3763_v31  ;;  %v3765_v56 = vmul.f32 %v5478_v30, %v3756_v15 }
0x1aba   : > { %5479 = vrcp.f32 %v3771_v37  ;;  %v3767_v61 = vsel %vm3766_vm11, %v3756_v15, %v3765_v56 }
0x1abb   : > { %v3770_v23 = vsel %vm3768_vm12, %v3769_v57, %v3767_v61 }
0x1abc   : > { %v3772_v60 = vadd.f32 1e-20, %v3770_v23 }
0x1abe   : > { %5481 = vrcp.f32 %v3772_v60 }
0x1ac4   : > { %v5480_v21 = vpop.eup %5479 }
0x1ac5   : > { %v3777_v62 = vmul.f32 %v5480_v21, %v3749_v48 }
0x1ac7   : > { %4246 = vst [vmem:[%s6254_s24 + $0x90] sm:$0xff] %v3777_v62  ;;  %3782 = vst [vmem:[%s272_s12] sm:$0xff] %v3777_v62 }
0x1ac8   : > { %v5482_v42 = vpop.eup %5481 }
0x1ac9   : > { %v3778_v43 = vmul.f32 %v5482_v42, %v3750_v33 }
0x1acb   : > { %4247 = vst [vmem:[%s6254_s24 + $0x98] sm:$0xff] %v3778_v43  ;;  %3783 = vst [vmem:[%s272_s12 + $0x8] sm:$0xff] %v3778_v43 }
0x1acc   : > { %5508 = shalt.err (!%p5505_p8)
}
0x1acd   : > { %s5509_s27 = scalar_lea.hbm %s7010_s19, 256  ;;  %s5513_s17 = scalar_lea.hbm %s7083_s6, 512 }
0x1ace   : > { %p5510_p9 = scmp.ne.s32.totalorder %s7010_s19, %s5509_s27  ;;  %p5514_p0 = scmp.lt.u32.totalorder %s7010_s19, %s7083_s6 }
0x1acf   : > { %p5515_p1 = scmp.lt.u32.totalorder %s5513_s17, %s5509_s27  ;;  %p5517_p3 = scmp.lt.u32.totalorder %s5509_s27, %s7010_s19 }
0x1ad0   : > { %p5511_p12 = pnand %p5510_p9, %p5659_p10 }
0x1ad1   : > { %p5516_p2 = por %p5515_p1, %p5514_p0 }
0x1ad2   : > { %p5512_p13 = pneg %p5511_p12 }
0x1ad3   : > { %p5518_p4 = por %p5517_p3, %p5516_p2 }
0x1ad5   : > { %p5519_p5 = pnand %p5518_p4, %p5512_p13 }
0x1ad7   : > { %5522 = shalt.err (!%p5519_p5)
}
0x1ad8   : > { %s5569_s22 = smov 128   ;;  %s5570_s25 = smov 8  }
0x1ad9   : > { %5293 = dma.vmem_to_hbm [thread:$0]  (%p5659_p10), %s7012_s13, 256, %s7010_s19, %s3785_s21, %s5569_s22, %s5569_s22, %s5570_s25  }
0x1ada   : > { %s3790_s26 = scalar_lea.sflag [#allocation7], %s6226_s20 }
0x1adb   : > { %s3818_s27 = scalar_lea.hbm %s7084_s7, %s4255_s10  ;;  %s3835_s17 = sshll.u32 %s6254_s24, 4  ;;  %s3836_s17 = int_to_ptr.vmem [resolvable:$true] %s3835_s17 }
0x1adc   : > { %s5571_s18 = smov 256   ;;  %s5572_s20 = smov 512  }
0x1add   : > { %5294 = sst [smem:[#allocation9]] (%p5659_p10), %s5571_s18  ;;  %s5573_s9 = smov 2  }
0x1ade   : > { %5295 = sst [smem:[#allocation9 + $0x1]] (%p5659_p10), %s5572_s20  ;;  %s5574_s13 = smov 128  }
0x1adf   : > { %5296 = sst [smem:[#allocation9 + $0x2]] (%p5659_p10), %s5573_s9  ;;  %s5575_s19 = smov 8  }
0x1ae0   : > { %5297 = sst [smem:[#allocation9 + $0x3]] (%p5659_p10), %s5574_s13  ;;  %s5576_s10 = smov [#allocation8]  }
0x1ae1   : > { %5298 = sst [smem:[#allocation9 + $0x4]] (%p5659_p10), %s5574_s13  ;;  %s5577_s24 = smov 0  }
0x1ae2   : > { %5299 = sst [smem:[#allocation9 + $0x5]] (%p5659_p10), %s5575_s19 }
0x1ae3   : > { %5300 = dma.general (%p5659_p10), %s3836_s17, 2560, %s3818_s27, %s3790_s26, %s5576_s10, [#allocation9], %s5577_s24, 0  }
0x1ae4 PF: > { %p5310_p6 = scmp.ge.s32.totalorder %s5563_s8, 2  ;;  %s3863_s21 = sand.u32 1, %s5551_s29  }
0x1ae5   : > { %s3864_s23 = scalar_lea.sflag [#allocation5], %s3863_s21 }
0x1ae6   : > { %p5304_p7 = pnand %p5310_p6, %p5663_p11 }
0x1ae8   : > { %5542 = dma.done.wait (!%p5304_p7), %s3864_s23, 256  }
0x1ae9   : > { %5544 = vsyncadd (!%p5304_p7), %s3864_s23, 4294967040  ;;  %s3873_s22 = scalar_lea.sflag [#allocation7], %s3863_s21 }
0x1aea   : > { %5546 = dma.done.wait (!%p5304_p7), %s3873_s22, 2560  }
0x1aeb   : > { %5548 = vsyncadd (!%p5304_p7), %s3873_s22, 4294964736  ;;  %p27_p10 = scmp.ge.s32.totalorder %s5646_s11, 4   ;;  %s7087_s29 = smov %s5555_s0 }
0x1aec   : > { %s7088_s0 = smov %s5559_s30  ;;  %s7089_s30 = smov %s5657_s14 }
0x1aed   : > { %s7090_s8 = smov %s5646_s11  ;;  %29 = sbr.rel (!%p27_p10) target bundleno = 20 (0x14), region = 127 }
0x1af4   :  { %3878 = vsyncpa [#allocation5], 1 }
0x1af5   :  { %3880 = vsyncpa [#allocation5 + $0x1], 1 }
0x1af6   :  { %3881 = vsyncpa [#allocation7], 1 }
0x1af7   :  { %3883 = vsyncpa [#allocation7 + $0x1], 1 }

</bundles_post_ra>
